<compile_context>
chip_gen: v7x
topology: tpu7x:2x2x1
jax: 0.10.0
libtpu: 0.0.40
codegen_flags: <defaults>
</compile_context>

<pallas_src>
import math
import functools

import jax
import jax.numpy as jnp
from jax import lax
from jax.experimental import pallas as pl
from jax.experimental.pallas import tpu as pltpu

MUL = 8
DIM_IN = 32          # irreps_node_input.dim
DIM_OUT = 32         # irreps_node_output.dim
DIM_MID = 64         # irreps_mid.dim
DIM_EATTR = 4        # irreps_edge_attr.dim
DIM_ESCAL = 16       # fc_neurons[0]
FC_HID = 32          # fc_neurons[1]
WNUMEL = 32          # tp.weight_numel = 4 instructions * 8
NUM_NEIGHBORS = 3.0
INV_SQRT3 = 1.0 / math.sqrt(3.0)
SILU_CST = 1.679177  # e3nn normalize2mom(silu) second-moment constant (approx.)

# packed per-edge record: [escal(16) | eattr(4) | src-as-float(1) | pad(3)]
REC_W = 24
SRC_COL = DIM_ESCAL + DIM_EATTR          # 20

# ----- wide 'uvu' tensor-product factorization --------------------------------
# mid (internal) layout, blocks of 8:
#   0: slot0   = w_i0 * xs   * y0                 (0e x 0e -> 0e)
#   1: slot1   = w_i3 * (xv . yv) * 1/sqrt(3)     (1o x 1o -> 0e)
#   2..4: slot2_m = w_i1 * xs   * yv_m            (0e x 1o -> 1o)
#   5..7: slot3_m = w_i2 * xv_m * y0              (1o x 0e -> 1o)
# Expanded into 10 groups of 8 so that P[:, 8g:8g+8] = W80_g * X80_g * Y80_g and
# mid = P @ R80 (R80 sums groups 1..3 into slot1).
NGRP = 10
NWIDE = 8 * NGRP                          # 80
_W_SRC = (0, 3, 3, 3, 1, 1, 1, 2, 2, 2)   # tp-weight instruction block per group
_X_SRC = (0, 1, 2, 3, 0, 0, 0, 1, 2, 3)   # node-feature block (xs, xv0, xv1, xv2)
_Y_SRC = (0, 1, 2, 3, 1, 2, 3, 0, 0, 0)   # edge-attr column  (y0, yv0, yv1, yv2)
_MID_DST = (0, 1, 1, 1, 2, 3, 4, 5, 6, 7)  # destination mid block per group
_W_SCALE = (1.0, INV_SQRT3, INV_SQRT3, INV_SQRT3, 1.0, 1.0, 1.0, 1.0, 1.0, 1.0)


# -----------------------------------------------------------------------------
# layout conversion glue (e3nn u-major  <->  internal m-major)
# -----------------------------------------------------------------------------
def to_internal(x):
    xs = x[:, :MUL]
    xv = x[:, MUL:].reshape(-1, MUL, 3)
    return jnp.concatenate([xs, xv[:, :, 0], xv[:, :, 1], xv[:, :, 2]], axis=-1)


def to_e3nn(x):
    xs = x[:, :MUL]
    xv = jnp.stack([x[:, 8:16], x[:, 16:24], x[:, 24:32]], axis=-1)  # [N, 8, 3]
    return jnp.concatenate([xs, xv.reshape(-1, 3 * MUL)], axis=-1)


# -----------------------------------------------------------------------------
# per-edge 'uvu' tensor product in the narrow layout (pure-JAX reference only)
# -----------------------------------------------------------------------------
def _edge_tp(x, y, w):
    xs = x[:, 0:8]
    xv0, xv1, xv2 = x[:, 8:16], x[:, 16:24], x[:, 24:32]
    y0 = y[:, 0:1]
    yv0, yv1, yv2 = y[:, 1:2], y[:, 2:3], y[:, 3:4]
    w_i0, w_i1, w_i2, w_i3 = w[:, 0:8], w[:, 8:16], w[:, 16:24], w[:, 24:32]

    slot0 = w_i0 * xs * y0                                              # 0e x 0e -> 0e
    slot1 = w_i3 * (xv0 * yv0 + xv1 * yv1 + xv2 * yv2) * INV_SQRT3      # 1o x 1o -> 0e
    s = w_i1 * xs                                                       # 0e x 1o -> 1o
    t = w_i2 * y0                                                       # 1o x 0e -> 1o
    return jnp.concatenate(
        [slot0, slot1, s * yv0, s * yv1, s * yv2, t * xv0, t * xv1, t * xv2],
        axis=-1)                                                        # [E, 64]


# -----------------------------------------------------------------------------
# fused Pallas kernel
#   grid = (num_edge_tiles,)  axis "arbitrary" (accumulation over edges)
#   step 0        : node path  (sc | feat80) = x_int @ w_node_wide, * node_attr
#   every step    : edge MLP -> gather feat80[edge_src] -> wide TP -> scatter-add
#   last step     : (folded) lin2 / alpha combine; write output once
# -----------------------------------------------------------------------------
def _fused_conv_kernel(x_ref, a_ref, wnode_ref, fcw1_ref, fcw2_ref, t80_ref,
                       wlin2_ref, walpha_ref, rec_ref, dst_ref, o_ref,
                       sc_scr, feat_scr, acc_scr, *, n_nodes):
    e = pl.program_id(0)

    @pl.when(e == 0)
    def _():
        # self-connection + lin1 (mapped to the wide gather layout) in one
        # lane-dense [N, 112] matmul
        xw = jnp.dot(x_ref[...], wnode_ref[...],
                     preferred_element_type=jnp.float32) * a_ref[...]
        sc_scr[...] = xw[:, :DIM_OUT]
        feat_scr[...] = xw[:, DIM_OUT:]
        acc_scr[...] = jnp.zeros_like(acc_scr)

    rec = rec_ref[...]                                                   # [TE, 24]
    te = rec.shape[0]

    # --- edge MLP (fan-in / normalize2mom constants folded into the weights;
    #     record->escal selection folded into fcw1's zero rows) ---
    h = jax.nn.silu(jnp.dot(rec, fcw1_ref[...],
                            preferred_element_type=jnp.float32))        # [TE, 32]
    w80 = jnp.dot(h, fcw2_ref[...], preferred_element_type=jnp.float32)  # [TE, 80]

    # --- gather lin1(x)[edge_src] (wide layout) from VMEM-resident feat80 ---
    src = rec[:, SRC_COL:SRC_COL + 1].astype(jnp.int32)                  # [TE, 1]
    oh_src = (lax.broadcasted_iota(jnp.int32, (te, n_nodes), 1) == src
              ).astype(jnp.float32)                                      # [TE, N]
    x80 = jnp.dot(oh_src, feat_scr[...],
                  preferred_element_type=jnp.float32)                    # [TE, 80]

    # --- edge-attr factors, expanded to the wide layout by a tiny matmul ---
    y80 = jnp.dot(rec, t80_ref[...], preferred_element_type=jnp.float32)  # [TE, 80]

    # --- 'uvu' tensor product: two full-width VPU multiplies ---
    p = w80 * x80 * y80                                                  # [TE, 80]

    # --- scatter-add over edge_dst (one-hot in natural [N, TE] MXU form;
    #     padded edges carry dst == n_nodes -> all-zero column -> dropped) ---
    oh_dst = (lax.broadcasted_iota(jnp.int32, (n_nodes, te), 0) == dst_ref[...]
              ).astype(jnp.float32)                                      # [N, TE]
    acc_scr[...] += jnp.dot(oh_dst, p, preferred_element_type=jnp.float32)

    @pl.when(e == pl.num_programs(0) - 1)
    def _():
        # slot1 re-summation, lin2 / alpha and 1/sqrt(num_neighbors) are all
        # folded into wlin2_ref / walpha_ref host-side.
        a = a_ref[...]
        acc = acc_scr[...]
        conv = jnp.dot(acc, wlin2_ref[...], preferred_element_type=jnp.float32) * a
        alpha = jnp.dot(acc, walpha_ref[...], preferred_element_type=jnp.float32) * a
        # sc.output_mask is statically all-ones here, so 1 - m + alpha*m == alpha
        o_ref[...] = sc_scr[...] + alpha * conv


def convolution_forward(w, node_input, node_attr, edge_src, edge_dst,
                        edge_attr, edge_scalars, te=1024):
    assert te % 128 == 0
    n_nodes = node_input.shape[0]
    e = edge_src.shape[0]
    n_tiles = pl.cdiv(e, te)
    e_pad = n_tiles * te

    x_int = to_internal(node_input).astype(jnp.float32)

    # one lane-dense per-edge record -> a single contiguous DMA per edge tile
    rec = jnp.zeros((e_pad, REC_W), jnp.float32)
    rec = rec.at[:e, 0:DIM_ESCAL].set(edge_scalars.astype(jnp.float32))
    rec = rec.at[:e, DIM_ESCAL:DIM_ESCAL + DIM_EATTR].set(edge_attr.astype(jnp.float32))
    rec = rec.at[:e, SRC_COL].set(edge_src.astype(jnp.float32))
    # padded edges get dst == n_nodes -> one-hot column is all zeros -> dropped
    dst_row = jnp.full((1, e_pad), n_nodes, jnp.int32)
    dst_row = dst_row.at[0, :e].set(edge_dst.astype(jnp.int32))

    kern = functools.partial(_fused_conv_kernel, n_nodes=n_nodes)

    out_int = pl.pallas_call(
        kern,
        out_shape=jax.ShapeDtypeStruct((n_nodes, DIM_OUT), jnp.float32),
        grid=(n_tiles,),
        in_specs=[
            pl.BlockSpec((n_nodes, DIM_IN), lambda i: (0, 0)),          # node_input (internal)
            pl.BlockSpec((n_nodes, 1), lambda i: (0, 0)),               # node_attr (1x0e)
            pl.BlockSpec((DIM_IN, DIM_OUT + NWIDE), lambda i: (0, 0)),  # [w_sc | w_lin1@S80]
            pl.BlockSpec((REC_W, FC_HID), lambda i: (0, 0)),            # fc_w1 (record-padded)
            pl.BlockSpec((FC_HID, NWIDE), lambda i: (0, 0)),            # fc_w2 (wide, c3 folded)
            pl.BlockSpec((REC_W, NWIDE), lambda i: (0, 0)),             # record -> Y80 selector
            pl.BlockSpec((NWIDE, DIM_OUT), lambda i: (0, 0)),           # w_lin2 (wide, /sqrt(nn))
            pl.BlockSpec((NWIDE, 1), lambda i: (0, 0)),                 # w_alpha (wide, /sqrt(nn))
            pl.BlockSpec((te, REC_W), lambda i: (i, 0)),                # packed edge record tile
            pl.BlockSpec((1, te), lambda i: (0, i)),                    # edge_dst row tile
        ],
        out_specs=pl.BlockSpec((n_nodes, DIM_OUT), lambda i: (0, 0)),
        scratch_shapes=[pltpu.VMEM((n_nodes, DIM_OUT), jnp.float32),    # sc_out
                        pltpu.VMEM((n_nodes, NWIDE), jnp.float32),      # feat80 = (lin1(x)*a)@S80
                        pltpu.VMEM((n_nodes, NWIDE), jnp.float32)],     # wide mid accumulator
        compiler_params=pltpu.CompilerParams(
            dimension_semantics=("arbitrary",)),
    )(x_int, node_attr.astype(jnp.float32), w["w_node_wide"], w["fc_w1_rec"],
      w["fc_w2_80"], w["t80_rec"], w["w_lin2_80"], w["w_alpha_80"], rec, dst_row)

    return to_e3nn(out_int)


# -----------------------------------------------------------------------------
# parameter setup (deterministic, per the module __init__ shapes)
# -----------------------------------------------------------------------------
def init_params(key):
    ks = jax.random.split(key, 9)
    return {
        "sc_0e": jax.random.normal(ks[0], (MUL, MUL), jnp.float32),
        "sc_1o": jax.random.normal(ks[1], (MUL, MUL), jnp.float32),
        "lin1_0e": jax.random.normal(ks[2], (MUL, MUL), jnp.float32),
        "lin1_1o": jax.random.normal(ks[3], (MUL, MUL), jnp.float32),
        "fc_w1": jax.random.normal(ks[4], (DIM_ESCAL, FC_HID), jnp.float32),
        "fc_w2": jax.random.normal(ks[5], (FC_HID, WNUMEL), jnp.float32),
        "lin2_0e": jax.random.normal(ks[6], (2 * MUL, MUL), jnp.float32),
        "lin2_1o": jax.random.normal(ks[7], (2 * MUL, MUL), jnp.float32),
        # the module zeros alpha at __init__, but it is a trainable parameter;
        # use nonzero values here so the edge pipeline is actually validated.
        "alpha_w": 0.3 * jax.random.normal(ks[8], (2 * MUL, 1), jnp.float32),
    }


def build_full_weights(p):
    norm8 = 1.0 / math.sqrt(8.0)
    norm16 = 1.0 / math.sqrt(16.0)
    inv_neigh = 1.0 / math.sqrt(NUM_NEIGHBORS)

    def blockdiag_io(w0e, w1o):
        w = jnp.zeros((DIM_IN, DIM_IN), jnp.float32)
        w = w.at[0:8, 0:8].set(w0e * norm8)
        for m in range(3):
            w = w.at[8 + 8 * m:16 + 8 * m, 8 + 8 * m:16 + 8 * m].set(w1o * norm8)
        return w

    w_sc = blockdiag_io(p["sc_0e"], p["sc_1o"])
    w_lin1 = blockdiag_io(p["lin1_0e"], p["lin1_1o"])

    w_lin2 = jnp.zeros((DIM_MID, DIM_OUT), jnp.float32)
    w_lin2 = w_lin2.at[0:16, 0:8].set(p["lin2_0e"] * norm16)          # mid 0e -> out 0e
    for m in range(3):
        w_lin2 = w_lin2.at[16 + 8 * m:24 + 8 * m, 8 + 8 * m:16 + 8 * m].set(
            p["lin2_1o"][0:8] * norm16)                               # slot2 1o -> out 1o
        w_lin2 = w_lin2.at[40 + 8 * m:48 + 8 * m, 8 + 8 * m:16 + 8 * m].set(
            p["lin2_1o"][8:16] * norm16)                              # slot3 1o -> out 1o
    w_alpha = jnp.zeros((DIM_MID, 1), jnp.float32)
    w_alpha = w_alpha.at[0:16, :].set(p["alpha_w"] * norm16)          # mid 0e -> '0e'

    # fold 1/sqrt(fan_in) and normalize2mom(SiLU) constant into the FC weights
    fc_w1 = p["fc_w1"] * (1.0 / math.sqrt(DIM_ESCAL))
    fc_w2 = p["fc_w2"] * (SILU_CST / math.sqrt(FC_HID))

    # --- wide-TP expansion matrices (all folded into constant weight inputs) ---
    eye8 = jnp.eye(8, dtype=jnp.float32)
    s80 = jnp.zeros((DIM_IN, NWIDE), jnp.float32)      # feat -> X80 selection
    t80 = jnp.zeros((DIM_EATTR, NWIDE), jnp.float32)   # edge_attr -> Y80 selection
    r80 = jnp.zeros((NWIDE, DIM_MID), jnp.float32)     # P -> mid re-summation
    fc_w2_80 = jnp.zeros((FC_HID, NWIDE), jnp.float32)
    for g in range(NGRP):
        cols = slice(8 * g, 8 * g + 8)
        s80 = s80.at[8 * _X_SRC[g]:8 * _X_SRC[g] + 8, cols].set(eye8)
        t80 = t80.at[_Y_SRC[g], cols].set(1.0)
        r80 = r80.at[cols, 8 * _MID_DST[g]:8 * _MID_DST[g] + 8].set(eye8)
        fc_w2_80 = fc_w2_80.at[:, cols].set(
            fc_w2[:, 8 * _W_SRC[g]:8 * _W_SRC[g] + 8] * _W_SCALE[g])

    # node path: [N,32] @ [32, 32+80] -> sc (32) | feat80 (80) in one matmul
    w_node_wide = jnp.concatenate([w_sc, w_lin1 @ s80], axis=1)

    # record -> escal / edge_attr selection folded into the FC / Y80 operands
    fc_w1_rec = jnp.zeros((REC_W, FC_HID), jnp.float32).at[0:DIM_ESCAL, :].set(fc_w1)
    t80_rec = jnp.zeros((REC_W, NWIDE), jnp.float32).at[
        DIM_ESCAL:DIM_ESCAL + DIM_EATTR, :].set(t80)

    # slot1 re-summation + 1/sqrt(num_neighbors) folded into lin2 / alpha
    w_lin2_80 = (r80 @ w_lin2) * inv_neigh
    w_alpha_80 = (r80 @ w_alpha) * inv_neigh

    # sc.output_mask: every output irrep reachable from (0e+1o) x 0e -> all ones
    mask = jnp.ones((1, DIM_OUT), jnp.float32)
    return {"w_node_wide": w_node_wide, "fc_w1_rec": fc_w1_rec,
            "fc_w2_80": fc_w2_80, "t80_rec": t80_rec,
            "w_lin2_80": w_lin2_80, "w_alpha_80": w_alpha_80,
            # raw pieces used by the pure-JAX reference
            "w_sc": w_sc, "w_lin1": w_lin1, "w_lin2": w_lin2,
            "w_alpha": w_alpha, "mask": mask}


# -----------------------------------------------------------------------------
# pure-JAX reference (narrow layout, un-folded constants: validates the folds)
# -----------------------------------------------------------------------------
def reference_forward(w, p, node_input, node_attr, edge_src, edge_dst,
                      edge_attr, edge_scalars):
    n_nodes = node_input.shape[0]
    x_int = to_internal(node_input)
    a = node_attr

    h = jax.nn.silu(edge_scalars @ p["fc_w1"] / math.sqrt(DIM_ESCAL)) * SILU_CST
    tp_w = h @ p["fc_w2"] / math.sqrt(FC_HID)

    sc_out = (x_int @ w["w_sc"]) * a
    feat = (x_int @ w["w_lin1"]) * a
    mid_e = _edge_tp(feat[edge_src], edge_attr, tp_w)
    mid = jax.ops.segment_sum(mid_e, edge_dst, num_segments=n_nodes)
    mid = mid / math.sqrt(NUM_NEIGHBORS)

    conv = (mid @ w["w_lin2"]) * a
    alpha = (mid @ w["w_alpha"]) * a
    alpha = 1.0 - w["mask"] + alpha * w["mask"]
    return to_e3nn(sc_out + alpha * conv)


if __name__ == "__main__":
    key = jax.random.PRNGKey(0)
    N, E = 16, 3000                   # E not a multiple of the edge tile -> pads
    ks = jax.random.split(key, 7)

    node_input = jax.random.normal(ks[0], (N, DIM_IN), jnp.float32)
    node_attr = jax.random.normal(ks[1], (N, 1), jnp.float32)         # 1x0e
    edge_src = jax.random.randint(ks[2], (E,), 0, N, jnp.int32)
    edge_dst = jax.random.randint(ks[3], (E,), 0, N, jnp.int32)
    edge_attr = jax.random.normal(ks[4], (E, DIM_EATTR), jnp.float32)
    edge_scalars = jax.random.normal(ks[5], (E, DIM_ESCAL), jnp.float32)

    params = init_params(ks[6])
    weights = build_full_weights(params)

    out = convolution_forward(weights, node_input, node_attr, edge_src, edge_dst,
                              edge_attr, edge_scalars, te=1024)
    out = jax.block_until_ready(out)

    ref = reference_forward(weights, params, node_input, node_attr, edge_src,
                            edge_dst, edge_attr, edge_scalars)
    assert out.shape == (N, DIM_OUT)
    assert out.dtype == jnp.float32
    max_err = float(jnp.max(jnp.abs(out - ref)))
    assert jnp.allclose(out, ref, atol=5e-2, rtol=2e-3), (
        f"Pallas output mismatch, max abs err = {max_err}")
    print("KERNEL_OK")
</pallas_src>

<mosaic_0001>
module attributes {stable_mosaic.version = 11 : i64} {
  func.func @_fused_conv_kernel(%arg0: i32, %arg1: memref<16x32xf32, #tpu.memory_space<vmem>>, %arg2: memref<16x1xf32, #tpu.memory_space<vmem>>, %arg3: memref<32x112xf32, #tpu.memory_space<vmem>>, %arg4: memref<24x32xf32, #tpu.memory_space<vmem>>, %arg5: memref<32x80xf32, #tpu.memory_space<vmem>>, %arg6: memref<24x80xf32, #tpu.memory_space<vmem>>, %arg7: memref<80x32xf32, #tpu.memory_space<vmem>>, %arg8: memref<80x1xf32, #tpu.memory_space<vmem>>, %arg9: memref<1024x24xf32, #tpu.memory_space<vmem>>, %arg10: memref<1x1024xi32, #tpu.memory_space<vmem>>, %arg11: memref<16x32xf32, #tpu.memory_space<vmem>>, %arg12: memref<16x32xf32, #tpu.memory_space<vmem>>, %arg13: memref<16x80xf32, #tpu.memory_space<vmem>>, %arg14: memref<16x80xf32, #tpu.memory_space<vmem>>) attributes {dimension_semantics = [#tpu.dimension_semantics<arbitrary>], iteration_bounds = array<i64: 3>, scalar_prefetch = 0 : i64, scratch_operands = 3 : i64, tpu.core_type = #tpu.core_type<tc>, window_params = [{pipeline_mode = #tpu.pipeline_mode<synchronous>, transform_indices = @transform_0, window_bounds = array<i64: 16, 32>}, {pipeline_mode = #tpu.pipeline_mode<synchronous>, transform_indices = @transform_1, window_bounds = array<i64: 16, 1>}, {pipeline_mode = #tpu.pipeline_mode<synchronous>, transform_indices = @transform_2, window_bounds = array<i64: 32, 112>}, {pipeline_mode = #tpu.pipeline_mode<synchronous>, transform_indices = @transform_3, window_bounds = array<i64: 24, 32>}, {pipeline_mode = #tpu.pipeline_mode<synchronous>, transform_indices = @transform_4, window_bounds = array<i64: 32, 80>}, {pipeline_mode = #tpu.pipeline_mode<synchronous>, transform_indices = @transform_5, window_bounds = array<i64: 24, 80>}, {pipeline_mode = #tpu.pipeline_mode<synchronous>, transform_indices = @transform_6, window_bounds = array<i64: 80, 32>}, {pipeline_mode = #tpu.pipeline_mode<synchronous>, transform_indices = @transform_7, window_bounds = array<i64: 80, 1>}, {transform_indices = @transform_8, window_bounds = array<i64: 1024, 24>}, {transform_indices = @transform_9, window_bounds = array<i64: 1, 1024>}, {pipeline_mode = #tpu.pipeline_mode<synchronous>, transform_indices = @transform_10, window_bounds = array<i64: 16, 32>}]} {
    %c0_i32 = arith.constant 0 : i32
    %0 = arith.cmpi eq, %arg0, %c0_i32 : i32
    %1 = arith.extui %0 : i1 to i32
    %c0_i32_0 = arith.constant 0 : i32
    %2 = arith.cmpi ne, %1, %c0_i32_0 : i32
    scf.if %2 {
      %c0_22 = arith.constant 0 : index
      %c0_23 = arith.constant 0 : index
      %40 = vector.load %arg1[%c0_22, %c0_23] : memref<16x32xf32, #tpu.memory_space<vmem>>, vector<16x32xf32>
      %c0_24 = arith.constant 0 : index
      %c0_25 = arith.constant 0 : index
      %41 = vector.load %arg3[%c0_24, %c0_25] : memref<32x112xf32, #tpu.memory_space<vmem>>, vector<32x112xf32>
      %cst_26 = arith.constant dense<0.000000e+00> : vector<16x112xf32>
      %42 = tpu.matmul %40, %41, %cst_26 {dimension_numbers = #tpu.dot_dimension_numbers<[1], [0], [0], [1], [0, 0, 1, 1], [], []>} : vector<16x32xf32>, vector<32x112xf32>, vector<16x112xf32> -> vector<16x112xf32>
      %c0_27 = arith.constant 0 : index
      %c0_28 = arith.constant 0 : index
      %43 = vector.load %arg2[%c0_27, %c0_28] : memref<16x1xf32, #tpu.memory_space<vmem>>, vector<16x1xf32>
      %44 = vector.broadcast %43 : vector<16x1xf32> to vector<16x112xf32>
      %45 = arith.mulf %42, %44 : vector<16x112xf32>
      %46 = vector.extract_strided_slice %45 {offsets = [0, 0], sizes = [16, 32], strides = [1, 1]} : vector<16x112xf32> to vector<16x32xf32>
      %c0_29 = arith.constant 0 : index
      %c0_30 = arith.constant 0 : index
      %47 = vector.load %arg12[%c0_29, %c0_30] : memref<16x32xf32, #tpu.memory_space<vmem>>, vector<16x32xf32>
      tpu.vector_store %arg12[%c0_29, %c0_30], %46 {strides = array<i32>} : memref<16x32xf32, #tpu.memory_space<vmem>>, vector<16x32xf32>,
      %48 = vector.extract_strided_slice %45 {offsets = [0, 32], sizes = [16, 80], strides = [1, 1]} : vector<16x112xf32> to vector<16x80xf32>
      %c0_31 = arith.constant 0 : index
      %c0_32 = arith.constant 0 : index
      %49 = vector.load %arg13[%c0_31, %c0_32] : memref<16x80xf32, #tpu.memory_space<vmem>>, vector<16x80xf32>
      tpu.vector_store %arg13[%c0_31, %c0_32], %48 {strides = array<i32>} : memref<16x80xf32, #tpu.memory_space<vmem>>, vector<16x80xf32>,
      %cst_33 = arith.constant 0.000000e+00 : f32
      %50 = vector.broadcast %cst_33 : f32 to vector<16x80xf32>
      %c0_34 = arith.constant 0 : index
      %c0_35 = arith.constant 0 : index
      %51 = vector.load %arg14[%c0_34, %c0_35] : memref<16x80xf32, #tpu.memory_space<vmem>>, vector<16x80xf32>
      tpu.vector_store %arg14[%c0_34, %c0_35], %50 {strides = array<i32>} : memref<16x80xf32, #tpu.memory_space<vmem>>, vector<16x80xf32>,
    } else {
    }
    %c0 = arith.constant 0 : index
    %c0_1 = arith.constant 0 : index
    %3 = vector.load %arg9[%c0, %c0_1] : memref<1024x24xf32, #tpu.memory_space<vmem>>, vector<1024x24xf32>
    %c0_2 = arith.constant 0 : index
    %c0_3 = arith.constant 0 : index
    %4 = vector.load %arg4[%c0_2, %c0_3] : memref<24x32xf32, #tpu.memory_space<vmem>>, vector<24x32xf32>
    %cst = arith.constant dense<0.000000e+00> : vector<1024x32xf32>
    %5 = tpu.matmul %3, %4, %cst {dimension_numbers = #tpu.dot_dimension_numbers<[1], [0], [0], [1], [0, 0, 1, 1], [], []>} : vector<1024x24xf32>, vector<24x32xf32>, vector<1024x32xf32> -> vector<1024x32xf32>
    %6 = arith.negf %5 : vector<1024x32xf32>
    %7 = math.exp %6 : vector<1024x32xf32>
    %cst_4 = arith.constant 1.000000e+00 : f32
    %8 = vector.broadcast %cst_4 : f32 to vector<1024x32xf32>
    %9 = arith.addf %8, %7 : vector<1024x32xf32>
    %10 = arith.divf %8, %9 : vector<1024x32xf32>
    %11 = arith.mulf %5, %10 : vector<1024x32xf32>
    %c0_5 = arith.constant 0 : index
    %c0_6 = arith.constant 0 : index
    %12 = vector.load %arg5[%c0_5, %c0_6] : memref<32x80xf32, #tpu.memory_space<vmem>>, vector<32x80xf32>
    %cst_7 = arith.constant dense<0.000000e+00> : vector<1024x80xf32>
    %13 = tpu.matmul %11, %12, %cst_7 {dimension_numbers = #tpu.dot_dimension_numbers<[1], [0], [0], [1], [0, 0, 1, 1], [], []>} : vector<1024x32xf32>, vector<32x80xf32>, vector<1024x80xf32> -> vector<1024x80xf32>
    %14 = vector.extract_strided_slice %3 {offsets = [0, 20], sizes = [1024, 1], strides = [1, 1]} : vector<1024x24xf32> to vector<1024x1xf32>
    %15 = arith.fptosi %14 : vector<1024x1xf32> to vector<1024x1xi32>
    %16 = tpu.iota {dimensions = array<i32: 1>} : vector<1024x16xi32>
    %17 = vector.broadcast %15 : vector<1024x1xi32> to vector<1024x16xi32>
    %18 = arith.cmpi eq, %16, %17 : vector<1024x16xi32>
    %19 = arith.extui %18 : vector<1024x16xi1> to vector<1024x16xi32>
    %20 = arith.sitofp %19 : vector<1024x16xi32> to vector<1024x16xf32>
    %c0_8 = arith.constant 0 : index
    %c0_9 = arith.constant 0 : index
    %21 = vector.load %arg13[%c0_8, %c0_9] : memref<16x80xf32, #tpu.memory_space<vmem>>, vector<16x80xf32>
    %cst_10 = arith.constant dense<0.000000e+00> : vector<1024x80xf32>
    %22 = tpu.matmul %20, %21, %cst_10 {dimension_numbers = #tpu.dot_dimension_numbers<[1], [0], [0], [1], [0, 0, 1, 1], [], []>} : vector<1024x16xf32>, vector<16x80xf32>, vector<1024x80xf32> -> vector<1024x80xf32>
    %c0_11 = arith.constant 0 : index
    %c0_12 = arith.constant 0 : index
    %23 = vector.load %arg6[%c0_11, %c0_12] : memref<24x80xf32, #tpu.memory_space<vmem>>, vector<24x80xf32>
    %cst_13 = arith.constant dense<0.000000e+00> : vector<1024x80xf32>
    %24 = tpu.matmul %3, %23, %cst_13 {dimension_numbers = #tpu.dot_dimension_numbers<[1], [0], [0], [1], [0, 0, 1, 1], [], []>} : vector<1024x24xf32>, vector<24x80xf32>, vector<1024x80xf32> -> vector<1024x80xf32>
    %25 = arith.mulf %13, %22 : vector<1024x80xf32>
    %26 = arith.mulf %25, %24 : vector<1024x80xf32>
    %27 = tpu.iota {dimensions = array<i32: 0>} : vector<16x1024xi32>
    %c0_14 = arith.constant 0 : index
    %c0_15 = arith.constant 0 : index
    %28 = vector.load %arg10[%c0_14, %c0_15] : memref<1x1024xi32, #tpu.memory_space<vmem>>, vector<1x1024xi32>
    %29 = vector.broadcast %28 : vector<1x1024xi32> to vector<16x1024xi32>
    %30 = arith.cmpi eq, %27, %29 : vector<16x1024xi32>
    %31 = arith.extui %30 : vector<16x1024xi1> to vector<16x1024xi32>
    %32 = arith.sitofp %31 : vector<16x1024xi32> to vector<16x1024xf32>
    %c0_16 = arith.constant 0 : index
    %c0_17 = arith.constant 0 : index
    %33 = vector.load %arg14[%c0_16, %c0_17] : memref<16x80xf32, #tpu.memory_space<vmem>>, vector<16x80xf32>
    %cst_18 = arith.constant dense<0.000000e+00> : vector<16x80xf32>
    %34 = tpu.matmul %32, %26, %cst_18 {dimension_numbers = #tpu.dot_dimension_numbers<[1], [0], [0], [1], [0, 0, 1, 1], [], []>} : vector<16x1024xf32>, vector<1024x80xf32>, vector<16x80xf32> -> vector<16x80xf32>
    %35 = arith.addf %33, %34 : vector<16x80xf32>
    %c0_19 = arith.constant 0 : index
    %c0_20 = arith.constant 0 : index
    %36 = vector.load %arg14[%c0_19, %c0_20] : memref<16x80xf32, #tpu.memory_space<vmem>>, vector<16x80xf32>
    tpu.vector_store %arg14[%c0_19, %c0_20], %35 {strides = array<i32>} : memref<16x80xf32, #tpu.memory_space<vmem>>, vector<16x80xf32>,
    %c2_i32 = arith.constant 2 : i32
    %37 = arith.cmpi eq, %arg0, %c2_i32 : i32
    %38 = arith.extui %37 : i1 to i32
    %c0_i32_21 = arith.constant 0 : i32
    %39 = arith.cmpi ne, %38, %c0_i32_21 : i32
    scf.if %39 {
      %c0_22 = arith.constant 0 : index
      %c0_23 = arith.constant 0 : index
      %40 = vector.load %arg2[%c0_22, %c0_23] : memref<16x1xf32, #tpu.memory_space<vmem>>, vector<16x1xf32>
      %c0_24 = arith.constant 0 : index
      %c0_25 = arith.constant 0 : index
      %41 = vector.load %arg14[%c0_24, %c0_25] : memref<16x80xf32, #tpu.memory_space<vmem>>, vector<16x80xf32>
      %c0_26 = arith.constant 0 : index
      %c0_27 = arith.constant 0 : index
      %42 = vector.load %arg7[%c0_26, %c0_27] : memref<80x32xf32, #tpu.memory_space<vmem>>, vector<80x32xf32>
      %cst_28 = arith.constant dense<0.000000e+00> : vector<16x32xf32>
      %43 = tpu.matmul %41, %42, %cst_28 {dimension_numbers = #tpu.dot_dimension_numbers<[1], [0], [0], [1], [0, 0, 1, 1], [], []>} : vector<16x80xf32>, vector<80x32xf32>, vector<16x32xf32> -> vector<16x32xf32>
      %44 = vector.broadcast %40 : vector<16x1xf32> to vector<16x32xf32>
      %45 = arith.mulf %43, %44 : vector<16x32xf32>
      %c0_29 = arith.constant 0 : index
      %c0_30 = arith.constant 0 : index
      %46 = vector.load %arg8[%c0_29, %c0_30] : memref<80x1xf32, #tpu.memory_space<vmem>>, vector<80x1xf32>
      %cst_31 = arith.constant dense<0.000000e+00> : vector<16x1xf32>
      %47 = tpu.matmul %41, %46, %cst_31 {dimension_numbers = #tpu.dot_dimension_numbers<[1], [0], [0], [1], [0, 0, 1, 1], [], []>} : vector<16x80xf32>, vector<80x1xf32>, vector<16x1xf32> -> vector<16x1xf32>
      %48 = arith.mulf %47, %40 : vector<16x1xf32>
      %c0_32 = arith.constant 0 : index
      %c0_33 = arith.constant 0 : index
      %49 = vector.load %arg12[%c0_32, %c0_33] : memref<16x32xf32, #tpu.memory_space<vmem>>, vector<16x32xf32>
      %50 = vector.broadcast %48 : vector<16x1xf32> to vector<16x32xf32>
      %51 = arith.mulf %50, %45 : vector<16x32xf32>
      %52 = arith.addf %49, %51 : vector<16x32xf32>
      %c0_34 = arith.constant 0 : index
      %c0_35 = arith.constant 0 : index
      %53 = vector.load %arg11[%c0_34, %c0_35] : memref<16x32xf32, #tpu.memory_space<vmem>>, vector<16x32xf32>
      tpu.vector_store %arg11[%c0_34, %c0_35], %52 {strides = array<i32>} : memref<16x32xf32, #tpu.memory_space<vmem>>, vector<16x32xf32>,
    } else {
    }
    return
  }
  func.func @transform_0(%arg0: i32) -> (i32, i32) {
    %c0_i32 = arith.constant 0 : i32
    %c0_i32_0 = arith.constant 0 : i32
    %c0_i32_1 = arith.constant 0 : i32
    return %c0_i32, %c0_i32_0 : i32, i32
  }
  func.func @transform_1(%arg0: i32) -> (i32, i32) {
    %c0_i32 = arith.constant 0 : i32
    %c0_i32_0 = arith.constant 0 : i32
    %c0_i32_1 = arith.constant 0 : i32
    return %c0_i32, %c0_i32_0 : i32, i32
  }
  func.func @transform_2(%arg0: i32) -> (i32, i32) {
    %c0_i32 = arith.constant 0 : i32
    %c0_i32_0 = arith.constant 0 : i32
    %c0_i32_1 = arith.constant 0 : i32
    return %c0_i32, %c0_i32_0 : i32, i32
  }
  func.func @transform_3(%arg0: i32) -> (i32, i32) {
    %c0_i32 = arith.constant 0 : i32
    %c0_i32_0 = arith.constant 0 : i32
    %c0_i32_1 = arith.constant 0 : i32
    return %c0_i32, %c0_i32_0 : i32, i32
  }
  func.func @transform_4(%arg0: i32) -> (i32, i32) {
    %c0_i32 = arith.constant 0 : i32
    %c0_i32_0 = arith.constant 0 : i32
    %c0_i32_1 = arith.constant 0 : i32
    return %c0_i32, %c0_i32_0 : i32, i32
  }
  func.func @transform_5(%arg0: i32) -> (i32, i32) {
    %c0_i32 = arith.constant 0 : i32
    %c0_i32_0 = arith.constant 0 : i32
    %c0_i32_1 = arith.constant 0 : i32
    return %c0_i32, %c0_i32_0 : i32, i32
  }
  func.func @transform_6(%arg0: i32) -> (i32, i32) {
    %c0_i32 = arith.constant 0 : i32
    %c0_i32_0 = arith.constant 0 : i32
    %c0_i32_1 = arith.constant 0 : i32
    return %c0_i32, %c0_i32_0 : i32, i32
  }
  func.func @transform_7(%arg0: i32) -> (i32, i32) {
    %c0_i32 = arith.constant 0 : i32
    %c0_i32_0 = arith.constant 0 : i32
    %c0_i32_1 = arith.constant 0 : i32
    return %c0_i32, %c0_i32_0 : i32, i32
  }
  func.func @transform_8(%arg0: i32) -> (i32, i32) {
    %c0_i32 = arith.constant 0 : i32
    %c0_i32_0 = arith.constant 0 : i32
    return %arg0, %c0_i32 : i32, i32
  }
  func.func @transform_9(%arg0: i32) -> (i32, i32) {
    %c0_i32 = arith.constant 0 : i32
    %c0_i32_0 = arith.constant 0 : i32
    return %c0_i32, %arg0 : i32, i32
  }
  func.func @transform_10(%arg0: i32) -> (i32, i32) {
    %c0_i32 = arith.constant 0 : i32
    %c0_i32_0 = arith.constant 0 : i32
    %c0_i32_1 = arith.constant 0 : i32
    return %c0_i32, %c0_i32_0 : i32, i32
  }
}

</mosaic_0001>

<bundles_post_ra>
// kernel: tpu_custom_call.1
= control target key start
LH: loop header
LB: loop body
LE: loop exit
PB: predicated region body
PF: predicated region fallthrough
CT: control target
= control target key end

     0   :  { %15 = vsyncpa [#allocation6], 0  ;;  %s10915_s13 = smov 0   ;;  %s14018_s0 = inlined_call_operand.vmem [shape: f32[16,32], index: 0, kind: input, shape index: {}]   ;;  %s14019_s1 = inlined_call_operand.vmem [shape: f32[16,1], index: 1, kind: input, shape index: {}]   ;;  %s14020_s2 = inlined_call_operand.vmem [shape: f32[32,112], index: 2, kind: input, shape index: {}]   ;;  %s14021_s3 = inlined_call_operand.vmem [shape: f32[24,32], index: 3, kind: input, shape index: {}]   ;;  %s14022_s4 = inlined_call_operand.vmem [shape: f32[32,80], index: 4, kind: input, shape index: {}]   ;;  %s14023_s5 = inlined_call_operand.vmem [shape: f32[24,80], index: 5, kind: input, shape index: {}]   ;;  %s14024_s6 = inlined_call_operand.vmem [shape: f32[80,32], index: 6, kind: input, shape index: {}]   ;;  %s14025_s7 = inlined_call_operand.vmem [shape: f32[80,1], index: 7, kind: input, shape index: {}]   ;;  %s14026_s8 = inlined_call_operand.vmem [shape: f32[3072,24], index: 8, kind: input, shape index: {}]   ;;  %s14027_s9 = inlined_call_operand.vmem [shape: s32[1,3072], index: 9, kind: input, shape index: {}]   ;;  %s14028_s10 = inlined_call_operand.hbm [shape: f32[16,32], index: 10, kind: output, shape index: {}]  }
   0x1 LB: > { %s10921_s14 = sadd.s32 4294967295, %s10848_s13   ;;  %p7320_p0 = scmp.ge.s32.totalorder %s10848_s13, 1  ;;  %s10848_s13 = sphi %s10915_s13, %s21_s13  }
   0x2   : > { %p319_p1 = scmp.lt.s32.totalorder %s10848_s13, 4 }
   0x4   : > { %p320_p2 = pnand %p7320_p0, %p319_p1 }
   0x6   : > { %323 = sbr.rel (%p320_p2) target bundleno = 1957 (0x7a5), region = 60 }
   0xd   : > { %s7321_s15 = sshll.u32 %s10921_s14, 7  ;;  %s7323_s16 = sshll.u32 %s10921_s14, 3 }
   0xe   : > { %p357_p3 = scmp.lt.s32.totalorder %s7321_s15, 383  ;;  %p363_p4 = scmp.lt.s32.totalorder %s7323_s16, 23 }
   0xf   : > { %p7324_p5 = scmp.ne.s32.totalorder %s10921_s14, 0 }
  0x10   : > { %s14250_s15 = smov (!%p357_p3, %s7321_s15), 383  ;;  %s14252_s16 = smov (!%p363_p4, %s7323_s16), 23 }
  0x11   : > { %s7322_s17 = sshll.u32 %s14250_s15, 3  ;;  %s365_s23 = scalar_lea.vmem %s14027_s9, %s14252_s16  ;;  %v373_v0 = vld [vmem:[%s14020_s2] sm:$0xff] (!%p7324_p5)  ;;  %v374_v1 = vld [vmem:[%s14020_s2 + $0x8] sm:$0xff] (!%p7324_p5)  ;;  %v375_v2 = vld [vmem:[%s14020_s2 + $0x10] sm:$0xff] (!%p7324_p5)  ;;  %vm377_vm0 = vcmask (!%p7324_p5), 261120   ;;  %v10850_v6 = vmov (!%p7324_p5), 0  }
  0x12   : > { %s10932_s20 = scalar_lea.vmem %s14026_s8, %s7322_s17  ;;  %370 = sbr.rel (%p7324_p5) target bundleno = 363 (0x16b), region = 64  ;;  %v9691_v3 = vpack.c.bf16 (!%p7324_p5), %v374_v1, %v373_v0  ;;  %v376_v4 = vld [vmem:[%s14020_s2 + $0x18] sm:$0xff] (!%p7324_p5)  ;;  %v371_v5 = vld [vmem:[%s14018_s0] sm:$0xff] (!%p7324_p5)  ;;  %10167 = vset.pattern.permute.xlu0 (!%p7324_p5), %v10850_v6  ;;  %v460_v9 = vld [vmem:[%s14019_s1 + $0x8] sm:$0xff] (!%p7324_p5)  ;;  %vm483_vm1 = vcmask (!%p7324_p5), 654336   ;;  %v10851_v11 = vmov (!%p7324_p5), 0.0  }
  0x13   : > { %v9695_v7 = vpack.c.bf16 (!%p7324_p5), %v376_v4, %v375_v2  ;;  %8850 = vmatprep.mubr.msk.f32.mxu0 (!%p7324_p5), %vm377_vm0, %v371_v5  ;;  %v459_v8 = vld [vmem:[%s14019_s1] sm:$0xff] (!%p7324_p5)  ;;  %v372_v10 = vld [vmem:[%s14018_s0 + $0x8] sm:$0xff] (!%p7324_p5)  ;;  %486 = vst.msk [vmem:[#allocation4] sm:$0xff] (!%p7324_p5), %vm483_vm1, %v10851_v11  ;;  %487 = vst.msk [vmem:[#allocation4 + $0x8] sm:$0xff] (!%p7324_p5), %vm483_vm1, %v10851_v11  ;;  %s10852_s25 = smov (!%p7324_p5), 96  }
  0x14   : > { %9692 = vmatprep.subr.bf16.mxu0 (!%p7324_p5), %v9691_v3  ;;  %463 = vperm.xlu0 (!%p7324_p5), %10167, %v459_v8  }
  0x15   : > { %9694 = vmatpush3.bf16.msra.mxu0 (!%p7324_p5), %v9691_v3 }
  0x16   : > { %9696 = vmatprep.subr.bf16.mxu0 (!%p7324_p5), %v9695_v7 }
  0x18   : > { %468 = vperm.xlu0 (!%p7324_p5), %10167, %v460_v9  }
  0x19   : > { %9698 = vmatpush3.bf16.msra.mxu0 %v9695_v7 }
  0x1c   : > { %8851 = vmatmul.mubr.msk.f32.vlgmr.msra.gmra.mrb[0].mxu0 %vm377_vm0, %v372_v10 }
  0x93   : > { %v464_v12 = vpop.permute.xlu0 %463 }
  0x97   : > { %v469_v13 = vpop.permute.xlu0 %468 }
  0xef   : > { %v8852_v14 = vpop.f32.mrb[0].mxu0 }
  0xf0   : > { %v472_v15 = vmul.f32 %v8852_v14, %v469_v13  ;;  %v450_v16 = vpop.f32.mrb[1].mxu0 }
  0xf1   : > { %v471_v17 = vmul.f32 %v464_v12, %v450_v16 }
  0xf2   : > { %474 = vst.msk [vmem:[#allocation2 + $0x8] sm:$0xff] %vm377_vm0, %v472_v15 }
  0xf3   : > { %473 = vst.msk [vmem:[#allocation2] sm:$0xff] %vm377_vm0, %v471_v17  ;;  %477 = vrot.lane.b32.xlu1 %v471_v17, %s10852_s25 }
  0xf7   : > { %479 = vrot.lane.b32.xlu1 %v472_v15, %s10852_s25 }
 0x165   : > { %v478_v18 = vpop.permute.xlu1 %477 }
 0x166   : > { %484 = vst.msk [vmem:[#allocation3] sm:$0xff] %vm483_vm1, %v478_v18 }
 0x169   : > { %v480_v19 = vpop.permute.xlu1 %479 }
 0x16a   : > { %485 = vst.msk [vmem:[#allocation3 + $0x8] sm:$0xff] %vm483_vm1, %v480_v19 }
 0x16b PF: > { %v616_v20 = vld [vmem:[%s14021_s3] sm:$0xff]  ;;  %v617_v21 = vld [vmem:[%s14021_s3 + $0x8] sm:$0xff]  ;;  %vm619_vm2 = vcmask 195584   ;;  %v490_v25 = vld [vmem:[%s10932_s20 + $0x10] sm:$0xff]  ;;  %v10853_v26 = vmov 20   ;;  %vm2609_vm3 = vcmask 261120  }
 0x16c   : > { %v9699_v22 = vpack.c.bf16 %v617_v21, %v616_v20  ;;  %v488_v23 = vld [vmem:[%s10932_s20] sm:$0xff]  ;;  %v489_v24 = vld [vmem:[%s10932_s20 + $0x8] sm:$0xff]  ;;  %10168 = vset.pattern.permute.xlu0 %v10853_v26  ;;  %10169 = vset.pattern.permute.xlu1 %v10853_v26  ;;  %v618_v27 = vld [vmem:[%s14021_s3 + $0x10] sm:$0xff]  ;;  %v9891_v30 = vtrunc.f32 %v490_v25  ;;  %vm4599_vm6 = vcmask 130048   ;;  %p8127_p6 = scmp.ne.s32.totalorder %s10921_s14, 2 }
 0x16d   : > { %8859 = vmatprep.mubr.msk.f32.mxu0 %vm619_vm2, %v488_v23  ;;  %v491_v28 = vld [vmem:[%s10932_s20 + $0x18] sm:$0xff]  ;;  %v9887_v29 = vtrunc.f32 %v488_v23  ;;  %v9889_v31 = vtrunc.f32 %v489_v24  ;;  %v492_v35 = vld [vmem:[%s10932_s20 + $0x20] sm:$0xff]  ;;  %v493_v36 = vld [vmem:[%s10932_s20 + $0x28] sm:$0xff] }
 0x16e   : > { %9700 = vmatprep.subr.bf16.mxu0 %v9699_v22  ;;  %v9893_v32 = vtrunc.f32 %v491_v28  ;;  %v9892_v34 = vcvt.f32.s32 %v9891_v30  ;;  %v9895_v38 = vtrunc.f32 %v492_v35  ;;  %v9897_v40 = vtrunc.f32 %v493_v36  ;;  %v494_v41 = vld [vmem:[%s10932_s20 + $0x30] sm:$0xff]  ;;  %v495_v42 = vld [vmem:[%s10932_s20 + $0x38] sm:$0xff]  ;;  %v496_v47 = vld [vmem:[%s10932_s20 + $0x40] sm:$0xff] }
 0x16f   : > { %9702 = vmatpush3.bf16.msra.mxu0 %v9699_v22  ;;  %v9888_v33 = vcvt.f32.s32 %v9887_v29  ;;  %v9890_v37 = vcvt.f32.s32 %v9889_v31  ;;  %v9899_v44 = vtrunc.f32 %v494_v41  ;;  %v9901_v46 = vtrunc.f32 %v495_v42  ;;  %v497_v48 = vld [vmem:[%s10932_s20 + $0x48] sm:$0xff]  ;;  %v498_v53 = vld [vmem:[%s10932_s20 + $0x50] sm:$0xff]  ;;  %v499_v54 = vld [vmem:[%s10932_s20 + $0x58] sm:$0xff] }
 0x170   : > { %8857 = vmatprep.subr.mxu0 %v618_v27  ;;  %3836 = vperm.xlu1 %10169, %v9892_v34   ;;  %v9894_v39 = vcvt.f32.s32 %v9893_v32  ;;  %v9896_v43 = vcvt.f32.s32 %v9895_v38  ;;  %v9898_v45 = vcvt.f32.s32 %v9897_v40  ;;  %v9903_v50 = vtrunc.f32 %v496_v47  ;;  %v500_v59 = vld [vmem:[%s10932_s20 + $0x60] sm:$0xff]  ;;  %v501_v60 = vld [vmem:[%s10932_s20 + $0x68] sm:$0xff]  ;;  %v502_v1 = vld [vmem:[%s10932_s20 + $0x70] sm:$0xff] }
 0x171   : > { %3830 = vperm.xlu0 %10168, %v9888_v33   ;;  %v9900_v49 = vcvt.f32.s32 %v9899_v44  ;;  %v9902_v51 = vcvt.f32.s32 %v9901_v46  ;;  %v9905_v52 = vtrunc.f32 %v497_v48  ;;  %v9907_v56 = vtrunc.f32 %v498_v53  ;;  %v503_v2 = vld [vmem:[%s10932_s20 + $0x78] sm:$0xff]  ;;  %v504_v7 = vld [vmem:[%s10932_s20 + $0x80] sm:$0xff]  ;;  %v505_v8 = vld [vmem:[%s10932_s20 + $0x88] sm:$0xff] }
 0x172   : > { %v9904_v55 = vcvt.f32.s32 %v9903_v50  ;;  %v9909_v58 = vtrunc.f32 %v499_v54  ;;  %v9911_v62 = vtrunc.f32 %v500_v59  ;;  %v9913_v0 = vtrunc.f32 %v501_v60  ;;  %v506_v13 = vld [vmem:[%s10932_s20 + $0x90] sm:$0xff]  ;;  %v507_v14 = vld [vmem:[%s10932_s20 + $0x98] sm:$0xff]  ;;  %v508_v19 = vld [vmem:[%s10932_s20 + $0xa0] sm:$0xff] }
 0x173   : > { %8858 = vmatpush3.msra.mxu0 %v618_v27  ;;  %v9906_v57 = vcvt.f32.s32 %v9905_v52  ;;  %v9908_v61 = vcvt.f32.s32 %v9907_v56  ;;  %v9915_v4 = vtrunc.f32 %v502_v1  ;;  %v9917_v6 = vtrunc.f32 %v503_v2  ;;  %v509_v20 = vld [vmem:[%s10932_s20 + $0xa8] sm:$0xff]  ;;  %v511_v26 = vld [vmem:[%s10932_s20 + $0xb8] sm:$0xff]  ;;  %v512_v31 = vld [vmem:[%s10932_s20 + $0xc0] sm:$0xff] }
 0x174   : > { %8860 = vmatmul.mubr.msk.f32.vlgmr.msra.gmra.mrb[0].mxu0 %vm619_vm2, %v489_v24  ;;  %3839 = vperm.xlu1 %10169, %v9894_v39   ;;  %v9910_v63 = vcvt.f32.s32 %v9909_v58  ;;  %v9912_v3 = vcvt.f32.s32 %v9911_v62  ;;  %v9914_v5 = vcvt.f32.s32 %v9913_v0  ;;  %v9919_v10 = vtrunc.f32 %v504_v7  ;;  %v513_v32 = vld [vmem:[%s10932_s20 + $0xc8] sm:$0xff]  ;;  %v515_v38 = vld [vmem:[%s10932_s20 + $0xd8] sm:$0xff] }
 0x175   : > { %8862 = vmatprep.mubr.msk.f32.mxu0 %vm619_vm2, %v490_v25  ;;  %3833 = vperm.xlu0 %10168, %v9890_v37   ;;  %v9916_v9 = vcvt.f32.s32 %v9915_v4  ;;  %v9918_v11 = vcvt.f32.s32 %v9917_v6  ;;  %v9921_v12 = vtrunc.f32 %v505_v8  ;;  %v9923_v16 = vtrunc.f32 %v506_v13  ;;  %v510_v25 = vld [vmem:[%s10932_s20 + $0xb0] sm:$0xff]  ;;  %v517_v44 = vld [vmem:[%s10932_s20 + $0xe8] sm:$0xff]  ;;  %v519_v50 = vld [vmem:[%s10932_s20 + $0xf8] sm:$0xff] }
 0x176   : > { %v9920_v15 = vcvt.f32.s32 %v9919_v10  ;;  %v9925_v18 = vtrunc.f32 %v507_v14  ;;  %v9927_v22 = vtrunc.f32 %v508_v19  ;;  %v9929_v24 = vtrunc.f32 %v509_v20  ;;  %v514_v37 = vld [vmem:[%s10932_s20 + $0xd0] sm:$0xff]  ;;  %v521_v56 = vld [vmem:[%s10932_s20 + $0x108] sm:$0xff]  ;;  %v523_v62 = vld [vmem:[%s10932_s20 + $0x118] sm:$0xff] }
 0x177   : > { %v9922_v17 = vcvt.f32.s32 %v9921_v12  ;;  %v9924_v21 = vcvt.f32.s32 %v9923_v16  ;;  %v9933_v30 = vtrunc.f32 %v511_v26  ;;  %v9935_v34 = vtrunc.f32 %v512_v31  ;;  %v525_v4 = vld [vmem:[%s10932_s20 + $0x128] sm:$0xff]  ;;  %v527_v10 = vld [vmem:[%s10932_s20 + $0x138] sm:$0xff] }
 0x178   : > { %8863 = vmatmul.mubr.msk.f32.gmra.mrb[2].mxu0 %vm619_vm2, %v491_v28  ;;  %3845 = vperm.xlu1 %10169, %v9898_v45   ;;  %v9926_v23 = vcvt.f32.s32 %v9925_v18  ;;  %v9928_v27 = vcvt.f32.s32 %v9927_v22  ;;  %v9931_v28 = vtrunc.f32 %v510_v25  ;;  %v9930_v29 = vcvt.f32.s32 %v9929_v24  ;;  %v529_v16 = vld [vmem:[%s10932_s20 + $0x148] sm:$0xff]  ;;  %v531_v22 = vld [vmem:[%s10932_s20 + $0x158] sm:$0xff] }
 0x179   : > { %8865 = vmatprep.mubr.msk.f32.mxu0 %vm619_vm2, %v492_v35  ;;  %3842 = vperm.xlu0 %10168, %v9896_v43   ;;  %v9934_v35 = vcvt.f32.s32 %v9933_v30  ;;  %v9936_v39 = vcvt.f32.s32 %v9935_v34  ;;  %v9939_v40 = vtrunc.f32 %v514_v37  ;;  %v516_v43 = vld [vmem:[%s10932_s20 + $0xe0] sm:$0xff]  ;;  %v535_v34 = vld [vmem:[%s10932_s20 + $0x178] sm:$0xff] }
 0x17a   : > { %v9932_v33 = vcvt.f32.s32 %v9931_v28  ;;  %v9943_v46 = vtrunc.f32 %v516_v43  ;;  %v533_v28 = vld [vmem:[%s10932_s20 + $0x168] sm:$0xff] }
 0x17b   : > { %v9940_v45 = vcvt.f32.s32 %v9939_v40  ;;  %v537_v40 = vld [vmem:[%s10932_s20 + $0x188] sm:$0xff] }
 0x17c   : > { %8866 = vmatmul.mubr.msk.f32.gmra.mrb[4].mxu0 %vm619_vm2, %v493_v36  ;;  %3851 = vperm.xlu1 %10169, %v9902_v51   ;;  %v9937_v36 = vtrunc.f32 %v513_v32  ;;  %v9944_v51 = vcvt.f32.s32 %v9943_v46  ;;  %v539_v46 = vld [vmem:[%s10932_s20 + $0x198] sm:$0xff] }
 0x17d   : > { %8868 = vmatprep.mubr.msk.f32.mxu0 %vm619_vm2, %v494_v41  ;;  %3848 = vperm.xlu0 %10168, %v9900_v49   ;;  %v518_v49 = vld [vmem:[%s10932_s20 + $0xf0] sm:$0xff] }
 0x17e   : > { %v9938_v41 = vcvt.f32.s32 %v9937_v36  ;;  %v9947_v52 = vtrunc.f32 %v518_v49 }
 0x180   : > { %8869 = vmatmul.mubr.msk.f32.gmra.mrb[6].mxu0 %vm619_vm2, %v495_v42  ;;  %3857 = vperm.xlu1 %10169, %v9906_v57   ;;  %v9941_v42 = vtrunc.f32 %v515_v38  ;;  %v9948_v57 = vcvt.f32.s32 %v9947_v52  ;;  %v541_v52 = vld [vmem:[%s10932_s20 + $0x1a8] sm:$0xff] }
 0x181   : > { %8871 = vmatprep.mubr.msk.f32.mxu0 %vm619_vm2, %v496_v47  ;;  %3854 = vperm.xlu0 %10168, %v9904_v55   ;;  %v520_v55 = vld [vmem:[%s10932_s20 + $0x100] sm:$0xff] }
 0x182   : > { %v9942_v47 = vcvt.f32.s32 %v9941_v42  ;;  %v9951_v58 = vtrunc.f32 %v520_v55 }
 0x184   : > { %8872 = vmatmul.mubr.msk.f32.gmra.mrb[8].mxu0 %vm619_vm2, %v497_v48  ;;  %3863 = vperm.xlu1 %10169, %v9910_v63   ;;  %v9945_v48 = vtrunc.f32 %v517_v44  ;;  %v9952_v63 = vcvt.f32.s32 %v9951_v58  ;;  %v543_v58 = vld [vmem:[%s10932_s20 + $0x1b8] sm:$0xff] }
 0x185   : > { %8874 = vmatprep.mubr.msk.f32.mxu0 %vm619_vm2, %v498_v53  ;;  %3860 = vperm.xlu0 %10168, %v9908_v61   ;;  %v522_v61 = vld [vmem:[%s10932_s20 + $0x110] sm:$0xff] }
 0x186   : > { %v9946_v53 = vcvt.f32.s32 %v9945_v48  ;;  %v9955_v0 = vtrunc.f32 %v522_v61 }
 0x188   : > { %8875 = vmatmul.mubr.msk.f32.gmra.mrb[10].mxu0 %vm619_vm2, %v499_v54  ;;  %3869 = vperm.xlu1 %10169, %v9914_v5   ;;  %v9949_v54 = vtrunc.f32 %v519_v50  ;;  %v9956_v5 = vcvt.f32.s32 %v9955_v0  ;;  %v545_v0 = vld [vmem:[%s10932_s20 + $0x1c8] sm:$0xff] }
 0x189   : > { %8877 = vmatprep.mubr.msk.f32.mxu0 %vm619_vm2, %v500_v59  ;;  %3866 = vperm.xlu0 %10168, %v9912_v3   ;;  %v524_v3 = vld [vmem:[%s10932_s20 + $0x120] sm:$0xff] }
 0x18a   : > { %v9950_v59 = vcvt.f32.s32 %v9949_v54  ;;  %v9959_v6 = vtrunc.f32 %v524_v3 }
 0x18c   : > { %8878 = vmatmul.mubr.msk.f32.gmra.mrb[12].mxu0 %vm619_vm2, %v501_v60  ;;  %3875 = vperm.xlu1 %10169, %v9918_v11   ;;  %v9953_v60 = vtrunc.f32 %v521_v56  ;;  %v9960_v11 = vcvt.f32.s32 %v9959_v6  ;;  %v547_v6 = vld [vmem:[%s10932_s20 + $0x1d8] sm:$0xff] }
 0x18d   : > { %8880 = vmatprep.mubr.msk.f32.mxu0 %vm619_vm2, %v502_v1  ;;  %3872 = vperm.xlu0 %10168, %v9916_v9   ;;  %v526_v9 = vld [vmem:[%s10932_s20 + $0x130] sm:$0xff] }
 0x18e   : > { %v9954_v1 = vcvt.f32.s32 %v9953_v60  ;;  %v9963_v12 = vtrunc.f32 %v526_v9 }
 0x190   : > { %8881 = vmatmul.mubr.msk.f32.gmra.mrb[14].mxu0 %vm619_vm2, %v503_v2  ;;  %3881 = vperm.xlu1 %10169, %v9922_v17   ;;  %v9957_v2 = vtrunc.f32 %v523_v62  ;;  %v9964_v17 = vcvt.f32.s32 %v9963_v12  ;;  %v10005_v12 = vtrunc.f32 %v547_v6 }
 0x191   : > { %8883 = vmatprep.mubr.msk.f32.mxu0 %vm619_vm2, %v504_v7  ;;  %3878 = vperm.xlu0 %10168, %v9920_v15   ;;  %v528_v15 = vld [vmem:[%s10932_s20 + $0x140] sm:$0xff] }
 0x192   : > { %v9958_v7 = vcvt.f32.s32 %v9957_v2  ;;  %v9967_v18 = vtrunc.f32 %v528_v15 }
 0x194   : > { %8884 = vmatmul.mubr.msk.f32.gmra.mrb[16].mxu0 %vm619_vm2, %v505_v8  ;;  %3887 = vperm.xlu1 %10169, %v9926_v23   ;;  %v9961_v8 = vtrunc.f32 %v525_v4  ;;  %v9968_v23 = vcvt.f32.s32 %v9967_v18  ;;  %v2607_v18 = vld [vmem:[%s14022_s4 + $0x10] sm:$0xff] }
 0x195   : > { %8886 = vmatprep.mubr.msk.f32.mxu0 %vm619_vm2, %v506_v13  ;;  %3884 = vperm.xlu0 %10168, %v9924_v21   ;;  %v530_v21 = vld [vmem:[%s10932_s20 + $0x150] sm:$0xff] }
 0x196   : > { %v9962_v13 = vcvt.f32.s32 %v9961_v8  ;;  %v9971_v24 = vtrunc.f32 %v530_v21 }
 0x198   : > { %8887 = vmatmul.mubr.msk.f32.gmra.mrb[18].mxu0 %vm619_vm2, %v507_v14  ;;  %3893 = vperm.xlu1 %10169, %v9930_v29   ;;  %v9965_v14 = vtrunc.f32 %v527_v10  ;;  %v9972_v29 = vcvt.f32.s32 %v9971_v24  ;;  %v551_v24 = vld [vmem:[%s10932_s20 + $0x1f8] sm:$0xff] }
 0x199   : > { %8889 = vmatprep.mubr.msk.f32.mxu0 %vm619_vm2, %v508_v19  ;;  %3890 = vperm.xlu0 %10168, %v9928_v27   ;;  %v532_v27 = vld [vmem:[%s10932_s20 + $0x160] sm:$0xff] }
 0x19a   : > { %v9966_v19 = vcvt.f32.s32 %v9965_v14  ;;  %v9975_v30 = vtrunc.f32 %v532_v27  ;;  %v548_v14 = vld [vmem:[%s10932_s20 + $0x1e0] sm:$0xff] }
 0x19c   : > { %8890 = vmatmul.mubr.msk.f32.gmra.mrb[20].mxu0 %vm619_vm2, %v509_v20  ;;  %3899 = vperm.xlu1 %10169, %v9934_v35   ;;  %v9969_v20 = vtrunc.f32 %v529_v16  ;;  %v9976_v35 = vcvt.f32.s32 %v9975_v30  ;;  %v553_v30 = vld [vmem:[%s10932_s20 + $0x208] sm:$0xff] }
 0x19d   : > { %8892 = vmatprep.mubr.msk.f32.mxu0 %vm619_vm2, %v510_v25  ;;  %3896 = vperm.xlu0 %10168, %v9932_v33   ;;  %v534_v33 = vld [vmem:[%s10932_s20 + $0x170] sm:$0xff] }
 0x19e   : > { %v9970_v25 = vcvt.f32.s32 %v9969_v20  ;;  %v9979_v36 = vtrunc.f32 %v534_v33  ;;  %v10006_v20 = vcvt.f32.s32 %v10005_v12  ;;  %v564_v12 = vld [vmem:[%s10932_s20 + $0x260] sm:$0xff] }
 0x1a0   : > { %8893 = vmatmul.mubr.msk.f32.gmra.mrb[22].mxu0 %vm619_vm2, %v511_v26  ;;  %3905 = vperm.xlu1 %10169, %v9938_v41   ;;  %v9973_v26 = vtrunc.f32 %v531_v22  ;;  %v9980_v41 = vcvt.f32.s32 %v9979_v36  ;;  %v555_v36 = vld [vmem:[%s10932_s20 + $0x218] sm:$0xff] }
 0x1a1   : > { %8895 = vmatprep.mubr.msk.f32.mxu0 %vm619_vm2, %v512_v31  ;;  %3902 = vperm.xlu0 %10168, %v9936_v39   ;;  %v536_v39 = vld [vmem:[%s10932_s20 + $0x180] sm:$0xff] }
 0x1a2   : > { %v9974_v31 = vcvt.f32.s32 %v9973_v26  ;;  %v9983_v42 = vtrunc.f32 %v536_v39 }
 0x1a4   : > { %8896 = vmatmul.mubr.msk.f32.gmra.mrb[24].mxu0 %vm619_vm2, %v513_v32  ;;  %3911 = vperm.xlu1 %10169, %v9942_v47   ;;  %v9977_v32 = vtrunc.f32 %v533_v28  ;;  %v9984_v47 = vcvt.f32.s32 %v9983_v42 }
 0x1a5   : > { %8898 = vmatprep.mubr.msk.f32.mxu0 %vm619_vm2, %v514_v37  ;;  %3908 = vperm.xlu0 %10168, %v9940_v45   ;;  %v538_v45 = vld [vmem:[%s10932_s20 + $0x190] sm:$0xff] }
 0x1a6   : > { %v9978_v37 = vcvt.f32.s32 %v9977_v32  ;;  %v9987_v48 = vtrunc.f32 %v538_v45 }
 0x1a8   : > { %8899 = vmatmul.mubr.msk.f32.gmra.mrb[26].mxu0 %vm619_vm2, %v515_v38  ;;  %3917 = vperm.xlu1 %10169, %v9946_v53   ;;  %v9981_v38 = vtrunc.f32 %v535_v34  ;;  %v9988_v53 = vcvt.f32.s32 %v9987_v48 }
 0x1a9   : > { %8901 = vmatprep.mubr.msk.f32.mxu0 %vm619_vm2, %v516_v43  ;;  %3914 = vperm.xlu0 %10168, %v9944_v51   ;;  %v540_v51 = vld [vmem:[%s10932_s20 + $0x1a0] sm:$0xff] }
 0x1aa   : > { %v9982_v43 = vcvt.f32.s32 %v9981_v38  ;;  %v9991_v54 = vtrunc.f32 %v540_v51 }
 0x1ac   : > { %8902 = vmatmul.mubr.msk.f32.gmra.mrb[28].mxu0 %vm619_vm2, %v517_v44  ;;  %3923 = vperm.xlu1 %10169, %v9950_v59   ;;  %v9985_v44 = vtrunc.f32 %v537_v40  ;;  %v9992_v59 = vcvt.f32.s32 %v9991_v54  ;;  %v559_v54 = vld [vmem:[%s10932_s20 + $0x238] sm:$0xff] }
 0x1ad   : > { %8904 = vmatprep.mubr.msk.f32.mxu0 %vm619_vm2, %v518_v49  ;;  %3920 = vperm.xlu0 %10168, %v9948_v57   ;;  %v542_v57 = vld [vmem:[%s10932_s20 + $0x1b0] sm:$0xff] }
 0x1ae   : > { %v9986_v49 = vcvt.f32.s32 %v9985_v44  ;;  %v9995_v60 = vtrunc.f32 %v542_v57  ;;  %v4597_v44 = vld [vmem:[#allocation3] sm:$0xff] }
 0x1b0   : > { %8905 = vmatmul.mubr.msk.f32.gmra.mrb[30].mxu0 %vm619_vm2, %v519_v50  ;;  %3929 = vperm.xlu1 %10169, %v9954_v1   ;;  %v9989_v50 = vtrunc.f32 %v539_v46  ;;  %v9996_v1 = vcvt.f32.s32 %v9995_v60  ;;  %v560_v60 = vld [vmem:[%s10932_s20 + $0x240] sm:$0xff] }
 0x1b1   : > { %8907 = vmatprep.mubr.msk.f32.mxu0 %vm619_vm2, %v520_v55  ;;  %3926 = vperm.xlu0 %10168, %v9952_v63   ;;  %v544_v63 = vld [vmem:[%s10932_s20 + $0x1c0] sm:$0xff] }
 0x1b2   : > { %v9990_v55 = vcvt.f32.s32 %v9989_v50  ;;  %v9999_v2 = vtrunc.f32 %v544_v63 }
 0x1b4   : > { %8908 = vmatmul.mubr.msk.f32.gmra.mrb[32].mxu0 %vm619_vm2, %v521_v56  ;;  %3935 = vperm.xlu1 %10169, %v9958_v7   ;;  %v9993_v56 = vtrunc.f32 %v541_v52  ;;  %v10000_v7 = vcvt.f32.s32 %v9999_v2 }
 0x1b5   : > { %8910 = vmatprep.mubr.msk.f32.mxu0 %vm619_vm2, %v522_v61  ;;  %3932 = vperm.xlu0 %10168, %v9956_v5   ;;  %v546_v5 = vld [vmem:[%s10932_s20 + $0x1d0] sm:$0xff] }
 0x1b6   : > { %v9994_v61 = vcvt.f32.s32 %v9993_v56  ;;  %v10003_v8 = vtrunc.f32 %v546_v5 }
 0x1b8   : > { %8911 = vmatmul.mubr.msk.f32.gmra.mrb[34].mxu0 %vm619_vm2, %v523_v62  ;;  %3941 = vperm.xlu1 %10169, %v9962_v13   ;;  %v9997_v62 = vtrunc.f32 %v543_v58 }
 0x1b9   : > { %8913 = vmatprep.mubr.msk.f32.mxu0 %vm619_vm2, %v524_v3  ;;  %3938 = vperm.xlu0 %10168, %v9960_v11  }
 0x1ba   : > { %v9998_v3 = vcvt.f32.s32 %v9997_v62  ;;  %v561_v62 = vld [vmem:[%s10932_s20 + $0x248] sm:$0xff] }
 0x1bc   : > { %8914 = vmatmul.mubr.msk.f32.gmra.mrb[36].mxu0 %vm619_vm2, %v525_v4  ;;  %3947 = vperm.xlu1 %10169, %v9966_v19   ;;  %v10001_v4 = vtrunc.f32 %v545_v0  ;;  %v2608_v19 = vld [vmem:[%s14022_s4 + $0x18] sm:$0xff] }
 0x1bd   : > { %8916 = vmatprep.mubr.msk.f32.mxu0 %vm619_vm2, %v526_v9  ;;  %3944 = vperm.xlu0 %10168, %v9964_v17   ;;  %v2605_v9 = vld [vmem:[%s14022_s4] sm:$0xff]  ;;  %v10007_v17 = vtrunc.f32 %v548_v14 }
 0x1be   : > { %v10002_v11 = vcvt.f32.s32 %v10001_v4  ;;  %v562_v4 = vld [vmem:[%s10932_s20 + $0x250] sm:$0xff] }
 0x1c0   : > { %8917 = vmatmul.mubr.msk.f32.gmra.mrb[38].mxu0 %vm619_vm2, %v527_v10  ;;  %3953 = vperm.xlu1 %10169, %v9970_v25   ;;  %v2606_v10 = vld [vmem:[%s14022_s4 + $0x8] sm:$0xff]  ;;  %v10008_v25 = vcvt.f32.s32 %v10007_v17 }
 0x1c1   : > { %8919 = vmatprep.mubr.msk.f32.mxu0 %vm619_vm2, %v528_v15  ;;  %3950 = vperm.xlu0 %10168, %v9968_v23   ;;  %v9703_v13 = vpack.c.bf16 %v2606_v10, %v2605_v9  ;;  %v549_v15 = vld [vmem:[%s10932_s20 + $0x1e8] sm:$0xff]  ;;  %v550_v23 = vld [vmem:[%s10932_s20 + $0x1f0] sm:$0xff]  ;;  %v10035_v9 = vtrunc.f32 %v562_v4 }
 0x1c2   : > { %v10011_v26 = vtrunc.f32 %v550_v23 }
 0x1c3   : > { %9704 = vmatprep.subr.bf16.mxu1 %v9703_v13 }
 0x1c4   : > { %8920 = vmatmul.mubr.msk.f32.gmra.mrb[40].mxu0 %vm619_vm2, %v529_v16  ;;  %3959 = vperm.xlu1 %10169, %v9974_v31   ;;  %v10004_v16 = vcvt.f32.s32 %v10003_v8  ;;  %v10012_v31 = vcvt.f32.s32 %v10011_v26 }
 0x1c5   : > { %8922 = vmatprep.mubr.msk.f32.mxu0 %vm619_vm2, %v530_v21  ;;  %3956 = vperm.xlu0 %10168, %v9972_v29   ;;  %v10009_v21 = vtrunc.f32 %v549_v15  ;;  %v552_v29 = vld [vmem:[%s10932_s20 + $0x200] sm:$0xff] }
 0x1c6   : > { %9706 = vmatpush3.bf16.msra.mxu1 %v9703_v13  ;;  %v10015_v32 = vtrunc.f32 %v552_v29 }
 0x1c8   : > { %8923 = vmatmul.mubr.msk.f32.gmra.mrb[42].mxu0 %vm619_vm2, %v531_v22  ;;  %3965 = vperm.xlu1 %10169, %v9978_v37   ;;  %v9707_v22 = vpack.c.bf16 %v2608_v19, %v2607_v18  ;;  %v10016_v37 = vcvt.f32.s32 %v10015_v32 }
 0x1c9   : > { %8925 = vmatprep.mubr.msk.f32.mxu0 %vm619_vm2, %v532_v27  ;;  %3962 = vperm.xlu0 %10168, %v9976_v35   ;;  %v10010_v27 = vcvt.f32.s32 %v10009_v21  ;;  %v554_v35 = vld [vmem:[%s10932_s20 + $0x210] sm:$0xff]  ;;  %v567_v21 = vld [vmem:[%s10932_s20 + $0x278] sm:$0xff] }
 0x1ca   : > { %9708 = vmatprep.subr.bf16.mxu1 %v9707_v22  ;;  %v10019_v38 = vtrunc.f32 %v554_v35  ;;  %v10045_v26 = vtrunc.f32 %v567_v21 }
 0x1cb   : > { %9710 = vmatpush3.bf16.msra.mxu1 %v9707_v22 }
 0x1cc   : > { %8926 = vmatmul.mubr.msk.f32.gmra.mrb[44].mxu0 %vm619_vm2, %v533_v28  ;;  %3971 = vperm.xlu1 %10169, %v9982_v43   ;;  %v10013_v28 = vtrunc.f32 %v551_v24  ;;  %v10046_v32 = vcvt.f32.s32 %v10045_v26 }
 0x1cd   : > { %8928 = vmatprep.mubr.msk.f32.mxu0 %vm619_vm2, %v534_v33  ;;  %3968 = vperm.xlu0 %10168, %v9980_v41   ;;  %v556_v41 = vld [vmem:[%s10932_s20 + $0x220] sm:$0xff] }
 0x1ce   : > { %v10014_v33 = vcvt.f32.s32 %v10013_v28  ;;  %v10023_v48 = vtrunc.f32 %v556_v41 }
 0x1d0   : > { %8929 = vmatmul.mubr.msk.f32.gmra.mrb[46].mxu0 %vm619_vm2, %v535_v34  ;;  %3977 = vperm.xlu1 %10169, %v9986_v49   ;;  %v10017_v34 = vtrunc.f32 %v553_v30  ;;  %v10024_v56 = vcvt.f32.s32 %v10023_v48 }
 0x1d1   : > { %8931 = vmatprep.mubr.msk.f32.mxu0 %vm619_vm2, %v536_v39  ;;  %3974 = vperm.xlu0 %10168, %v9984_v47   ;;  %v10020_v47 = vcvt.f32.s32 %v10019_v38 }
 0x1d2   : > { %v10018_v39 = vcvt.f32.s32 %v10017_v34  ;;  %v570_v34 = vld [vmem:[%s10932_s20 + $0x290] sm:$0xff] }
 0x1d3   : > { %v10051_v38 = vtrunc.f32 %v570_v34 }
 0x1d4   : > { %8932 = vmatmul.mubr.msk.f32.gmra.mrb[48].mxu0 %vm619_vm2, %v537_v40  ;;  %3983 = vperm.xlu1 %10169, %v9990_v55   ;;  %v10021_v40 = vtrunc.f32 %v555_v36 }
 0x1d5   : > { %8934 = vmatprep.mubr.msk.f32.mxu0 %vm619_vm2, %v538_v45  ;;  %3980 = vperm.xlu0 %10168, %v9988_v53   ;;  %v4598_v45 = vld [vmem:[#allocation3 + $0x8] sm:$0xff] }
 0x1d6   : > { %v9711_v49 = vpack.c.bf16 %v4598_v45, %v4597_v44  ;;  %v10022_v50 = vcvt.f32.s32 %v10021_v40  ;;  %v572_v44 = vld [vmem:[%s10932_s20 + $0x2a0] sm:$0xff]  ;;  %v573_v45 = vld [vmem:[%s10932_s20 + $0x2a8] sm:$0xff] }
 0x1d8   : > { %8935 = vmatmul.mubr.msk.f32.gmra.mrb[50].mxu0 %vm619_vm2, %v539_v46  ;;  %3989 = vperm.xlu1 %10169, %v9994_v61   ;;  %v557_v46 = vld [vmem:[%s10932_s20 + $0x228] sm:$0xff] }
 0x1d9   : > { %8937 = vmatprep.mubr.msk.f32.mxu0 %vm619_vm2, %v540_v51  ;;  %3986 = vperm.xlu0 %10168, %v9992_v59   ;;  %v10025_v51 = vtrunc.f32 %v557_v46  ;;  %v10029_v59 = vtrunc.f32 %v559_v54 }
 0x1da   : > { %9712 = vmatprep.subr.bf16.mxu0 %v9711_v49 }
 0x1db   : > { %9714 = vmatpush3.bf16.msra.mxu0 %v9711_v49  ;;  %v10030_v2 = vcvt.f32.s32 %v10029_v59 }
 0x1dc   : > { %8938 = vmatmul.mubr.msk.f32.gmra.mrb[52].mxu0 %vm619_vm2, %v541_v52  ;;  %3995 = vperm.xlu1 %10169, %v9998_v3   ;;  %v558_v52 = vld [vmem:[%s10932_s20 + $0x230] sm:$0xff]  ;;  %v10033_v3 = vtrunc.f32 %v561_v62 }
 0x1dd   : > { %8940 = vmatprep.mubr.msk.f32.mxu0 %vm619_vm2, %v542_v57  ;;  %3992 = vperm.xlu0 %10168, %v9996_v1   ;;  %v10027_v57 = vtrunc.f32 %v558_v52  ;;  %v10031_v1 = vtrunc.f32 %v560_v60 }
 0x1de   : > { %v10034_v10 = vcvt.f32.s32 %v10033_v3 }
 0x1df   : > { %v10032_v8 = vcvt.f32.s32 %v10031_v1 }
 0x1e0   : > { %8941 = vmatmul.mubr.msk.f32.gmra.mrb[54].mxu0 %vm619_vm2, %v543_v58  ;;  %4001 = vperm.xlu1 %10169, %v10002_v11   ;;  %v10026_v58 = vcvt.f32.s32 %v10025_v51  ;;  %v574_v51 = vld [vmem:[%s10932_s20 + $0x2b0] sm:$0xff] }
 0x1e1   : > { %8943 = vmatprep.mubr.msk.f32.mxu0 %vm619_vm2, %v544_v63  ;;  %3998 = vperm.xlu0 %10168, %v10000_v7  }
 0x1e4   : > { %8944 = vmatmul.mubr.msk.f32.gmra.mrb[56].mxu0 %vm619_vm2, %v545_v0  ;;  %4007 = vperm.xlu1 %10169, %v10006_v20   ;;  %v10028_v0 = vcvt.f32.s32 %v10027_v57  ;;  %v566_v20 = vld [vmem:[%s10932_s20 + $0x270] sm:$0xff]  ;;  %v10059_v57 = vtrunc.f32 %v574_v51 }
 0x1e5   : > { %8946 = vmatprep.mubr.msk.f32.mxu0 %vm619_vm2, %v546_v5  ;;  %4004 = vperm.xlu0 %10168, %v10004_v16   ;;  %v10039_v16 = vtrunc.f32 %v564_v12 }
 0x1e6   : > { %v10060_v1 = vcvt.f32.s32 %v10059_v57 }
 0x1e7   : > { %v10040_v22 = vcvt.f32.s32 %v10039_v16  ;;  %v580_v16 = vld [vmem:[%s10932_s20 + $0x2e0] sm:$0xff] }
 0x1e8   : > { %8947 = vmatmul.mubr.msk.f32.gmra.mrb[58].mxu0 %vm619_vm2, %v547_v6  ;;  %4013 = vperm.xlu1 %10169, %v10010_v27   ;;  %v563_v6 = vld [vmem:[%s10932_s20 + $0x258] sm:$0xff]  ;;  %v568_v27 = vld [vmem:[%s10932_s20 + $0x280] sm:$0xff] }
 0x1e9   : > { %8949 = vmatprep.mubr.msk.f32.mxu0 %vm619_vm2, %v548_v14  ;;  %4010 = vperm.xlu0 %10168, %v10008_v25   ;;  %v10037_v11 = vtrunc.f32 %v563_v6  ;;  %v565_v14 = vld [vmem:[%s10932_s20 + $0x268] sm:$0xff] }
 0x1ea   : > { %v10041_v19 = vtrunc.f32 %v565_v14 }
 0x1eb   : > { %v10038_v18 = vcvt.f32.s32 %v10037_v11 }
 0x1ec   : > { %8950 = vmatmul.mubr.msk.f32.gmra.mrb[60].mxu0 %vm619_vm2, %v549_v15  ;;  %4019 = vperm.xlu1 %10169, %v10014_v33   ;;  %v10036_v15 = vcvt.f32.s32 %v10035_v9  ;;  %v10042_v25 = vcvt.f32.s32 %v10041_v19  ;;  %v579_v9 = vld [vmem:[%s10932_s20 + $0x2d8] sm:$0xff]  ;;  %v581_v19 = vld [vmem:[%s10932_s20 + $0x2e8] sm:$0xff] }
 0x1ed   : > { %8952 = vmatprep.mubr.msk.f32.mxu0 %vm619_vm2, %v550_v23  ;;  %4016 = vperm.xlu0 %10168, %v10012_v31   ;;  %v10043_v23 = vtrunc.f32 %v566_v20  ;;  %v10047_v31 = vtrunc.f32 %v568_v27 }
 0x1ef   : > { %v11127_v43 = vpop.permute.xlu1 %3836 }
 0x1f0   : > { %8953 = vmatmul.mubr.msk.f32.gmra.mrb[62].mxu0 %vm619_vm2, %v551_v24  ;;  %v11125_v42 = vpop.permute.xlu0 %3830  ;;  %4025 = vperm.xlu1 %10169, %v10018_v39  }
 0x1f1   : > { %8955 = vmatprep.mubr.msk.f32.mxu0 %vm619_vm2, %v552_v29  ;;  %4022 = vperm.xlu0 %10168, %v10016_v37   ;;  %v569_v29 = vld [vmem:[%s10932_s20 + $0x288] sm:$0xff]  ;;  %v10048_v37 = vcvt.f32.s32 %v10047_v31 }
 0x1f2   : > { %v10049_v33 = vtrunc.f32 %v569_v29 }
 0x1f3   : > { %v11137_v55 = vpop.permute.xlu1 %3839 }
 0x1f4   : > { %8956 = vmatmul.mubr.msk.f32.gmra.mrb[64].mxu0 %vm619_vm2, %v553_v30  ;;  %v11133_v53 = vpop.permute.xlu0 %3833  ;;  %4031 = vperm.xlu1 %10169, %v10022_v50   ;;  %v10044_v30 = vcvt.f32.s32 %v10043_v23  ;;  %v10050_v40 = vcvt.f32.s32 %v10049_v33  ;;  %v10057_v50 = vtrunc.f32 %v573_v45  ;;  %v10073_v23 = vtrunc.f32 %v581_v19 }
 0x1f5   : > { %8958 = vmatprep.mubr.msk.f32.mxu0 %vm619_vm2, %v554_v35  ;;  %4028 = vperm.xlu0 %10168, %v10020_v47   ;;  %v10055_v47 = vtrunc.f32 %v572_v44 }
 0x1f7   : > { %v11145_v63 = vpop.permute.xlu1 %3845 }
 0x1f8   : > { %8959 = vmatmul.mubr.msk.f32.gmra.mrb[66].mxu0 %vm619_vm2, %v555_v36  ;;  %v11141_v61 = vpop.permute.xlu0 %3842  ;;  %4037 = vperm.xlu1 %10169, %v10026_v58   ;;  %v571_v36 = vld [vmem:[%s10932_s20 + $0x298] sm:$0xff]  ;;  %v10058_v58 = vcvt.f32.s32 %v10057_v50 }
 0x1f9   : > { %8961 = vmatprep.mubr.msk.f32.mxu0 %vm619_vm2, %v556_v41  ;;  %4034 = vperm.xlu0 %10168, %v10024_v56   ;;  %v10053_v41 = vtrunc.f32 %v571_v36  ;;  %v10056_v56 = vcvt.f32.s32 %v10055_v47 }
 0x1fb   : > { %v11153_v7 = vpop.permute.xlu1 %3851  ;;  %v10054_v49 = vcvt.f32.s32 %v10053_v41 }
 0x1fc   : > { %8962 = vmatmul.mubr.msk.f32.gmra.mrb[68].mxu0 %vm619_vm2, %v557_v46  ;;  %v11149_v5 = vpop.permute.xlu0 %3848  ;;  %4043 = vperm.xlu1 %10169, %v10030_v2   ;;  %v10052_v46 = vcvt.f32.s32 %v10051_v38 }
 0x1fd   : > { %8964 = vmatprep.mubr.msk.f32.mxu0 %vm619_vm2, %v558_v52  ;;  %4040 = vperm.xlu0 %10168, %v10028_v0   ;;  %v577_v0 = vld [vmem:[%s10932_s20 + $0x2c8] sm:$0xff] }
 0x1ff   : > { %v11161_v17 = vpop.permute.xlu1 %3857 }
 0x200   : > { %8965 = vmatmul.mubr.msk.f32.gmra.mrb[70].mxu0 %vm619_vm2, %v559_v54  ;;  %v11157_v13 = vpop.permute.xlu0 %3854  ;;  %4049 = vperm.xlu1 %10169, %v10034_v10   ;;  %v575_v54 = vld [vmem:[%s10932_s20 + $0x2b8] sm:$0xff] }
 0x201   : > { %8967 = vmatprep.mubr.msk.f32.mxu0 %vm619_vm2, %v560_v60  ;;  %4046 = vperm.xlu0 %10168, %v10032_v8   ;;  %v10061_v59 = vtrunc.f32 %v575_v54  ;;  %v576_v60 = vld [vmem:[%s10932_s20 + $0x2c0] sm:$0xff]  ;;  %v578_v8 = vld [vmem:[%s10932_s20 + $0x2d0] sm:$0xff] }
 0x202   : > { %v10063_v2 = vtrunc.f32 %v576_v60  ;;  %v10067_v11 = vtrunc.f32 %v578_v8 }
 0x203   : > { %v11171_v28 = vpop.permute.xlu1 %3863 }
 0x204   : > { %8968 = vmatmul.mubr.msk.f32.gmra.mrb[72].mxu0 %vm619_vm2, %v561_v62  ;;  %v11167_v24 = vpop.permute.xlu0 %3860  ;;  %4055 = vperm.xlu1 %10169, %v10038_v18   ;;  %v10064_v10 = vcvt.f32.s32 %v10063_v2 }
 0x205   : > { %8970 = vmatprep.mubr.msk.f32.mxu0 %vm619_vm2, %v562_v4  ;;  %4052 = vperm.xlu0 %10168, %v10036_v15   ;;  %v10062_v4 = vcvt.f32.s32 %v10061_v59  ;;  %v10069_v15 = vtrunc.f32 %v579_v9 }
 0x207   : > { %v11181_v39 = vpop.permute.xlu1 %3869 }
 0x208   : > { %8971 = vmatmul.mubr.msk.f32.gmra.mrb[74].mxu0 %vm619_vm2, %v563_v6  ;;  %4061 = vperm.xlu1 %10169, %v10042_v25   ;;  %v11177_v35 = vpop.permute.xlu0 %3866  ;;  %v10065_v6 = vtrunc.f32 %v577_v0  ;;  %v582_v25 = vld [vmem:[%s10932_s20 + $0x2f0] sm:$0xff] }
 0x209   : > { %8973 = vmatprep.mubr.msk.f32.mxu0 %vm619_vm2, %v564_v12  ;;  %4058 = vperm.xlu0 %10168, %v10040_v22   ;;  %v10070_v22 = vcvt.f32.s32 %v10069_v15  ;;  %v592_v15 = vld [vmem:[%s10932_s20 + $0x340] sm:$0xff] }
 0x20b   : > { %v11191_v52 = vpop.permute.xlu1 %3875 }
 0x20c   : > { %8974 = vmatmul.mubr.msk.f32.gmra.mrb[76].mxu0 %vm619_vm2, %v565_v14  ;;  %4067 = vperm.xlu1 %10169, %v10046_v32   ;;  %v11187_v48 = vpop.permute.xlu0 %3872  ;;  %v10066_v14 = vcvt.f32.s32 %v10065_v6  ;;  %v10074_v32 = vcvt.f32.s32 %v10073_v23 }
 0x20d   : > { %8976 = vmatprep.mubr.msk.f32.mxu0 %vm619_vm2, %v566_v20  ;;  %4064 = vperm.xlu0 %10168, %v10044_v30   ;;  %v10068_v20 = vcvt.f32.s32 %v10067_v11  ;;  %v10075_v30 = vtrunc.f32 %v582_v25 }
 0x20f   : > { %v11201_v3 = vpop.permute.xlu1 %3881 }
 0x210   : > { %8977 = vmatmul.mubr.msk.f32.gmra.mrb[78].mxu0 %vm619_vm2, %v567_v21  ;;  %4073 = vperm.xlu1 %10169, %v10050_v40   ;;  %v11197_v62 = vpop.permute.xlu0 %3878  ;;  %v10071_v21 = vtrunc.f32 %v580_v16 }
 0x211   : > { %8979 = vmatprep.mubr.msk.f32.mxu0 %vm619_vm2, %v568_v27  ;;  %4070 = vperm.xlu0 %10168, %v10048_v37   ;;  %v583_v27 = vld [vmem:[%s10932_s20 + $0x2f8] sm:$0xff]  ;;  %v10076_v37 = vcvt.f32.s32 %v10075_v30 }
 0x212   : > { %v10077_v33 = vtrunc.f32 %v583_v27 }
 0x213   : > { %v11211_v18 = vpop.permute.xlu1 %3887 }
 0x214   : > { %8980 = vmatmul.mubr.msk.f32.gmra.mrb[80].mxu0 %vm619_vm2, %v569_v29  ;;  %4079 = vperm.xlu1 %10169, %v10054_v49   ;;  %v11207_v12 = vpop.permute.xlu0 %3884  ;;  %v10072_v29 = vcvt.f32.s32 %v10071_v21  ;;  %v10078_v41 = vcvt.f32.s32 %v10077_v33  ;;  %v587_v49 = vld [vmem:[%s10932_s20 + $0x318] sm:$0xff]  ;;  %v593_v21 = vld [vmem:[%s10932_s20 + $0x348] sm:$0xff] }
 0x215   : > { %8982 = vmatprep.mubr.msk.f32.mxu0 %vm619_vm2, %v570_v34  ;;  %4076 = vperm.xlu0 %10168, %v10052_v46   ;;  %v584_v34 = vld [vmem:[%s10932_s20 + $0x300] sm:$0xff]  ;;  %v10097_v23 = vtrunc.f32 %v593_v21 }
 0x216   : > { %v10079_v38 = vtrunc.f32 %v584_v34 }
 0x217   : > { %v11221_v31 = vpop.permute.xlu1 %3893  ;;  %v10098_v33 = vcvt.f32.s32 %v10097_v23 }
 0x218   : > { %8983 = vmatmul.mubr.msk.f32.gmra.mrb[82].mxu0 %vm619_vm2, %v571_v36  ;;  %4085 = vperm.xlu1 %10169, %v10058_v58   ;;  %v11217_v26 = vpop.permute.xlu0 %3890  ;;  %v585_v36 = vld [vmem:[%s10932_s20 + $0x308] sm:$0xff]  ;;  %v10080_v50 = vcvt.f32.s32 %v10079_v38 }
 0x219   : > { %8985 = vmatprep.mubr.msk.f32.mxu0 %vm619_vm2, %v572_v44  ;;  %4082 = vperm.xlu0 %10168, %v10056_v56   ;;  %v10081_v44 = vtrunc.f32 %v585_v36  ;;  %v588_v56 = vld [vmem:[%s10932_s20 + $0x320] sm:$0xff] }
 0x21a   : > { %v10087_v59 = vtrunc.f32 %v588_v56 }
 0x21b   : > { %v11231_v46 = vpop.permute.xlu1 %3899 }
 0x21c   : > { %8986 = vmatmul.mubr.msk.f32.gmra.mrb[84].mxu0 %vm619_vm2, %v573_v45  ;;  %4091 = vperm.xlu1 %10169, %v10062_v4   ;;  %v11227_v40 = vpop.permute.xlu0 %3896  ;;  %v586_v45 = vld [vmem:[%s10932_s20 + $0x310] sm:$0xff]  ;;  %14049 = vst [vmem:[#allocation8_spill] sm:$0xff] %v11231_v46  ;;  %v10088_v6 = vcvt.f32.s32 %v10087_v59 }
 0x21d   : > { %8988 = vmatprep.mubr.msk.f32.mxu0 %vm619_vm2, %v574_v51  ;;  %4088 = vperm.xlu0 %10168, %v10060_v1   ;;  %v10083_v47 = vtrunc.f32 %v586_v45  ;;  %v10085_v51 = vtrunc.f32 %v587_v49  ;;  %v590_v4 = vld [vmem:[%s10932_s20 + $0x330] sm:$0xff] }
 0x21f   : > { %v10084_v58 = vcvt.f32.s32 %v10083_v47  ;;  %v11241_v2 = vpop.permute.xlu1 %3905 }
 0x220   : > { %8989 = vmatmul.mubr.msk.f32.gmra.mrb[86].mxu0 %vm619_vm2, %v575_v54  ;;  %4097 = vperm.xlu1 %10169, %v10066_v14   ;;  %v10082_v54 = vcvt.f32.s32 %v10081_v44  ;;  %v11237_v57 = vpop.permute.xlu0 %3902  ;;  %14051 = vst [vmem:[#allocation10_spill] sm:$0xff] %v11241_v2  ;;  %v597_v44 = vld [vmem:[%s10932_s20 + $0x368] sm:$0xff] }
 0x221   : > { %8991 = vmatprep.mubr.msk.f32.mxu0 %vm619_vm2, %v576_v60  ;;  %4094 = vperm.xlu0 %10168, %v10064_v10   ;;  %14050 = vst [vmem:[#allocation9_spill] sm:$0xff] %v11237_v57  ;;  %v589_v60 = vld [vmem:[%s10932_s20 + $0x328] sm:$0xff]  ;;  %v10105_v47 = vtrunc.f32 %v597_v44 }
 0x222   : > { %v10089_v1 = vtrunc.f32 %v589_v60 }
 0x223   : > { %v10106_v59 = vcvt.f32.s32 %v10105_v47 }
 0x224   : > { %8992 = vmatmul.mubr.msk.f32.gmra.mrb[88].mxu0 %vm619_vm2, %v577_v0  ;;  %4103 = vperm.xlu1 %10169, %v10070_v22   ;;  %v10086_v0 = vcvt.f32.s32 %v10085_v51  ;;  %v10090_v10 = vcvt.f32.s32 %v10089_v1  ;;  %v11247_v14 = vpop.permute.xlu0 %3908 }
 0x225   : > { %8994 = vmatprep.mubr.msk.f32.mxu0 %vm619_vm2, %v578_v8  ;;  %4100 = vperm.xlu0 %10168, %v10068_v20   ;;  %v10091_v8 = vtrunc.f32 %v590_v4  ;;  %14052 = vst [vmem:[#allocation11_spill] sm:$0xff] %v11247_v14  ;;  %v10095_v20 = vtrunc.f32 %v592_v15 }
 0x228   : > { %8995 = vmatmul.mubr.msk.f32.gmra.mrb[90].mxu0 %vm619_vm2, %v579_v9  ;;  %4109 = vperm.xlu1 %10169, %v10074_v32   ;;  %v591_v9 = vld [vmem:[%s10932_s20 + $0x338] sm:$0xff] }
 0x229   : > { %8997 = vmatprep.mubr.msk.f32.mxu0 %vm619_vm2, %v580_v16  ;;  %4106 = vperm.xlu0 %10168, %v10072_v29   ;;  %v10093_v11 = vtrunc.f32 %v591_v9  ;;  %v11251_v16 = vpop.permute.xlu1 %3911  ;;  %v10096_v29 = vcvt.f32.s32 %v10095_v20  ;;  %v595_v32 = vld [vmem:[%s10932_s20 + $0x358] sm:$0xff] }
 0x22a   : > { %14053 = vst [vmem:[#allocation12_spill] sm:$0xff] %v11251_v16 }
 0x22b   : > { %v10094_v22 = vcvt.f32.s32 %v10093_v11 }
 0x22c   : > { %8998 = vmatmul.mubr.msk.f32.gmra.mrb[92].mxu0 %vm619_vm2, %v581_v19  ;;  %4115 = vperm.xlu1 %10169, %v10078_v41   ;;  %v10092_v19 = vcvt.f32.s32 %v10091_v8 }
 0x22d   : > { %9000 = vmatprep.mubr.msk.f32.mxu0 %vm619_vm2, %v582_v25  ;;  %4112 = vperm.xlu0 %10168, %v10076_v37   ;;  %v594_v25 = vld [vmem:[%s10932_s20 + $0x350] sm:$0xff]  ;;  %v596_v37 = vld [vmem:[%s10932_s20 + $0x360] sm:$0xff] }
 0x22e   : > { %v10099_v30 = vtrunc.f32 %v594_v25  ;;  %v10103_v41 = vtrunc.f32 %v596_v37 }
 0x230   : > { %9001 = vmatmul.mubr.msk.f32.gmra.mrb[94].mxu0 %vm619_vm2, %v583_v27  ;;  %4121 = vperm.xlu1 %10169, %v10082_v54   ;;  %v11257_v27 = vpop.permute.xlu0 %3914  ;;  %v10100_v38 = vcvt.f32.s32 %v10099_v30  ;;  %v10104_v54 = vcvt.f32.s32 %v10103_v41 }
 0x231   : > { %9003 = vmatprep.mubr.msk.f32.mxu0 %vm619_vm2, %v584_v34  ;;  %4118 = vperm.xlu0 %10168, %v10080_v50   ;;  %14054 = vst [vmem:[#allocation13_spill] sm:$0xff] %v11257_v27  ;;  %v10101_v34 = vtrunc.f32 %v595_v32  ;;  %v598_v50 = vld [vmem:[%s10932_s20 + $0x370] sm:$0xff]  ;;  %v11369_v27 = vld [vmem:[%s10932_s20 + $0x3e8] sm:$0xff] }
 0x232   : > { %v10137_v16 = vtrunc.f32 %v11369_v27 }
 0x234   : > { %9004 = vmatmul.mubr.msk.f32.gmra.mrb[96].mxu0 %vm619_vm2, %v585_v36  ;;  %4127 = vperm.xlu1 %10169, %v10086_v0   ;;  %v11261_v36 = vpop.permute.xlu1 %3917  ;;  %v10138_v2 = vcvt.f32.s32 %v10137_v16 }
 0x235   : > { %9006 = vmatprep.mubr.msk.f32.mxu0 %vm619_vm2, %v586_v45  ;;  %4124 = vperm.xlu0 %10168, %v10084_v58   ;;  %14055 = vst [vmem:[#allocation14_spill] sm:$0xff] %v11261_v36  ;;  %v10102_v45 = vcvt.f32.s32 %v10101_v34  ;;  %v599_v58 = vld [vmem:[%s10932_s20 + $0x378] sm:$0xff] }
 0x236   : > { %v603_v34 = vld [vmem:[%s10932_s20 + $0x398] sm:$0xff] }
 0x238   : > { %9007 = vmatmul.mubr.msk.f32.gmra.mrb[98].mxu0 %vm619_vm2, %v587_v49  ;;  %4133 = vperm.xlu1 %10169, %v10090_v10   ;;  %v11267_v49 = vpop.permute.xlu0 %3920  ;;  %v11271_v51 = vpop.permute.xlu1 %3923 }
 0x239   : > { %9009 = vmatprep.mubr.msk.f32.mxu0 %vm619_vm2, %v588_v56  ;;  %4130 = vperm.xlu0 %10168, %v10088_v6   ;;  %14056 = vst [vmem:[#allocation15_spill] sm:$0xff] %v11267_v49  ;;  %14057 = vst [vmem:[#allocation16_spill] sm:$0xff] %v11271_v51  ;;  %v10107_v56 = vtrunc.f32 %v598_v50  ;;  %v600_v6 = vld [vmem:[%s10932_s20 + $0x380] sm:$0xff]  ;;  %v11354_v49 = vld [vmem:[%s10932_s20 + $0x3d8] sm:$0xff] }
 0x23a   : > { %v10111_v11 = vtrunc.f32 %v600_v6 }
 0x23b   : > { %v10108_v10 = vcvt.f32.s32 %v10107_v56 }
 0x23c   : > { %9010 = vmatmul.mubr.msk.f32.gmra.mrb[100].mxu0 %vm619_vm2, %v589_v60  ;;  %4139 = vperm.xlu1 %10169, %v10094_v22   ;;  %v10109_v60 = vtrunc.f32 %v599_v58  ;;  %v11282_v8 = vpop.permute.xlu0 %3926 }
 0x23d   : > { %9012 = vmatprep.mubr.msk.f32.mxu0 %vm619_vm2, %v590_v4  ;;  %4136 = vperm.xlu0 %10168, %v10092_v19   ;;  %14058 = vst [vmem:[#allocation17_spill] sm:$0xff] %v11282_v8 }
 0x23e   : > { %v10110_v19 = vcvt.f32.s32 %v10109_v60 }
 0x240   : > { %9013 = vmatmul.mubr.msk.f32.gmra.mrb[102].mxu0 %vm619_vm2, %v591_v9  ;;  %4145 = vperm.xlu1 %10169, %v10098_v33   ;;  %v11299_v41 = vpop.permute.xlu0 %3932 }
 0x241   : > { %9015 = vmatprep.mubr.msk.f32.mxu0 %vm619_vm2, %v592_v15  ;;  %4142 = vperm.xlu0 %10168, %v10096_v29   ;;  %v601_v15 = vld [vmem:[%s10932_s20 + $0x388] sm:$0xff]  ;;  %v602_v29 = vld [vmem:[%s10932_s20 + $0x390] sm:$0xff]  ;;  %14060 = vst [vmem:[#allocation19_spill] sm:$0xff] %v11299_v41 }
 0x242   : > { %v10113_v20 = vtrunc.f32 %v601_v15  ;;  %v10115_v33 = vtrunc.f32 %v602_v29 }
 0x244   : > { %9016 = vmatmul.mubr.msk.f32.gmra.mrb[104].mxu0 %vm619_vm2, %v593_v21  ;;  %4151 = vperm.xlu1 %10169, %v10102_v45   ;;  %v11287_v21 = vpop.permute.xlu1 %3929 }
 0x245   : > { %9018 = vmatprep.mubr.msk.f32.mxu0 %vm619_vm2, %v594_v25  ;;  %4148 = vperm.xlu0 %10168, %v10100_v38   ;;  %14059 = vst [vmem:[#allocation18_spill] sm:$0xff] %v11287_v21  ;;  %v10117_v38 = vtrunc.f32 %v603_v34 }
 0x247   : > { %v11275_v0 = vpop.f32.mrb[0].mxu0 }
 0x248   : > { %v7456_v1 = vmul.f32 -1.442695, %v11275_v0  ;;  %v11278_v4 = vpop.f32.mrb[1].mxu0  ;;  %9019 = vmatmul.mubr.msk.f32.gmra.mrb[106].mxu0 %vm619_vm2, %v595_v32  ;;  %4157 = vperm.xlu1 %10169, %v10106_v59   ;;  %v10112_v32 = vcvt.f32.s32 %v10111_v11  ;;  %v10116_v59 = vcvt.f32.s32 %v10115_v33 }
 0x249   : > { %v7455_v9 = vmul.f32 -1.442695, %v11278_v4  ;;  %9021 = vmatprep.mubr.msk.f32.mxu0 %vm619_vm2, %v596_v37  ;;  %4154 = vperm.xlu0 %10168, %v10104_v54   ;;  %v10114_v37 = vcvt.f32.s32 %v10113_v20  ;;  %v11308_v54 = vpop.permute.xlu1 %3935 }
 0x24a   : > { %10170 = vpow2.f32 %v7456_v1  ;;  %14061 = vst [vmem:[#allocation20_spill] sm:$0xff] %v11308_v54  ;;  %v605_v1 = vld [vmem:[%s10932_s20 + $0x3a8] sm:$0xff] }
 0x24b   : > { %10172 = vpow2.f32 %v7455_v9  ;;  %v11289_v22 = vpop.f32.mrb[2].mxu0  ;;  %v10118_v9 = vcvt.f32.s32 %v10117_v38 }
 0x24c   : > { %v7458_v23 = vmul.f32 -1.442695, %v11289_v22  ;;  %v11292_v25 = vpop.f32.mrb[3].mxu0  ;;  %9022 = vmatmul.mubr.msk.f32.gmra.mrb[108].mxu0 %vm619_vm2, %v597_v44  ;;  %4163 = vperm.xlu1 %10169, %v10110_v19  }
 0x24d   : > { %v7457_v30 = vmul.f32 -1.442695, %v11292_v25  ;;  %9024 = vmatprep.mubr.msk.f32.mxu0 %vm619_vm2, %v598_v50  ;;  %4160 = vperm.xlu0 %10168, %v10108_v10   ;;  %v604_v50 = vld [vmem:[%s10932_s20 + $0x3a0] sm:$0xff]  ;;  %v10121_v10 = vtrunc.f32 %v605_v1  ;;  %v11325_v21 = vpop.permute.xlu1 %3941 }
 0x24e   : > { %10174 = vpow2.f32 %v7458_v23  ;;  %v10119_v60 = vtrunc.f32 %v604_v50  ;;  %14063 = vst [vmem:[#allocation22_spill] sm:$0xff] %v11325_v21 }
 0x24f   : > { %10176 = vpow2.f32 %v7457_v30  ;;  %v11301_v45 = vpop.f32.mrb[4].mxu0  ;;  %v11320_v30 = vpop.permute.xlu0 %3938  ;;  %v10122_v54 = vcvt.f32.s32 %v10121_v10 }
 0x250   : > { %v7460_v44 = vmul.f32 -1.442695, %v11301_v45  ;;  %v11304_v47 = vpop.f32.mrb[5].mxu0  ;;  %9025 = vmatmul.mubr.msk.f32.gmra.mrb[110].mxu0 %vm619_vm2, %v599_v58  ;;  %4169 = vperm.xlu1 %10169, %v10114_v37   ;;  %v606_v58 = vld [vmem:[%s10932_s20 + $0x3b0] sm:$0xff]  ;;  %14062 = vst [vmem:[#allocation21_spill] sm:$0xff] %v11320_v30  ;;  %v10120_v37 = vcvt.f32.s32 %v10119_v60  ;;  %v608_v60 = vld [vmem:[%s10932_s20 + $0x3c0] sm:$0xff] }
 0x251   : > { %v7459_v56 = vmul.f32 -1.442695, %v11304_v47  ;;  %9027 = vmatprep.mubr.msk.f32.mxu0 %vm619_vm2, %v600_v6  ;;  %4166 = vperm.xlu0 %10168, %v10112_v32   ;;  %v10123_v6 = vtrunc.f32 %v606_v58 }
 0x252   : > { %10178 = vpow2.f32 %v7460_v44  ;;  %v607_v44 = vld [vmem:[%s10932_s20 + $0x3b8] sm:$0xff] }
 0x253   : > { %10180 = vpow2.f32 %v7459_v56  ;;  %v11313_v11 = vpop.f32.mrb[6].mxu0  ;;  %v10125_v41 = vtrunc.f32 %v607_v44  ;;  %v11340_v51 = vpop.permute.xlu0 %3944 }
 0x254   : > { %v10171_v19 = vpop.eup %10170  ;;  %v7462_v20 = vmul.f32 -1.442695, %v11313_v11  ;;  %v11317_v23 = vpop.f32.mrb[7].mxu0  ;;  %9028 = vmatmul.mubr.msk.f32.gmra.mrb[112].mxu0 %vm619_vm2, %v601_v15  ;;  %4175 = vperm.xlu1 %10169, %v10118_v9   ;;  %v10127_v9 = vtrunc.f32 %v608_v60  ;;  %14064 = vst [vmem:[#allocation23_spill] sm:$0xff] %v11340_v51 }
 0x255   : > { %v10173_v32 = vpop.eup %10172  ;;  %v2094_v33 = vadd.f32 1.0, %v10171_v19  ;;  %v7461_v38 = vmul.f32 -1.442695, %v11317_v23  ;;  %9030 = vmatprep.mubr.msk.f32.mxu0 %vm619_vm2, %v602_v29  ;;  %4172 = vperm.xlu0 %10168, %v10116_v59   ;;  %v10124_v59 = vcvt.f32.s32 %v10123_v6  ;;  %v10126_v21 = vcvt.f32.s32 %v10125_v41 }
 0x256   : > { %v2093_v56 = vadd.f32 1.0, %v10173_v32  ;;  %10182 = vpow2.f32 %v7462_v20 }
 0x257   : > { %10184 = vrcp.f32 %v2094_v33  ;;  %v11327_v15 = vpop.f32.mrb[8].mxu0  ;;  %v11337_v33 = vld [vmem:[%s10932_s20 + $0x3c8] sm:$0xff] }
 0x258   : > { %v10175_v19 = vpop.eup %10174  ;;  %10186 = vrcp.f32 %v2093_v56  ;;  %v7464_v30 = vmul.f32 -1.442695, %v11327_v15  ;;  %v11330_v29 = vpop.f32.mrb[9].mxu0  ;;  %9031 = vmatmul.mubr.msk.f32.gmra.mrb[114].mxu0 %vm619_vm2, %v603_v34  ;;  %v10129_v8 = vtrunc.f32 %v11337_v33  ;;  %4181 = vperm.xlu1 %10169, %v10122_v54   ;;  %v10128_v54 = vcvt.f32.s32 %v10127_v9 }
 0x259   : > { %v10177_v20 = vpop.eup %10176  ;;  %v2096_v10 = vadd.f32 1.0, %v10175_v19  ;;  %10188 = vpow2.f32 %v7461_v38  ;;  %v7463_v32 = vmul.f32 -1.442695, %v11330_v29  ;;  %9033 = vmatprep.mubr.msk.f32.mxu0 %vm619_vm2, %v604_v50  ;;  %4178 = vperm.xlu0 %10168, %v10120_v37  }
 0x25a   : > { %v2095_v56 = vadd.f32 1.0, %v10177_v20  ;;  %10190 = vpow2.f32 %v7464_v30  ;;  %v11348_v30 = vpop.permute.xlu1 %3947  ;;  %v610_v20 = vld [vmem:[%s10932_s20 + $0x3d0] sm:$0xff] }
 0x25b   : > { %10192 = vrcp.f32 %v2096_v10  ;;  %v11342_v34 = vpop.f32.mrb[10].mxu0  ;;  %14065 = vst [vmem:[#allocation24_spill] sm:$0xff] %v11348_v30  ;;  %v10131_v51 = vtrunc.f32 %v610_v20 }
 0x25c   : > { %v10179_v6 = vpop.eup %10178  ;;  %10194 = vrcp.f32 %v2095_v56  ;;  %v7466_v50 = vmul.f32 -1.442695, %v11342_v34  ;;  %v11345_v38 = vpop.f32.mrb[11].mxu0  ;;  %9034 = vmatmul.mubr.msk.f32.gmra.mrb[116].mxu0 %vm619_vm2, %v605_v1  ;;  %v10130_v56 = vcvt.f32.s32 %v10129_v8  ;;  %4187 = vperm.xlu1 %10169, %v10126_v21  }
 0x25d   : > { %v10181_v41 = vpop.eup %10180  ;;  %v2098_v37 = vadd.f32 1.0, %v10179_v6  ;;  %10196 = vpow2.f32 %v7463_v32  ;;  %v7465_v19 = vmul.f32 -1.442695, %v11345_v38  ;;  %9036 = vmatprep.mubr.msk.f32.mxu0 %vm619_vm2, %v606_v58  ;;  %4184 = vperm.xlu0 %10168, %v10124_v59   ;;  %v10133_v32 = vtrunc.f32 %v11354_v49  ;;  %v11363_v8 = vpop.permute.xlu0 %3950 }
 0x25e   : > { %v2097_v10 = vadd.f32 1.0, %v10181_v41  ;;  %10198 = vpow2.f32 %v7466_v50  ;;  %14066 = vst [vmem:[#allocation25_spill] sm:$0xff] %v11363_v8  ;;  %v612_v41 = vld [vmem:[%s10932_s20 + $0x3e0] sm:$0xff]  ;;  %v10132_v30 = vcvt.f32.s32 %v10131_v51 }
 0x25f   : > { %10200 = vrcp.f32 %v2098_v37  ;;  %v11356_v1 = vpop.f32.mrb[12].mxu0  ;;  %v10135_v36 = vtrunc.f32 %v612_v41 }
 0x260   : > { %v10183_v6 = vpop.eup %10182  ;;  %10202 = vrcp.f32 %v2097_v10  ;;  %v7468_v58 = vmul.f32 -1.442695, %v11356_v1  ;;  %v11360_v9 = vpop.f32.mrb[13].mxu0  ;;  %9037 = vmatmul.mubr.msk.f32.gmra.mrb[118].mxu0 %vm619_vm2, %v607_v44  ;;  %4193 = vperm.xlu1 %10169, %v10130_v56  }
 0x261   : > { %v10185_v59 = vpop.eup %10184  ;;  %v2100_v50 = vadd.f32 1.0, %v10183_v6  ;;  %10204 = vpow2.f32 %v7465_v19  ;;  %v7467_v21 = vmul.f32 -1.442695, %v11360_v9  ;;  %9039 = vmatprep.mubr.msk.f32.mxu0 %vm619_vm2, %v608_v60  ;;  %4190 = vperm.xlu0 %10168, %v10128_v54   ;;  %v11371_v44 = vpop.permute.xlu1 %3953  ;;  %v10134_v60 = vcvt.f32.s32 %v10133_v32 }
 0x262   : > { %v10187_v37 = vpop.eup %10186  ;;  %10206 = vpow2.f32 %v7468_v58  ;;  %14067 = vst [vmem:[#allocation26_spill] sm:$0xff] %v11371_v44  ;;  %v2478_v58 = vmul.f32 %v10185_v59, %v11275_v0  ;;  %v614_v0 = vld [vmem:[%s10932_s20 + $0x3f0] sm:$0xff]  ;;  %v14068_v59 = vlaneseq }
 0x263   : > { %v10189_v8 = vpop.eup %10188  ;;  %v11373_v6 = vpop.f32.mrb[14].mxu0  ;;  %v2477_v19 = vmul.f32 %v10187_v37, %v11278_v4  ;;  %10208 = vpow2.f32 %v7467_v21  ;;  %v10136_v37 = vcvt.f32.s32 %v10135_v36  ;;  %v10139_v44 = vtrunc.f32 %v614_v0 }
 0x264   : > { %v10191_v54 = vpop.eup %10190  ;;  %v2099_v10 = vadd.f32 1.0, %v10189_v8  ;;  %v7470_v51 = vmul.f32 -1.442695, %v11373_v6  ;;  %v11379_v14 = vpop.f32.mrb[15].mxu0  ;;  %9040 = vmatmul.mubr.msk.f32.gmra.mrb[120].mxu0 %vm619_vm2, %v11337_v33  ;;  %10210 = vrcp.f32 %v2100_v50  ;;  %v11388_v21 = vand.u32 127, %v14068_v59  ;;  %v11392_v33 = vld [vmem:[%s10932_s20 + $0x3f8] sm:$0xff]  ;;  %4199 = vperm.xlu1 %10169, %v10134_v60  }
 0x265   : > { %v10193_v56 = vpop.eup %10192  ;;  %v2102_v4 = vadd.f32 1.0, %v10191_v54  ;;  %v7469_v32 = vmul.f32 -1.442695, %v11379_v14  ;;  %9059 = vmatprep.mubr.msk.f32.mxu1 %vm2609_vm3, %v2477_v19  ;;  %9042 = vmatprep.mubr.msk.f32.mxu0 %vm619_vm2, %v610_v20  ;;  %v11394_v50 = vpop.permute.xlu0 %3956  ;;  %v10140_v60 = vcvt.f32.s32 %v10139_v44 }
 0x266   : > { %v10195_v8 = vpop.eup %10194  ;;  %10212 = vrcp.f32 %v2099_v10  ;;  %9060 = vmatmul.mubr.msk.f32.vlgmr.msra.gmra.mrb[0].mxu1 %vm2609_vm3, %v2478_v58  ;;  %4196 = vperm.xlu0 %10168, %v10132_v30   ;;  %v10141_v10 = vtrunc.f32 %v11392_v33  ;;  %v2480_v58 = vmul.f32 %v10193_v56, %v11289_v22  ;;  %vm4213_vm4 = vcmp.eq.s32.totalorder %v11388_v21, %v11125_v42 }
 0x267   : > { %v10197_v54 = vpop.eup %10196  ;;  %v2479_v19 = vmul.f32 %v10195_v8, %v11292_v25  ;;  %10214 = vrcp.f32 %v2102_v4  ;;  %v11397_v20 = vpop.f32.mrb[16].mxu0  ;;  %vm4214_vm5 = vcmp.eq.s32.totalorder %v11388_v21, %v11133_v53  ;;  %vm4215_vm7 = vcmp.eq.s32.totalorder %v11388_v21, %v11127_v43 }
 0x268   : > { %v10199_v59 = vpop.eup %10198  ;;  %v2101_v36 = vadd.f32 1.0, %v10197_v54  ;;  %10216 = vpow2.f32 %v7470_v51  ;;  %v7472_v57 = vmul.f32 -1.442695, %v11397_v20  ;;  %v11402_v46 = vpop.f32.mrb[17].mxu0  ;;  %9043 = vmatmul.mubr.msk.f32.gmra.mrb[122].mxu0 %vm619_vm2, %v11354_v49  ;;  %4205 = vperm.xlu1 %10169, %v10138_v2   ;;  %vm4216_vm8 = vcmp.eq.s32.totalorder %v11388_v21, %v11137_v55 }
 0x269   : > { %v11406_v25 = vpop.permute.xlu1 %3959  ;;  %v10201_v30 = vpop.eup %10200  ;;  %v2104_v4 = vadd.f32 1.0, %v10199_v59  ;;  %10218 = vpow2.f32 %v7469_v32  ;;  %v7471_v16 = vmul.f32 -1.442695, %v11402_v46  ;;  %9062 = vmatprep.mubr.msk.f32.mxu1 %vm2609_vm3, %v2479_v19  ;;  %9045 = vmatprep.mubr.msk.f32.mxu0 %vm619_vm2, %v612_v41  ;;  %v10142_v32 = vcvt.f32.s32 %v10141_v10 }
 0x26a   : > { %v10203_v22 = vpop.eup %10202  ;;  %10220 = vrcp.f32 %v2101_v36  ;;  %9063 = vmatmul.mubr.msk.f32.gmra.mrb[2].mxu1 %vm2609_vm3, %v2480_v58  ;;  %4202 = vperm.xlu0 %10168, %v10136_v37   ;;  %v2482_v41 = vmul.f32 %v10201_v30, %v11301_v45  ;;  %v11423_v44 = vpop.permute.xlu0 %3962  ;;  %v10854_v37 = vmov 0.0   ;;  %vm4217_vm9 = vcmp.eq.s32.totalorder %v11388_v21, %v11141_v61 }
 0x26b   : > { %v10205_v49 = vpop.eup %10204  ;;  %v2481_v51 = vmul.f32 %v10203_v22, %v11304_v47  ;;  %10222 = vrcp.f32 %v2104_v4  ;;  %v11415_v56 = vpop.f32.mrb[18].mxu0  ;;  %v7711_v2 = vsel %vm4213_vm4, 1.0, %v10854_v37  ;;  %v7712_v22 = vsel %vm4214_vm5, 1.0, %v10854_v37 }
 0x26c   : > { %v10207_v8 = vpop.eup %10206  ;;  %v2103_v59 = vadd.f32 1.0, %v10205_v49  ;;  %10224 = vpow2.f32 %v7472_v57  ;;  %v7474_v54 = vmul.f32 -1.442695, %v11415_v56  ;;  %v11419_v19 = vpop.f32.mrb[19].mxu0  ;;  %9046 = vmatmul.mubr.msk.f32.gmra.mrb[124].mxu0 %vm619_vm2, %v11369_v27  ;;  %4211 = vperm.xlu1 %10169, %v10142_v32   ;;  %vm4218_vm10 = vcmp.eq.s32.totalorder %v11388_v21, %v11145_v63 }
 0x26d   : > { %v2106_v47 = vadd.f32 1.0, %v10207_v8  ;;  %10226 = vpow2.f32 %v7471_v16  ;;  %9065 = vmatprep.mubr.msk.f32.mxu1 %vm2609_vm3, %v2481_v51  ;;  %9048 = vmatprep.mubr.msk.f32.mxu0 %vm619_vm2, %v614_v0  ;;  %v10209_v57 = vpop.eup %10208  ;;  %v7473_v27 = vmul.f32 -1.442695, %v11419_v19  ;;  %v11435_v45 = vpop.permute.xlu1 %3965  ;;  %v7716_v55 = vsel %vm4218_vm10, 1.0, %v10854_v37 }
 0x26e   : > { %10228 = vrcp.f32 %v2103_v59  ;;  %9066 = vmatmul.mubr.msk.f32.gmra.mrb[4].mxu1 %vm2609_vm3, %v2482_v41  ;;  %4208 = vperm.xlu0 %10168, %v10140_v60   ;;  %v10211_v42 = vpop.eup %10210  ;;  %v2105_v10 = vadd.f32 1.0, %v10209_v57  ;;  %v7714_v57 = vsel %vm4216_vm8, 1.0, %v10854_v37  ;;  %vm4219_vm11 = vcmp.eq.s32.totalorder %v11388_v21, %v11149_v5 }
 0x26f   : > { %10230 = vrcp.f32 %v2106_v47  ;;  %v11439_v0 = vpop.f32.mrb[20].mxu0  ;;  %v2484_v51 = vmul.f32 %v10211_v42, %v11313_v11  ;;  %vm4220_vm12 = vcmp.eq.s32.totalorder %v11388_v21, %v11153_v7  ;;  %vm4221_vm13 = vcmp.eq.s32.totalorder %v11388_v21, %v11157_v13 }
 0x270   : > { %v10213_v58 = vpop.eup %10212  ;;  %10232 = vpow2.f32 %v7474_v54  ;;  %v7476_v36 = vmul.f32 -1.442695, %v11439_v0  ;;  %v11442_v30 = vpop.f32.mrb[21].mxu0  ;;  %9049 = vmatmul.mubr.msk.f32.gmra.mrb[126].mxu0 %vm619_vm2, %v11392_v33  ;;  %v7713_v33 = vsel %vm4215_vm7, 1.0, %v10854_v37  ;;  %v7719_v5 = vsel %vm4221_vm13, 1.0, %v10854_v37 }
 0x271   : > { %v10215_v4 = vpop.eup %10214  ;;  %v2483_v16 = vmul.f32 %v10213_v58, %v11317_v23  ;;  %10234 = vrcp.f32 %v2105_v10  ;;  %v7475_v60 = vmul.f32 -1.442695, %v11442_v30  ;;  %9255 = vmatprep.mubr.msk.f32.mxu0 %vm4599_vm6, %v7711_v2  ;;  %v11460_v23 = vpop.permute.xlu0 %3968  ;;  %v7715_v58 = vsel %vm4217_vm9, 1.0, %v10854_v37 }
 0x272   : > { %v10217_v49 = vpop.eup %10216  ;;  %10236 = vpow2.f32 %v7473_v27  ;;  %v11474_v54 = vpop.permute.xlu1 %3971  ;;  %v2486_v10 = vmul.f32 %v10215_v4, %v11327_v15  ;;  %vm4222_vm14 = vcmp.eq.s32.totalorder %v11388_v21, %v11161_v17  ;;  %vm4223_vm15 = vcmp.eq.s32.totalorder %v11388_v21, %v11167_v24 }
 0x273   : > { %v10219_v53 = vpop.eup %10218  ;;  %v2108_v32 = vadd.f32 1.0, %v10217_v49  ;;  %10238 = vpow2.f32 %v7476_v36  ;;  %9068 = vmatprep.mubr.msk.f32.mxu1 %vm2609_vm3, %v2483_v16  ;;  %v11465_v11 = vpop.f32.mrb[22].mxu0  ;;  %vm4224_vm0 = vcmp.eq.s32.totalorder %v11388_v21, %v11171_v28  ;;  %vm4225_vm1 = vcmp.eq.s32.totalorder %v11388_v21, %v11177_v35 }
 0x274   : > { %v10221_v8 = vpop.eup %10220  ;;  %v2107_v41 = vadd.f32 1.0, %v10219_v53  ;;  %10240 = vpow2.f32 %v7475_v60  ;;  %9069 = vmatmul.mubr.msk.f32.gmra.mrb[6].mxu1 %vm2609_vm3, %v2484_v51  ;;  %v7478_v43 = vmul.f32 -1.442695, %v11465_v11  ;;  %v11471_v59 = vpop.f32.mrb[23].mxu0  ;;  %9256 = vmatmul.mubr.msk.f32.vlgmr.msra.gmra.mrb[128].mxu0 %vm4599_vm6, %v7712_v22  ;;  %v7723_v28 = vsel %vm4225_vm1, 1.0, %v10854_v37 }
 0x275   : > { %v10223_v47 = vpop.eup %10222  ;;  %v2485_v2 = vmul.f32 %v10221_v8, %v11330_v29  ;;  %10242 = vrcp.f32 %v2108_v32  ;;  %v7477_v27 = vmul.f32 -1.442695, %v11471_v59  ;;  %9258 = vmatprep.mubr.msk.f32.mxu0 %vm4599_vm6, %v7713_v33  ;;  %v11504_v22 = vpop.permute.xlu0 %3974  ;;  %v7717_v32 = vsel %vm4219_vm11, 1.0, %v10854_v37 }
 0x276   : > { %v10225_v42 = vpop.eup %10224  ;;  %10244 = vrcp.f32 %v2107_v41  ;;  %v2488_v53 = vmul.f32 %v10223_v47, %v11342_v34  ;;  %v11516_v8 = vpop.permute.xlu1 %3977  ;;  %vm4226_vm4 = vcmp.eq.s32.totalorder %v11388_v21, %v11181_v39  ;;  %vm4227_vm5 = vcmp.eq.s32.totalorder %v11388_v21, %v11187_v48 }
 0x277   : > { %v10227_v29 = vpop.eup %10226  ;;  %v2110_v36 = vadd.f32 1.0, %v10225_v42  ;;  %10246 = vpow2.f32 %v7478_v43  ;;  %9071 = vmatprep.mubr.msk.f32.mxu1 %vm2609_vm3, %v2485_v2  ;;  %v11495_v15 = vpop.f32.mrb[24].mxu0  ;;  %v7718_v43 = vsel %vm4220_vm12, 1.0, %v10854_v37  ;;  %vm4228_vm7 = vcmp.eq.s32.totalorder %v11388_v21, %v11191_v52 }
 0x278   : > { %v10229_v4 = vpop.eup %10228  ;;  %v2109_v16 = vadd.f32 1.0, %v10227_v29  ;;  %10248 = vpow2.f32 %v7477_v27  ;;  %9072 = vmatmul.mubr.msk.f32.gmra.mrb[8].mxu1 %vm2609_vm3, %v2486_v10  ;;  %v7480_v61 = vmul.f32 -1.442695, %v11495_v15  ;;  %v11501_v63 = vpop.f32.mrb[25].mxu0  ;;  %9259 = vmatmul.mubr.msk.f32.gmra.mrb[130].mxu0 %vm4599_vm6, %v7714_v57  ;;  %vm4229_vm8 = vcmp.eq.s32.totalorder %v11388_v21, %v11197_v62 }
 0x279   : > { %v10231_v60 = vpop.eup %10230  ;;  %v2487_v49 = vmul.f32 %v10229_v4, %v11345_v38  ;;  %10250 = vrcp.f32 %v2110_v36  ;;  %v7479_v51 = vmul.f32 -1.442695, %v11501_v63  ;;  %9261 = vmatprep.mubr.msk.f32.mxu0 %vm4599_vm6, %v7715_v58  ;;  %v11543_v29 = vpop.permute.xlu0 %3980  ;;  %vm4230_vm9 = vcmp.eq.s32.totalorder %v11388_v21, %v11201_v3 }
 0x27a   : > { %v10233_v33 = vpop.eup %10232  ;;  %10252 = vrcp.f32 %v2109_v16  ;;  %vm4231_vm10 = vcmp.eq.s32.totalorder %v11388_v21, %v11207_v12  ;;  %vm4232_vm11 = vcmp.eq.s32.totalorder %v11388_v21, %v11211_v18  ;;  %vm4233_vm12 = vcmp.eq.s32.totalorder %v11388_v21, %v11217_v26 }
 0x27b   : > { %v10235_v38 = vpop.eup %10234  ;;  %v2112_v41 = vadd.f32 1.0, %v10233_v33  ;;  %10254 = vpow2.f32 %v7480_v61  ;;  %9074 = vmatprep.mubr.msk.f32.mxu1 %vm2609_vm3, %v2487_v49  ;;  %v11523_v2 = vpop.f32.mrb[26].mxu0  ;;  %v7721_v61 = vsel %vm4223_vm15, 1.0, %v10854_v37  ;;  %vm4234_vm13 = vcmp.eq.s32.totalorder %v11388_v21, %v11221_v31 }
 0x27c   : > { %v10237_v34 = vpop.eup %10236  ;;  %v2489_v47 = vmul.f32 %v10235_v38, %v11360_v9  ;;  %10256 = vpow2.f32 %v7479_v51  ;;  %9075 = vmatmul.mubr.msk.f32.gmra.mrb[10].mxu1 %vm2609_vm3, %v2488_v53  ;;  %v7482_v57 = vmul.f32 -1.442695, %v11523_v2  ;;  %v11532_v7 = vpop.f32.mrb[27].mxu0  ;;  %9262 = vmatmul.mubr.msk.f32.gmra.mrb[132].mxu0 %vm4599_vm6, %v7716_v55  ;;  %v2490_v9 = vmul.f32 %v10231_v60, %v11356_v1 }
 0x27d   : > { %v10239_v27 = vpop.eup %10238  ;;  %10258 = vrcp.f32 %v2112_v41  ;;  %v2111_v42 = vadd.f32 1.0, %v10237_v34  ;;  %9264 = vmatprep.mubr.msk.f32.mxu0 %vm4599_vm6, %v7717_v32  ;;  %v7481_v58 = vmul.f32 -1.442695, %v11532_v7  ;;  %v7720_v1 = vsel %vm4222_vm14, 1.0, %v10854_v37  ;;  %v11560_v51 = vpop.permute.xlu1 %3983  ;;  %v5690_v41 = vld [vmem:[%s14023_s5 + $0x8] sm:$0xff] }
 0x27e   : > { %v10241_v13 = vpop.eup %10240  ;;  %v2114_v10 = vadd.f32 1.0, %v10239_v27  ;;  %10260 = vpow2.f32 %v7482_v57  ;;  %9077 = vmatprep.mubr.msk.f32.mxu1 %vm2609_vm3, %v2489_v47  ;;  %v7722_v57 = vsel %vm4224_vm0, 1.0, %v10854_v37  ;;  %vm4235_vm14 = vcmp.eq.s32.totalorder %v11388_v21, %v11227_v40 }
 0x27f   : > { %v10243_v36 = vpop.eup %10242  ;;  %10262 = vrcp.f32 %v2111_v42  ;;  %v2113_v55 = vadd.f32 1.0, %v10241_v13  ;;  %v11545_v4 = vpop.f32.mrb[28].mxu0 }
 0x280   : > { %v10245_v16 = vpop.eup %10244  ;;  %10264 = vrcp.f32 %v2114_v10  ;;  %9078 = vmatmul.mubr.msk.f32.gmra.mrb[12].mxu1 %vm2609_vm3, %v2490_v9  ;;  %v7484_v60 = vmul.f32 -1.442695, %v11545_v4  ;;  %v11557_v49 = vpop.f32.mrb[29].mxu0  ;;  %9265 = vmatmul.mubr.msk.f32.gmra.mrb[134].mxu0 %vm4599_vm6, %v7718_v43  ;;  %v2492_v24 = vmul.f32 %v10243_v36, %v11373_v6 }
 0x281   : > { %v10247_v33 = vpop.eup %10246  ;;  %v2491_v53 = vmul.f32 %v10245_v16, %v11379_v14  ;;  %10266 = vrcp.f32 %v2113_v55  ;;  %9267 = vmatprep.mubr.msk.f32.mxu0 %vm4599_vm6, %v7719_v5  ;;  %v7483_v38 = vmul.f32 -1.442695, %v11557_v49  ;;  %v5689_v14 = vld [vmem:[%s14023_s5] sm:$0xff]  ;;  %v11588_v13 = vpop.permute.xlu0 %3986 }
 0x282   : > { %v10249_v17 = vpop.eup %10248  ;;  %v2116_v32 = vadd.f32 1.0, %v10247_v33  ;;  %10268 = vpow2.f32 %v7481_v58  ;;  %v9715_v6 = vpack.c.bf16 %v5690_v41, %v5689_v14  ;;  %v7725_v41 = vsel %vm4227_vm5, 1.0, %v10854_v37 }
 0x283   : > { %v10251_v43 = vpop.eup %10250  ;;  %v2115_v34 = vadd.f32 1.0, %v10249_v17  ;;  %10270 = vpow2.f32 %v7484_v60  ;;  %9080 = vmatprep.mubr.msk.f32.mxu1 %vm2609_vm3, %v2491_v53  ;;  %v11577_v47 = vpop.f32.mrb[30].mxu0 }
 0x284   : > { %v10253_v5 = vpop.eup %10252  ;;  %10272 = vrcp.f32 %v2116_v32  ;;  %9081 = vmatmul.mubr.msk.f32.gmra.mrb[14].mxu1 %vm2609_vm3, %v2492_v24  ;;  %v7486_v27 = vmul.f32 -1.442695, %v11577_v47  ;;  %v11585_v42 = vpop.f32.mrb[31].mxu0  ;;  %9268 = vmatmul.mubr.msk.f32.gmra.mrb[136].mxu0 %vm4599_vm6, %v7720_v1  ;;  %v2494_v36 = vmul.f32 %v10251_v43, %v11397_v20  ;;  %v7724_v24 = vsel %vm4226_vm4, 1.0, %v10854_v37 }
 0x285   : > { %v10255_v9 = vpop.eup %10254  ;;  %v2493_v10 = vmul.f32 %v10253_v5, %v11402_v46  ;;  %10274 = vrcp.f32 %v2115_v34  ;;  %9270 = vmatprep.mubr.msk.f32.mxu0 %vm4599_vm6, %v7721_v61  ;;  %9716 = vmatprep.subr.bf16.mxu1 %v9715_v6  ;;  %v7485_v16 = vmul.f32 -1.442695, %v11585_v42  ;;  %v11600_v46 = vpop.permute.xlu1 %3989 }
 0x286   : > { %v10257_v58 = vpop.eup %10256  ;;  %v2118_v55 = vadd.f32 1.0, %v10255_v9  ;;  %10276 = vpow2.f32 %v7483_v38  ;;  %9718 = vmatpush3.bf16.msra.mxu1 %v9715_v6  ;;  %v11625_v43 = vpop.permute.xlu0 %3992 }
 0x287   : > { %v10259_v1 = vpop.eup %10258  ;;  %v2117_v60 = vadd.f32 1.0, %v10257_v58  ;;  %10278 = vpow2.f32 %v7486_v27  ;;  %9083 = vmatprep.mubr.msk.f32.mxu1 %vm2609_vm3, %v2493_v10  ;;  %v11605_v35 = vpop.f32.mrb[32].mxu0  ;;  %v7726_v10 = vsel %vm4228_vm7, 1.0, %v10854_v37 }
 0x288   : > { %v10261_v61 = vpop.eup %10260  ;;  %10280 = vrcp.f32 %v2118_v55  ;;  %9084 = vmatmul.mubr.msk.f32.gmra.mrb[16].mxu1 %vm2609_vm3, %v2494_v36  ;;  %v7488_v20 = vmul.f32 -1.442695, %v11605_v35  ;;  %v11609_v33 = vpop.f32.mrb[33].mxu0  ;;  %9271 = vmatmul.mubr.msk.f32.gmra.mrb[138].mxu0 %vm4599_vm6, %v7722_v57  ;;  %v2496_v34 = vmul.f32 %v10259_v1, %v11415_v56  ;;  %v7727_v36 = vsel %vm4229_vm8, 1.0, %v10854_v37 }
 0x289   : > { %v10263_v53 = vpop.eup %10262  ;;  %10282 = vrcp.f32 %v2117_v60  ;;  %v2120_v17 = vadd.f32 1.0, %v10261_v61  ;;  %v7487_v32 = vmul.f32 -1.442695, %v11609_v33  ;;  %9273 = vmatprep.mubr.msk.f32.mxu0 %vm4599_vm6, %v7723_v28  ;;  %v11638_v27 = vpop.permute.xlu1 %3995 }
 0x28a   : > { %v10265_v38 = vpop.eup %10264  ;;  %v2495_v14 = vmul.f32 %v10263_v53, %v11419_v19  ;;  %10284 = vpow2.f32 %v7485_v16 }
 0x28b   : > { %v10267_v39 = vpop.eup %10266  ;;  %10286 = vrcp.f32 %v2120_v17  ;;  %v11630_v6 = vpop.f32.mrb[34].mxu0  ;;  %v2498_v55 = vmul.f32 %v10265_v38, %v11439_v0  ;;  %v7728_v17 = vsel %vm4230_vm9, 1.0, %v10854_v37  ;;  %v7729_v38 = vsel %vm4231_vm10, 1.0, %v10854_v37 }
 0x28c   : > { %v10269_v19 = vpop.eup %10268  ;;  %v2497_v5 = vmul.f32 %v10267_v39, %v11442_v30  ;;  %10288 = vpow2.f32 %v7488_v20  ;;  %9086 = vmatprep.mubr.msk.f32.mxu1 %vm2609_vm3, %v2495_v14  ;;  %v7490_v48 = vmul.f32 -1.442695, %v11630_v6  ;;  %v11635_v57 = vpop.f32.mrb[35].mxu0  ;;  %9274 = vmatmul.mubr.msk.f32.gmra.mrb[140].mxu0 %vm4599_vm6, %v7724_v24 }
 0x28d   : > { %v10271_v56 = vpop.eup %10270  ;;  %v2119_v9 = vadd.f32 1.0, %v10269_v19  ;;  %10290 = vpow2.f32 %v7487_v32  ;;  %9087 = vmatmul.mubr.msk.f32.gmra.mrb[18].mxu1 %vm2609_vm3, %v2496_v34  ;;  %v7489_v30 = vmul.f32 -1.442695, %v11635_v57  ;;  %9276 = vmatprep.mubr.msk.f32.mxu0 %vm4599_vm6, %v7725_v41  ;;  %v11664_v20 = vpop.permute.xlu0 %3998 }
 0x28e   : > { %v10273_v28 = vpop.eup %10272  ;;  %v2122_v58 = vadd.f32 1.0, %v10271_v56  ;;  %10292 = vpow2.f32 %v7490_v48  ;;  %9089 = vmatprep.mubr.msk.f32.mxu1 %vm2609_vm3, %v2497_v5  ;;  %v11680_v3 = vpop.permute.xlu1 %4001 }
 0x28f   : > { %v10275_v52 = vpop.eup %10274  ;;  %10294 = vrcp.f32 %v2119_v9  ;;  %v11657_v16 = vpop.f32.mrb[36].mxu0  ;;  %v2500_v41 = vmul.f32 %v10273_v28, %v11465_v11  ;;  %v7730_v11 = vsel %vm4232_vm11, 1.0, %v10854_v37 }
 0x290   : > { %v10277_v1 = vpop.eup %10276  ;;  %v2499_v60 = vmul.f32 %v10275_v52, %v11471_v59  ;;  %10296 = vrcp.f32 %v2122_v58  ;;  %v7492_v62 = vmul.f32 -1.442695, %v11657_v16  ;;  %v11661_v61 = vpop.f32.mrb[37].mxu0  ;;  %9277 = vmatmul.mubr.msk.f32.gmra.mrb[142].mxu0 %vm4599_vm6, %v7726_v10  ;;  %v7731_v10 = vsel %vm4233_vm12, 1.0, %v10854_v37 }
 0x291   : > { %v10279_v53 = vpop.eup %10278  ;;  %v2121_v0 = vadd.f32 1.0, %v10277_v1  ;;  %10298 = vpow2.f32 %v7489_v30  ;;  %9090 = vmatmul.mubr.msk.f32.gmra.mrb[20].mxu1 %vm2609_vm3, %v2498_v55  ;;  %v7491_v59 = vmul.f32 -1.442695, %v11661_v61  ;;  %9279 = vmatprep.mubr.msk.f32.mxu0 %vm4599_vm6, %v7727_v36  ;;  %v11706_v18 = vpop.permute.xlu0 %4004 }
 0x292   : > { %v10281_v24 = vpop.eup %10280  ;;  %v2124_v32 = vadd.f32 1.0, %v10279_v53  ;;  %10300 = vpow2.f32 %v7492_v62  ;;  %9092 = vmatprep.mubr.msk.f32.mxu1 %vm2609_vm3, %v2499_v60  ;;  %v11717_v60 = vpop.permute.xlu1 %4007  ;;  %v7732_v53 = vsel %vm4234_vm13, 1.0, %v10854_v37 }
 0x293   : > { %v10283_v14 = vpop.eup %10282  ;;  %10302 = vrcp.f32 %v2121_v0  ;;  %v11685_v39 = vpop.f32.mrb[38].mxu0  ;;  %v2502_v28 = vmul.f32 %v10281_v24, %v11495_v15  ;;  %v7733_v24 = vsel %vm4235_vm14, 1.0, %v10854_v37 }
 0x294   : > { %v10285_v34 = vpop.eup %10284  ;;  %v2501_v12 = vmul.f32 %v10283_v14, %v11501_v63  ;;  %10304 = vrcp.f32 %v2124_v32  ;;  %v7494_v19 = vmul.f32 -1.442695, %v11685_v39  ;;  %v11689_v5 = vpop.f32.mrb[39].mxu0  ;;  %9280 = vmatmul.mubr.msk.f32.gmra.mrb[144].mxu0 %vm4599_vm6, %v7728_v17  ;;  %v14069_v32 = vld [vmem:[#allocation8_spill] sm:$0xff]  ;;  %v14070_v14 = vld [vmem:[#allocation9_spill] sm:$0xff] }
 0x295   : > { %v10287_v48 = vpop.eup %10286  ;;  %v2123_v56 = vadd.f32 1.0, %v10285_v34  ;;  %10306 = vpow2.f32 %v7491_v59  ;;  %9093 = vmatmul.mubr.msk.f32.gmra.mrb[22].mxu1 %vm2609_vm3, %v2500_v41  ;;  %v7493_v9 = vmul.f32 -1.442695, %v11689_v5  ;;  %9282 = vmatprep.mubr.msk.f32.mxu0 %vm4599_vm6, %v7729_v38  ;;  %vm4236_vm15 = vcmp.eq.s32.totalorder %v11388_v21, %v14069_v32 }
 0x296   : > { %v10289_v63 = vpop.eup %10288  ;;  %10308 = vpow2.f32 %v7494_v19  ;;  %9095 = vmatprep.mubr.msk.f32.mxu1 %vm2609_vm3, %v2501_v12  ;;  %v2504_v38 = vmul.f32 %v10287_v48, %v11523_v2  ;;  %vm4237_vm0 = vcmp.eq.s32.totalorder %v11388_v21, %v14070_v14  ;;  %v11743_v19 = vpop.permute.xlu0 %4010 }
 0x297   : > { %v10291_v30 = vpop.eup %10290  ;;  %10310 = vrcp.f32 %v2123_v56  ;;  %v2126_v58 = vadd.f32 1.0, %v10289_v63  ;;  %v11711_v36 = vpop.f32.mrb[40].mxu0  ;;  %v7734_v56 = vsel %vm4236_vm15, 1.0, %v10854_v37 }
 0x298   : > { %v10293_v26 = vpop.eup %10292  ;;  %v2125_v52 = vadd.f32 1.0, %v10291_v30  ;;  %10312 = vpow2.f32 %v7493_v9  ;;  %v7496_v55 = vmul.f32 -1.442695, %v11711_v36  ;;  %v11714_v1 = vpop.f32.mrb[41].mxu0  ;;  %9283 = vmatmul.mubr.msk.f32.gmra.mrb[146].mxu0 %vm4599_vm6, %v7730_v11  ;;  %v14071_v30 = vld [vmem:[#allocation10_spill] sm:$0xff] }
 0x299   : > { %v10295_v62 = vpop.eup %10294  ;;  %10314 = vrcp.f32 %v2126_v58  ;;  %v2128_v15 = vadd.f32 1.0, %v10293_v26  ;;  %9096 = vmatmul.mubr.msk.f32.gmra.mrb[24].mxu1 %vm2609_vm3, %v2502_v28  ;;  %v7495_v0 = vmul.f32 -1.442695, %v11714_v1  ;;  %9285 = vmatprep.mubr.msk.f32.mxu0 %vm4599_vm6, %v7731_v10  ;;  %v7735_v10 = vsel %vm4237_vm0, 1.0, %v10854_v37  ;;  %v11759_v28 = vpop.permute.xlu1 %4013 }
 0x29a   : > { %v10297_v17 = vpop.eup %10296  ;;  %v2503_v59 = vmul.f32 %v10295_v62, %v11532_v7  ;;  %10316 = vrcp.f32 %v2125_v52  ;;  %vm4238_vm1 = vcmp.eq.s32.totalorder %v11388_v21, %v14071_v30  ;;  %v14072_v52 = vld [vmem:[#allocation11_spill] sm:$0xff]  ;;  %v11785_v14 = vpop.permute.xlu0 %4016  ;;  %v14075_v30 = vld [vmem:[#allocation14_spill] sm:$0xff] }
 0x29b   : > { %v10299_v31 = vpop.eup %10298  ;;  %10318 = vrcp.f32 %v2128_v15  ;;  %v11736_v41 = vpop.f32.mrb[42].mxu0  ;;  %v2506_v26 = vmul.f32 %v10297_v17, %v11545_v4  ;;  %vm4239_vm4 = vcmp.eq.s32.totalorder %v11388_v21, %v14072_v52  ;;  %v7736_v4 = vsel %vm4238_vm1, 1.0, %v10854_v37  ;;  %v14073_v17 = vld [vmem:[#allocation12_spill] sm:$0xff] }
 0x29c   : > { %v10301_v34 = vpop.eup %10300  ;;  %v2127_v7 = vadd.f32 1.0, %v10299_v31  ;;  %10320 = vpow2.f32 %v7496_v55  ;;  %9098 = vmatprep.mubr.msk.f32.mxu1 %vm2609_vm3, %v2503_v59  ;;  %v7498_v40 = vmul.f32 -1.442695, %v11736_v41  ;;  %v11740_v12 = vpop.f32.mrb[43].mxu0  ;;  %9286 = vmatmul.mubr.msk.f32.gmra.mrb[148].mxu0 %vm4599_vm6, %v7732_v53  ;;  %vm4240_vm5 = vcmp.eq.s32.totalorder %v11388_v21, %v14073_v17 }
 0x29d   : > { %v10303_v2 = vpop.eup %10302  ;;  %v2130_v48 = vadd.f32 1.0, %v10301_v34  ;;  %10322 = vpow2.f32 %v7495_v0  ;;  %9099 = vmatmul.mubr.msk.f32.gmra.mrb[26].mxu1 %vm2609_vm3, %v2504_v38  ;;  %v7497_v11 = vmul.f32 -1.442695, %v11740_v12  ;;  %9288 = vmatprep.mubr.msk.f32.mxu0 %vm4599_vm6, %v7733_v24  ;;  %v7737_v31 = vsel %vm4239_vm4, 1.0, %v10854_v37 }
 0x29e   : > { %v10305_v9 = vpop.eup %10304  ;;  %v2505_v63 = vmul.f32 %v10303_v2, %v11557_v49  ;;  %10324 = vrcp.f32 %v2127_v7  ;;  %v14074_v2 = vld [vmem:[#allocation13_spill] sm:$0xff]  ;;  %vm4242_vm8 = vcmp.eq.s32.totalorder %v11388_v21, %v14075_v30 }
 0x29f   : > { %v10307_v58 = vpop.eup %10306  ;;  %10326 = vrcp.f32 %v2130_v48  ;;  %v11764_v55 = vpop.f32.mrb[44].mxu0  ;;  %v2508_v7 = vmul.f32 %v10305_v9, %v11577_v47  ;;  %vm4241_vm7 = vcmp.eq.s32.totalorder %v11388_v21, %v14074_v2  ;;  %v7740_v17 = vsel %vm4242_vm8, 1.0, %v10854_v37 }
 0x2a0   : > { %v10309_v49 = vpop.eup %10308  ;;  %v2129_v62 = vadd.f32 1.0, %v10307_v58  ;;  %10328 = vpow2.f32 %v7498_v40  ;;  %9101 = vmatprep.mubr.msk.f32.mxu1 %vm2609_vm3, %v2505_v63  ;;  %v7500_v15 = vmul.f32 -1.442695, %v11764_v55  ;;  %v11768_v53 = vpop.f32.mrb[45].mxu0  ;;  %9289 = vmatmul.mubr.msk.f32.gmra.mrb[150].mxu0 %vm4599_vm6, %v7734_v56  ;;  %v7738_v56 = vsel %vm4240_vm5, 1.0, %v10854_v37 }
 0x2a1   : > { %v10311_v0 = vpop.eup %10310  ;;  %v2132_v59 = vadd.f32 1.0, %v10309_v49  ;;  %10330 = vpow2.f32 %v7497_v11  ;;  %9102 = vmatmul.mubr.msk.f32.gmra.mrb[28].mxu1 %vm2609_vm3, %v2506_v26  ;;  %9291 = vmatprep.mubr.msk.f32.mxu0 %vm4599_vm6, %v7735_v10  ;;  %v7499_v38 = vmul.f32 -1.442695, %v11768_v53  ;;  %v11801_v47 = vpop.permute.xlu1 %4019  ;;  %v7739_v52 = vsel %vm4241_vm7, 1.0, %v10854_v37 }
 0x2a2   : > { %v10313_v24 = vpop.eup %10312  ;;  %v2507_v32 = vmul.f32 %v10311_v0, %v11585_v42  ;;  %10332 = vrcp.f32 %v2129_v62  ;;  %vm4255_vm8 = vcmp.eq.s32.totalorder %v11388_v21, %v11394_v50 }
 0x2a3   : > { %v10315_v34 = vpop.eup %10314  ;;  %10334 = vrcp.f32 %v2132_v59  ;;  %v2131_v40 = vadd.f32 1.0, %v10313_v24  ;;  %v11790_v48 = vpop.f32.mrb[46].mxu0 }
 0x2a4   : > { %v10317_v42 = vpop.eup %10316  ;;  %10336 = vpow2.f32 %v7500_v15  ;;  %9104 = vmatprep.mubr.msk.f32.mxu1 %vm2609_vm3, %v2507_v32  ;;  %v7502_v11 = vmul.f32 -1.442695, %v11790_v48  ;;  %v11798_v63 = vpop.f32.mrb[47].mxu0  ;;  %9292 = vmatmul.mubr.msk.f32.gmra.mrb[152].mxu0 %vm4599_vm6, %v7736_v4  ;;  %v14076_v15 = vld [vmem:[#allocation15_spill] sm:$0xff] }
 0x2a5   : > { %v10319_v9 = vpop.eup %10318  ;;  %v2509_v10 = vmul.f32 %v10317_v42, %v11609_v33  ;;  %10338 = vrcp.f32 %v2131_v40  ;;  %9105 = vmatmul.mubr.msk.f32.gmra.mrb[30].mxu1 %vm2609_vm3, %v2508_v7  ;;  %v7501_v58 = vmul.f32 -1.442695, %v11798_v63  ;;  %9294 = vmatprep.mubr.msk.f32.mxu0 %vm4599_vm6, %v7737_v31  ;;  %v2510_v33 = vmul.f32 %v10315_v34, %v11605_v35  ;;  %v11827_v32 = vpop.permute.xlu0 %4022  ;;  %v14077_v34 = vld [vmem:[#allocation16_spill] sm:$0xff] }
 0x2a6   : > { %v10321_v26 = vpop.eup %10320  ;;  %10340 = vpow2.f32 %v7499_v38  ;;  %vm4243_vm9 = vcmp.eq.s32.totalorder %v11388_v21, %v14076_v15  ;;  %vm4244_vm10 = vcmp.eq.s32.totalorder %v11388_v21, %v14077_v34  ;;  %v11839_v42 = vpop.permute.xlu1 %4025 }
 0x2a7   : > { %v10323_v49 = vpop.eup %10322  ;;  %v2134_v62 = vadd.f32 1.0, %v10321_v26  ;;  %10342 = vpow2.f32 %v7502_v11  ;;  %9107 = vmatprep.mubr.msk.f32.mxu1 %vm2609_vm3, %v2509_v10  ;;  %v11817_v0 = vpop.f32.mrb[48].mxu0  ;;  %v7741_v2 = vsel %vm4243_vm9, 1.0, %v10854_v37  ;;  %v14078_v10 = vld [vmem:[#allocation17_spill] sm:$0xff]  ;;  %vm4256_vm9 = vcmp.eq.s32.totalorder %v11388_v21, %v11406_v25 }
 0x2a8   : > { %v10325_v59 = vpop.eup %10324  ;;  %v2133_v4 = vadd.f32 1.0, %v10323_v49  ;;  %10344 = vpow2.f32 %v7501_v58  ;;  %v7504_v24 = vmul.f32 -1.442695, %v11817_v0  ;;  %v11824_v35 = vpop.f32.mrb[49].mxu0  ;;  %9295 = vmatmul.mubr.msk.f32.gmra.mrb[154].mxu0 %vm4599_vm6, %v7738_v56  ;;  %v2512_v56 = vmul.f32 %v10319_v9, %v11630_v6 }
 0x2a9   : > { %v10327_v31 = vpop.eup %10326  ;;  %v2511_v38 = vmul.f32 %v10325_v59, %v11635_v57  ;;  %10346 = vrcp.f32 %v2134_v62  ;;  %9108 = vmatmul.mubr.msk.f32.gmra.mrb[32].mxu1 %vm2609_vm3, %v2510_v33  ;;  %v7503_v7 = vmul.f32 -1.442695, %v11824_v35  ;;  %9297 = vmatprep.mubr.msk.f32.mxu0 %vm4599_vm6, %v7739_v52  ;;  %vm4245_vm11 = vcmp.eq.s32.totalorder %v11388_v21, %v14078_v10  ;;  %v14079_v62 = vld [vmem:[#allocation18_spill] sm:$0xff] }
 0x2aa   : > { %v10329_v40 = vpop.eup %10328  ;;  %10348 = vrcp.f32 %v2133_v4  ;;  %v7742_v52 = vsel %vm4244_vm10, 1.0, %v10854_v37  ;;  %vm4246_vm12 = vcmp.eq.s32.totalorder %v11388_v21, %v14079_v62  ;;  %v7743_v4 = vsel %vm4245_vm11, 1.0, %v10854_v37 }
 0x2ab   : > { %v10331_v57 = vpop.eup %10330  ;;  %v2136_v11 = vadd.f32 1.0, %v10329_v40  ;;  %10350 = vpow2.f32 %v7504_v24  ;;  %9110 = vmatprep.mubr.msk.f32.mxu1 %vm2609_vm3, %v2511_v38  ;;  %v11845_v30 = vpop.f32.mrb[50].mxu0  ;;  %v2514_v38 = vmul.f32 %v10327_v31, %v11657_v16  ;;  %vm4257_vm10 = vcmp.eq.s32.totalorder %v11388_v21, %v11423_v44 }
 0x2ac   : > { %v10333_v58 = vpop.eup %10332  ;;  %v2135_v26 = vadd.f32 1.0, %v10331_v57  ;;  %10352 = vpow2.f32 %v7503_v7  ;;  %v7506_v49 = vmul.f32 -1.442695, %v11845_v30  ;;  %v11852_v6 = vpop.f32.mrb[51].mxu0  ;;  %9298 = vmatmul.mubr.msk.f32.gmra.mrb[156].mxu0 %vm4599_vm6, %v7740_v17  ;;  %v14080_v17 = vld [vmem:[#allocation19_spill] sm:$0xff]  ;;  %v7744_v57 = vsel %vm4246_vm12, 1.0, %v10854_v37 }
 0x2ad   : > { %v10335_v9 = vpop.eup %10334  ;;  %v2513_v33 = vmul.f32 %v10333_v58, %v11661_v61  ;;  %10354 = vrcp.f32 %v2136_v11  ;;  %9111 = vmatmul.mubr.msk.f32.gmra.mrb[34].mxu1 %vm2609_vm3, %v2512_v56  ;;  %v7505_v15 = vmul.f32 -1.442695, %v11852_v6  ;;  %9300 = vmatprep.mubr.msk.f32.mxu0 %vm4599_vm6, %v7741_v2  ;;  %vm4247_vm13 = vcmp.eq.s32.totalorder %v11388_v21, %v14080_v17  ;;  %v11867_v61 = vpop.permute.xlu0 %4028  ;;  %v14081_v58 = vld [vmem:[#allocation20_spill] sm:$0xff] }
 0x2ae   : > { %v10337_v59 = vpop.eup %10336  ;;  %10356 = vrcp.f32 %v2135_v26  ;;  %v11882_v16 = vpop.permute.xlu1 %4031  ;;  %vm4248_vm14 = vcmp.eq.s32.totalorder %v11388_v21, %v14081_v58  ;;  %vm4258_vm11 = vcmp.eq.s32.totalorder %v11388_v21, %v11435_v45  ;;  %vm4259_vm12 = vcmp.eq.s32.totalorder %v11388_v21, %v11460_v23 }
 0x2af   : > { %v10339_v24 = vpop.eup %10338  ;;  %v2138_v34 = vadd.f32 1.0, %v10337_v59  ;;  %10358 = vpow2.f32 %v7506_v49  ;;  %9113 = vmatprep.mubr.msk.f32.mxu1 %vm2609_vm3, %v2513_v33  ;;  %v11871_v7 = vpop.f32.mrb[52].mxu0 }
 0x2b0   : > { %v10341_v40 = vpop.eup %10340  ;;  %v2515_v2 = vmul.f32 %v10339_v24, %v11689_v5  ;;  %10360 = vpow2.f32 %v7505_v15  ;;  %v7508_v56 = vmul.f32 -1.442695, %v11871_v7  ;;  %v11879_v11 = vpop.f32.mrb[53].mxu0  ;;  %9301 = vmatmul.mubr.msk.f32.gmra.mrb[158].mxu0 %vm4599_vm6, %v7742_v52  ;;  %v7745_v5 = vsel %vm4247_vm13, 1.0, %v10854_v37  ;;  %v14082_v52 = vld [vmem:[#allocation21_spill] sm:$0xff] }
 0x2b1   : > { %v10343_v31 = vpop.eup %10342  ;;  %10362 = vrcp.f32 %v2138_v34  ;;  %v2137_v10 = vadd.f32 1.0, %v10341_v40  ;;  %9114 = vmatmul.mubr.msk.f32.gmra.mrb[36].mxu1 %vm2609_vm3, %v2514_v38  ;;  %9303 = vmatprep.mubr.msk.f32.mxu0 %vm4599_vm6, %v7743_v4  ;;  %vm4249_vm15 = vcmp.eq.s32.totalorder %v11388_v21, %v14082_v52  ;;  %v7507_v33 = vmul.f32 -1.442695, %v11879_v11  ;;  %v11907_v40 = vpop.permute.xlu0 %4034 }
 0x2b2   : > { %v10345_v26 = vpop.eup %10344  ;;  %v2140_v49 = vadd.f32 1.0, %v10343_v31  ;;  %10364 = vpow2.f32 %v7508_v56  ;;  %9116 = vmatprep.mubr.msk.f32.mxu1 %vm2609_vm3, %v2515_v2  ;;  %v2516_v15 = vmul.f32 %v10335_v9, %v11685_v39  ;;  %v7746_v4 = vsel %vm4248_vm14, 1.0, %v10854_v37  ;;  %v14083_v56 = vld [vmem:[#allocation22_spill] sm:$0xff]  ;;  %v11921_v58 = vpop.permute.xlu1 %4037 }
 0x2b3   : > { %v10347_v62 = vpop.eup %10346  ;;  %10366 = vrcp.f32 %v2137_v10  ;;  %v2139_v59 = vadd.f32 1.0, %v10345_v26  ;;  %v11897_v17 = vpop.f32.mrb[54].mxu0  ;;  %v7747_v2 = vsel %vm4249_vm15, 1.0, %v10854_v37  ;;  %vm4250_vm0 = vcmp.eq.s32.totalorder %v11388_v21, %v14083_v56  ;;  %v14084_v10 = vld [vmem:[#allocation23_spill] sm:$0xff] }
 0x2b4   : > { %v10349_v24 = vpop.eup %10348  ;;  %10368 = vrcp.f32 %v2140_v49  ;;  %v7510_v38 = vmul.f32 -1.442695, %v11897_v17  ;;  %v11904_v34 = vpop.f32.mrb[55].mxu0  ;;  %9304 = vmatmul.mubr.msk.f32.gmra.mrb[160].mxu0 %vm4599_vm6, %v7744_v57  ;;  %vm4251_vm1 = vcmp.eq.s32.totalorder %v11388_v21, %v14084_v10  ;;  %v2518_v49 = vmul.f32 %v10347_v62, %v11711_v36  ;;  %v14086_v10 = vld [vmem:[#allocation25_spill] sm:$0xff] }
 0x2b5   : > { %v10351_v39 = vpop.eup %10350  ;;  %v2517_v9 = vmul.f32 %v10349_v24, %v11714_v1  ;;  %10370 = vrcp.f32 %v2139_v59  ;;  %9117 = vmatmul.mubr.msk.f32.gmra.mrb[38].mxu1 %vm2609_vm3, %v2516_v15  ;;  %9306 = vmatprep.mubr.msk.f32.mxu0 %vm4599_vm6, %v7745_v5  ;;  %v7509_v1 = vmul.f32 -1.442695, %v11904_v34  ;;  %v7748_v36 = vsel %vm4250_vm0, 1.0, %v10854_v37 }
 0x2b6   : > { %v10353_v31 = vpop.eup %10352  ;;  %v2142_v57 = vadd.f32 1.0, %v10351_v39  ;;  %10372 = vpow2.f32 %v7507_v33  ;;  %v7749_v62 = vsel %vm4251_vm1, 1.0, %v10854_v37  ;;  %vm4253_vm5 = vcmp.eq.s32.totalorder %v11388_v21, %v14086_v10 }
 0x2b7   : > { %v10355_v26 = vpop.eup %10354  ;;  %v2141_v52 = vadd.f32 1.0, %v10353_v31  ;;  %10374 = vpow2.f32 %v7510_v38  ;;  %9119 = vmatprep.mubr.msk.f32.mxu1 %vm2609_vm3, %v2517_v9  ;;  %v11925_v15 = vpop.f32.mrb[56].mxu0  ;;  %v14085_v9 = vld [vmem:[#allocation24_spill] sm:$0xff]  ;;  %vm4260_vm13 = vcmp.eq.s32.totalorder %v11388_v21, %v11474_v54  ;;  %vm4261_vm14 = vcmp.eq.s32.totalorder %v11388_v21, %v11504_v22 }
 0x2b8   : > { %v10357_v5 = vpop.eup %10356  ;;  %10376 = vrcp.f32 %v2142_v57  ;;  %v7512_v59 = vmul.f32 -1.442695, %v11925_v15  ;;  %v11928_v24 = vpop.f32.mrb[57].mxu0  ;;  %9307 = vmatmul.mubr.msk.f32.gmra.mrb[162].mxu0 %vm4599_vm6, %v7746_v4  ;;  %vm4252_vm4 = vcmp.eq.s32.totalorder %v11388_v21, %v14085_v9  ;;  %v2520_v57 = vmul.f32 %v10355_v26, %v11736_v41 }
 0x2b9   : > { %v10359_v33 = vpop.eup %10358  ;;  %v2519_v39 = vmul.f32 %v10357_v5, %v11740_v12  ;;  %10378 = vrcp.f32 %v2141_v52  ;;  %9120 = vmatmul.mubr.msk.f32.gmra.mrb[40].mxu1 %vm2609_vm3, %v2518_v49  ;;  %9309 = vmatprep.mubr.msk.f32.mxu0 %vm4599_vm6, %v7747_v2  ;;  %v7511_v12 = vmul.f32 -1.442695, %v11928_v24  ;;  %v11945_v31 = vpop.permute.xlu0 %4040  ;;  %vm4262_vm15 = vcmp.eq.s32.totalorder %v11388_v21, %v11516_v8 }
 0x2ba   : > { %v10361_v38 = vpop.eup %10360  ;;  %v2144_v4 = vadd.f32 1.0, %v10359_v33  ;;  %10380 = vpow2.f32 %v7509_v1  ;;  %v11957_v33 = vpop.permute.xlu1 %4043  ;;  %vm4263_vm0 = vcmp.eq.s32.totalorder %v11388_v21, %v11543_v29  ;;  %vm4264_vm1 = vcmp.eq.s32.totalorder %v11388_v21, %v11560_v51 }
 0x2bb   : > { %v10363_v56 = vpop.eup %10362  ;;  %v2143_v52 = vadd.f32 1.0, %v10361_v38  ;;  %10382 = vpow2.f32 %v7512_v59  ;;  %9122 = vmatprep.mubr.msk.f32.mxu1 %vm2609_vm3, %v2519_v39  ;;  %v11951_v2 = vpop.f32.mrb[58].mxu0  ;;  %v7750_v59 = vsel %vm4252_vm4, 1.0, %v10854_v37  ;;  %vm4265_vm4 = vcmp.eq.s32.totalorder %v11388_v21, %v11588_v13 }
 0x2bc   : > { %v10365_v49 = vpop.eup %10364  ;;  %10384 = vrcp.f32 %v2144_v4  ;;  %v7514_v1 = vmul.f32 -1.442695, %v11951_v2  ;;  %v11954_v5 = vpop.f32.mrb[59].mxu0  ;;  %9310 = vmatmul.mubr.msk.f32.gmra.mrb[164].mxu0 %vm4599_vm6, %v7748_v36  ;;  %v7751_v36 = vsel %vm4253_vm5, 1.0, %v10854_v37  ;;  %vm4266_vm5 = vcmp.eq.s32.totalorder %v11388_v21, %v11600_v46 }
 0x2bd   : > { %v10367_v41 = vpop.eup %10366  ;;  %10386 = vrcp.f32 %v2143_v52  ;;  %v2146_v26 = vadd.f32 1.0, %v10365_v49  ;;  %9123 = vmatmul.mubr.msk.f32.gmra.mrb[42].mxu1 %vm2609_vm3, %v2520_v57  ;;  %v7513_v39 = vmul.f32 -1.442695, %v11954_v5  ;;  %9312 = vmatprep.mubr.msk.f32.mxu0 %vm4599_vm6, %v7749_v62  ;;  %v14087_v52 = vld [vmem:[#allocation26_spill] sm:$0xff]  ;;  %v2522_v49 = vmul.f32 %v10363_v56, %v11764_v55 }
 0x2be   : > { %v10369_v38 = vpop.eup %10368  ;;  %v2521_v4 = vmul.f32 %v10367_v41, %v11768_v53  ;;  %vm4254_vm7 = vcmp.eq.s32.totalorder %v11388_v21, %v14087_v52  ;;  %10388 = vpow2.f32 %v7511_v12  ;;  %v11984_v12 = vpop.permute.xlu0 %4046 }
 0x2bf   : > { %v10371_v9 = vpop.eup %10370  ;;  %10390 = vrcp.f32 %v2146_v26  ;;  %v11976_v62 = vpop.f32.mrb[60].mxu0  ;;  %v7752_v26 = vsel %vm4254_vm7, 1.0, %v10854_v37  ;;  %vm4267_vm7 = vcmp.eq.s32.totalorder %v11388_v21, %v11625_v43 }
 0x2c0   : > { %v10373_v57 = vpop.eup %10372  ;;  %v2523_v53 = vmul.f32 %v10371_v9, %v11798_v63  ;;  %10392 = vpow2.f32 %v7514_v1  ;;  %9125 = vmatprep.mubr.msk.f32.mxu1 %vm2609_vm3, %v2521_v4  ;;  %v7516_v10 = vmul.f32 -1.442695, %v11976_v62  ;;  %v11981_v41 = vpop.f32.mrb[61].mxu0  ;;  %9313 = vmatmul.mubr.msk.f32.gmra.mrb[166].mxu0 %vm4599_vm6, %v7750_v59  ;;  %v7753_v59 = vsel %vm4255_vm8, 1.0, %v10854_v37 }
 0x2c1   : > { %v10375_v55 = vpop.eup %10374  ;;  %v2145_v56 = vadd.f32 1.0, %v10373_v57  ;;  %10394 = vpow2.f32 %v7513_v39  ;;  %9126 = vmatmul.mubr.msk.f32.gmra.mrb[44].mxu1 %vm2609_vm3, %v2522_v49  ;;  %v7515_v63 = vmul.f32 -1.442695, %v11981_v41  ;;  %9315 = vmatprep.mubr.msk.f32.mxu0 %vm4599_vm6, %v7751_v36  ;;  %v12000_v39 = vpop.permute.xlu1 %4049  ;;  %v2524_v9 = vmul.f32 %v10369_v38, %v11790_v48 }
 0x2c2   : > { %v10377_v1 = vpop.eup %10376  ;;  %v2148_v4 = vadd.f32 1.0, %v10375_v55  ;;  %10396 = vpow2.f32 %v7516_v10  ;;  %9128 = vmatprep.mubr.msk.f32.mxu1 %vm2609_vm3, %v2523_v53  ;;  %v7754_v48 = vsel %vm4256_vm9, 1.0, %v10854_v37  ;;  %v12026_v25 = vpop.permute.xlu0 %4052  ;;  %vm4268_vm8 = vcmp.eq.s32.totalorder %v11388_v21, %v11638_v27 }
 0x2c3   : > { %v10379_v52 = vpop.eup %10378  ;;  %10398 = vrcp.f32 %v2145_v56  ;;  %v12005_v36 = vpop.f32.mrb[62].mxu0  ;;  %vm4269_vm9 = vcmp.eq.s32.totalorder %v11388_v21, %v11664_v20  ;;  %v7766_v43 = vsel %vm4268_vm8, 1.0, %v10854_v37  ;;  %vm4281_vm8 = vcmp.eq.s32.totalorder %v11388_v21, %v11907_v40 }
 0x2c4   : > { %v10381_v49 = vpop.eup %10380  ;;  %v2525_v50 = vmul.f32 %v10379_v52, %v11824_v35  ;;  %10400 = vrcp.f32 %v2148_v4  ;;  %v7518_v57 = vmul.f32 -1.442695, %v12005_v36  ;;  %v12009_v10 = vpop.f32.mrb[63].mxu0  ;;  %9316 = vmatmul.mubr.msk.f32.gmra.mrb[168].mxu0 %vm4599_vm6, %v7752_v26  ;;  %v7755_v26 = vsel %vm4257_vm10, 1.0, %v10854_v37 }
 0x2c5   : > { %v10383_v53 = vpop.eup %10382  ;;  %v2147_v55 = vadd.f32 1.0, %v10381_v49  ;;  %10402 = vpow2.f32 %v7515_v63  ;;  %9129 = vmatmul.mubr.msk.f32.gmra.mrb[46].mxu1 %vm2609_vm3, %v2524_v9  ;;  %v7517_v38 = vmul.f32 -1.442695, %v12009_v10  ;;  %9318 = vmatprep.mubr.msk.f32.mxu0 %vm4599_vm6, %v7753_v59  ;;  %v2526_v4 = vmul.f32 %v10377_v1, %v11817_v0 }
 0x2c6   : > { %v10385_v35 = vpop.eup %10384  ;;  %v2150_v56 = vadd.f32 1.0, %v10383_v53  ;;  %10404 = vpow2.f32 %v7518_v57  ;;  %9131 = vmatprep.mubr.msk.f32.mxu1 %vm2609_vm3, %v2525_v50  ;;  %v12038_v50 = vpop.permute.xlu1 %4055  ;;  %v7756_v1 = vsel %vm4258_vm11, 1.0, %v10854_v37  ;;  %vm4270_vm10 = vcmp.eq.s32.totalorder %v11388_v21, %v11680_v3 }
 0x2c7   : > { %v10387_v63 = vpop.eup %10386  ;;  %10406 = vrcp.f32 %v2147_v55  ;;  %v12031_v59 = vpop.f32.mrb[64].mxu0  ;;  %v7757_v55 = vsel %vm4259_vm12, 1.0, %v10854_v37  ;;  %vm4271_vm11 = vcmp.eq.s32.totalorder %v11388_v21, %v11706_v18  ;;  %v7768_v20 = vsel %vm4270_vm10, 1.0, %v10854_v37 }
 0x2c8   : > { %v10389_v52 = vpop.eup %10388  ;;  %v2527_v44 = vmul.f32 %v10387_v63, %v11852_v6  ;;  %10408 = vrcp.f32 %v2150_v56  ;;  %v7520_v9 = vmul.f32 -1.442695, %v12031_v59  ;;  %v12035_v49 = vpop.f32.mrb[65].mxu0  ;;  %9319 = vmatmul.mubr.msk.f32.gmra.mrb[170].mxu0 %vm4599_vm6, %v7754_v48  ;;  %v2528_v48 = vmul.f32 %v10385_v35, %v11845_v30 }
 0x2c9   : > { %v10391_v57 = vpop.eup %10390  ;;  %v2149_v0 = vadd.f32 1.0, %v10389_v52  ;;  %10410 = vpow2.f32 %v7517_v38  ;;  %9132 = vmatmul.mubr.msk.f32.gmra.mrb[48].mxu1 %vm2609_vm3, %v2526_v4  ;;  %v7519_v6 = vmul.f32 -1.442695, %v12035_v49  ;;  %9321 = vmatprep.mubr.msk.f32.mxu0 %vm4599_vm6, %v7755_v26  ;;  %v12063_v52 = vpop.permute.xlu0 %4058  ;;  %v7758_v35 = vsel %vm4260_vm13, 1.0, %v10854_v37 }
 0x2ca   : > { %v10393_v53 = vpop.eup %10392  ;;  %10412 = vpow2.f32 %v7520_v9  ;;  %9134 = vmatprep.mubr.msk.f32.mxu1 %vm2609_vm3, %v2527_v44  ;;  %v12079_v54 = vpop.permute.xlu1 %4061  ;;  %vm4272_vm12 = vcmp.eq.s32.totalorder %v11388_v21, %v11717_v60  ;;  %vm4273_vm13 = vcmp.eq.s32.totalorder %v11388_v21, %v11743_v19  ;;  %v5691_v60 = vld [vmem:[%s14023_s5 + $0x10] sm:$0xff]  ;;  %vm4283_vm10 = vcmp.eq.s32.totalorder %v11388_v21, %v11945_v31 }
 0x2cb   : > { %v10395_v45 = vpop.eup %10394  ;;  %10414 = vrcp.f32 %v2149_v0  ;;  %v2152_v38 = vadd.f32 1.0, %v10393_v53  ;;  %v12057_v56 = vpop.f32.mrb[66].mxu0  ;;  %v7770_v18 = vsel %vm4272_vm12, 1.0, %v10854_v37  ;;  %9451 = vmatprep.subr.mxu1 %v5691_v60  ;;  %vm4285_vm12 = vcmp.eq.s32.totalorder %v11388_v21, %v11984_v12 }
 0x2cc   : > { %v10397_v26 = vpop.eup %10396  ;;  %v2151_v63 = vadd.f32 1.0, %v10395_v45  ;;  %10416 = vpow2.f32 %v7519_v6  ;;  %v7522_v23 = vmul.f32 -1.442695, %v12057_v56  ;;  %v12060_v4 = vpop.f32.mrb[67].mxu0  ;;  %9322 = vmatmul.mubr.msk.f32.gmra.mrb[172].mxu0 %vm4599_vm6, %v7756_v1  ;;  %v7759_v1 = vsel %vm4261_vm14, 1.0, %v10854_v37  ;;  %9452 = vmatpush3.msra.mxu1 %v5691_v60 }
 0x2cd   : > { %v10399_v44 = vpop.eup %10398  ;;  %10418 = vrcp.f32 %v2152_v38  ;;  %v2154_v30 = vadd.f32 1.0, %v10397_v26  ;;  %9135 = vmatmul.mubr.msk.f32.gmra.mrb[50].mxu1 %vm2609_vm3, %v2528_v48  ;;  %v7521_v9 = vmul.f32 -1.442695, %v12060_v4  ;;  %9324 = vmatprep.mubr.msk.f32.mxu0 %vm4599_vm6, %v7757_v55  ;;  %v2530_v45 = vmul.f32 %v10391_v57, %v11871_v7  ;;  %v12105_v8 = vpop.permute.xlu0 %4064 }
 0x2ce   : > { %v10401_v0 = vpop.eup %10400  ;;  %v2529_v6 = vmul.f32 %v10399_v44, %v11879_v11  ;;  %10420 = vrcp.f32 %v2151_v63  ;;  %v7760_v7 = vsel %vm4262_vm15, 1.0, %v10854_v37  ;;  %vm4274_vm14 = vcmp.eq.s32.totalorder %v11388_v21, %v11759_v28 }
 0x2cf   : > { %v10403_v53 = vpop.eup %10402  ;;  %10422 = vrcp.f32 %v2154_v30  ;;  %v12084_v55 = vpop.f32.mrb[68].mxu0  ;;  %v7761_v30 = vsel %vm4263_vm0, 1.0, %v10854_v37  ;;  %vm4275_vm15 = vcmp.eq.s32.totalorder %v11388_v21, %v11785_v14  ;;  %vm4276_vm0 = vcmp.eq.s32.totalorder %v11388_v21, %v11801_v47 }
 0x2d0   : > { %v10405_v11 = vpop.eup %10404  ;;  %v2153_v48 = vadd.f32 1.0, %v10403_v53  ;;  %10424 = vpow2.f32 %v7522_v23  ;;  %9137 = vmatprep.mubr.msk.f32.mxu1 %vm2609_vm3, %v2529_v6  ;;  %v7524_v22 = vmul.f32 -1.442695, %v12084_v55  ;;  %v12088_v38 = vpop.f32.mrb[69].mxu0  ;;  %9325 = vmatmul.mubr.msk.f32.gmra.mrb[174].mxu0 %vm4599_vm6, %v7758_v35 }
 0x2d1   : > { %v10407_v26 = vpop.eup %10406  ;;  %v2156_v63 = vadd.f32 1.0, %v10405_v11  ;;  %10426 = vpow2.f32 %v7521_v9  ;;  %9138 = vmatmul.mubr.msk.f32.gmra.mrb[52].mxu1 %vm2609_vm3, %v2530_v45  ;;  %v7523_v57 = vmul.f32 -1.442695, %v12088_v38  ;;  %9327 = vmatprep.mubr.msk.f32.mxu0 %vm4599_vm6, %v7759_v1  ;;  %v2532_v9 = vmul.f32 %v10401_v0, %v11897_v17  ;;  %v12117_v45 = vpop.permute.xlu1 %4067 }
 0x2d2   : > { %v10409_v23 = vpop.eup %10408  ;;  %v2531_v44 = vmul.f32 %v10407_v26, %v11904_v34  ;;  %10428 = vrcp.f32 %v2153_v48  ;;  %v7762_v11 = vsel %vm4264_vm1, 1.0, %v10854_v37  ;;  %v7763_v26 = vsel %vm4265_vm4, 1.0, %v10854_v37 }
 0x2d3   : > { %v10411_v35 = vpop.eup %10410  ;;  %10430 = vrcp.f32 %v2156_v63  ;;  %v12110_v6 = vpop.f32.mrb[70].mxu0  ;;  %vm4277_vm1 = vcmp.eq.s32.totalorder %v11388_v21, %v11827_v32  ;;  %vm4278_vm4 = vcmp.eq.s32.totalorder %v11388_v21, %v11839_v42 }
 0x2d4   : > { %v10413_v34 = vpop.eup %10412  ;;  %v2155_v1 = vadd.f32 1.0, %v10411_v35  ;;  %10432 = vpow2.f32 %v7524_v22  ;;  %9140 = vmatprep.mubr.msk.f32.mxu1 %vm2609_vm3, %v2531_v44  ;;  %v7526_v29 = vmul.f32 -1.442695, %v12110_v6  ;;  %v12114_v53 = vpop.f32.mrb[71].mxu0  ;;  %9328 = vmatmul.mubr.msk.f32.gmra.mrb[176].mxu0 %vm4599_vm6, %v7760_v7  ;;  %v2534_v7 = vmul.f32 %v10409_v23, %v11925_v15 }
 0x2d5   : > { %v10415_v17 = vpop.eup %10414  ;;  %v2158_v0 = vadd.f32 1.0, %v10413_v34  ;;  %10434 = vpow2.f32 %v7523_v57  ;;  %9141 = vmatmul.mubr.msk.f32.gmra.mrb[54].mxu1 %vm2609_vm3, %v2532_v9  ;;  %9330 = vmatprep.mubr.msk.f32.mxu0 %vm4599_vm6, %v7761_v30  ;;  %v7525_v51 = vmul.f32 -1.442695, %v12114_v53  ;;  %v12147_v15 = vpop.permute.xlu0 %4070 }
 0x2d6   : > { %v10417_v48 = vpop.eup %10416  ;;  %v2533_v22 = vmul.f32 %v10415_v17, %v11928_v24  ;;  %10436 = vrcp.f32 %v2155_v1  ;;  %v7764_v24 = vsel %vm4266_vm5, 1.0, %v10854_v37  ;;  %v7765_v1 = vsel %vm4267_vm7, 1.0, %v10854_v37 }
 0x2d7   : > { %v10419_v63 = vpop.eup %10418  ;;  %10438 = vrcp.f32 %v2158_v0  ;;  %v2157_v57 = vadd.f32 1.0, %v10417_v48  ;;  %v12136_v44 = vpop.f32.mrb[72].mxu0  ;;  %vm4279_vm5 = vcmp.eq.s32.totalorder %v11388_v21, %v11867_v61  ;;  %vm4280_vm7 = vcmp.eq.s32.totalorder %v11388_v21, %v11882_v16 }
 0x2d8   : > { %v10421_v30 = vpop.eup %10420  ;;  %10440 = vpow2.f32 %v7526_v29  ;;  %9143 = vmatprep.mubr.msk.f32.mxu1 %vm2609_vm3, %v2533_v22  ;;  %v7528_v13 = vmul.f32 -1.442695, %v12136_v44  ;;  %v12144_v35 = vpop.f32.mrb[73].mxu0  ;;  %9331 = vmatmul.mubr.msk.f32.gmra.mrb[178].mxu0 %vm4599_vm6, %v7762_v11  ;;  %v2536_v17 = vmul.f32 %v10419_v63, %v11951_v2 }
 0x2d9   : > { %v10423_v23 = vpop.eup %10422  ;;  %v2535_v9 = vmul.f32 %v10421_v30, %v11954_v5  ;;  %10442 = vrcp.f32 %v2157_v57  ;;  %9144 = vmatmul.mubr.msk.f32.gmra.mrb[56].mxu1 %vm2609_vm3, %v2534_v7  ;;  %v7527_v46 = vmul.f32 -1.442695, %v12144_v35  ;;  %9333 = vmatprep.mubr.msk.f32.mxu0 %vm4599_vm6, %v7763_v26  ;;  %v12159_v29 = vpop.permute.xlu1 %4073  ;;  %v7767_v57 = vsel %vm4269_vm9, 1.0, %v10854_v37 }
 0x2da   : > { %v10425_v34 = vpop.eup %10424  ;;  %10444 = vpow2.f32 %v7525_v51  ;;  %v12185_v30 = vpop.permute.xlu0 %4076  ;;  %vm4282_vm9 = vcmp.eq.s32.totalorder %v11388_v21, %v11921_v58 }
 0x2db   : > { %v10427_v5 = vpop.eup %10426  ;;  %v2160_v0 = vadd.f32 1.0, %v10425_v34  ;;  %10446 = vpow2.f32 %v7528_v13  ;;  %9146 = vmatprep.mubr.msk.f32.mxu1 %vm2609_vm3, %v2535_v9  ;;  %v12165_v11 = vpop.f32.mrb[74].mxu0 }
 0x2dc   : > { %v10429_v48 = vpop.eup %10428  ;;  %v2159_v22 = vadd.f32 1.0, %v10427_v5  ;;  %10448 = vpow2.f32 %v7527_v46  ;;  %v7530_v26 = vmul.f32 -1.442695, %v12165_v11  ;;  %v12172_v2 = vpop.f32.mrb[75].mxu0  ;;  %9334 = vmatmul.mubr.msk.f32.gmra.mrb[180].mxu0 %vm4599_vm6, %v7764_v24  ;;  %v2538_v24 = vmul.f32 %v10423_v23, %v11976_v62 }
 0x2dd   : > { %v10431_v51 = vpop.eup %10430  ;;  %v2537_v63 = vmul.f32 %v10429_v48, %v11981_v41  ;;  %10450 = vrcp.f32 %v2160_v0  ;;  %9147 = vmatmul.mubr.msk.f32.gmra.mrb[58].mxu1 %vm2609_vm3, %v2536_v17  ;;  %v7529_v7 = vmul.f32 -1.442695, %v12172_v2  ;;  %9336 = vmatprep.mubr.msk.f32.mxu0 %vm4599_vm6, %v7765_v1  ;;  %v12201_v23 = vpop.permute.xlu1 %4079  ;;  %v7769_v48 = vsel %vm4271_vm11, 1.0, %v10854_v37 }
 0x2de   : > { %v10433_v27 = vpop.eup %10432  ;;  %10452 = vrcp.f32 %v2159_v22  ;;  %v2540_v22 = vmul.f32 %v10431_v51, %v12005_v36  ;;  %v12228_v36 = vpop.permute.xlu0 %4082  ;;  %vm4284_vm11 = vcmp.eq.s32.totalorder %v11388_v21, %v11957_v33 }
 0x2df   : > { %v10435_v41 = vpop.eup %10434  ;;  %v2162_v13 = vadd.f32 1.0, %v10433_v27  ;;  %10454 = vpow2.f32 %v7530_v26  ;;  %9149 = vmatprep.mubr.msk.f32.mxu1 %vm2609_vm3, %v2537_v63  ;;  %v12191_v9 = vpop.f32.mrb[76].mxu0 }
 0x2e0   : > { %v10437_v46 = vpop.eup %10436  ;;  %v2161_v34 = vadd.f32 1.0, %v10435_v41  ;;  %10456 = vpow2.f32 %v7529_v7  ;;  %v7532_v1 = vmul.f32 -1.442695, %v12191_v9  ;;  %v12198_v62 = vpop.f32.mrb[77].mxu0  ;;  %9337 = vmatmul.mubr.msk.f32.gmra.mrb[182].mxu0 %vm4599_vm6, %v7766_v43 }
 0x2e1   : > { %v10439_v5 = vpop.eup %10438  ;;  %v2539_v17 = vmul.f32 %v10437_v46, %v12009_v10  ;;  %10458 = vrcp.f32 %v2162_v13  ;;  %9150 = vmatmul.mubr.msk.f32.gmra.mrb[60].mxu1 %vm2609_vm3, %v2538_v24  ;;  %v7531_v3 = vmul.f32 -1.442695, %v12198_v62  ;;  %9339 = vmatprep.mubr.msk.f32.mxu0 %vm4599_vm6, %v7767_v57  ;;  %v12245_v46 = vpop.permute.xlu1 %4085 }
 0x2e2   : > { %v10441_v0 = vpop.eup %10440  ;;  %10460 = vrcp.f32 %v2161_v34 }
 0x2e3   : > { %v10443_v10 = vpop.eup %10442  ;;  %v2164_v43 = vadd.f32 1.0, %v10441_v0  ;;  %10462 = vpow2.f32 %v7532_v1  ;;  %9152 = vmatprep.mubr.msk.f32.mxu1 %vm2609_vm3, %v2539_v17  ;;  %v12217_v26 = vpop.f32.mrb[78].mxu0  ;;  %v7772_v0 = vsel %vm4274_vm14, 1.0, %v10854_v37  ;;  %vm4287_vm14 = vcmp.eq.s32.totalorder %v11388_v21, %v12026_v25 }
 0x2e4   : > { %v10445_v63 = vpop.eup %10444  ;;  %v2541_v7 = vmul.f32 %v10443_v10, %v12035_v49  ;;  %10464 = vpow2.f32 %v7531_v3  ;;  %v7534_v27 = vmul.f32 -1.442695, %v12217_v26  ;;  %v12225_v57 = vpop.f32.mrb[79].mxu0  ;;  %9340 = vmatmul.mubr.msk.f32.gmra.mrb[184].mxu0 %vm4599_vm6, %v7768_v20  ;;  %v7771_v49 = vsel %vm4273_vm13, 1.0, %v10854_v37 }
 0x2e5   : > { %v10447_v51 = vpop.eup %10446  ;;  %10466 = vrcp.f32 %v2164_v43  ;;  %v2163_v41 = vadd.f32 1.0, %v10445_v63  ;;  %9153 = vmatmul.mubr.msk.f32.gmra.mrb[62].mxu1 %vm2609_vm3, %v2540_v22  ;;  %9342 = vmatprep.mubr.msk.f32.mxu0 %vm4599_vm6, %v7769_v48  ;;  %v7533_v19 = vmul.f32 -1.442695, %v12225_v57  ;;  %v2542_v20 = vmul.f32 %v10439_v5, %v12031_v59  ;;  %v12270_v63 = vpop.permute.xlu0 %4088 }
 0x2e6   : > { %v10449_v24 = vpop.eup %10448  ;;  %v2166_v13 = vadd.f32 1.0, %v10447_v51  ;;  %10468 = vpow2.f32 %v7534_v27  ;;  %9155 = vmatprep.mubr.msk.f32.mxu1 %vm2609_vm3, %v2541_v7  ;;  %v7773_v5 = vsel %vm4275_vm15, 1.0, %v10854_v37  ;;  %v12280_v60 = vpop.permute.xlu1 %4091  ;;  %vm4286_vm13 = vcmp.eq.s32.totalorder %v11388_v21, %v12000_v39 }
 0x2e7   : > { %v10451_v34 = vpop.eup %10450  ;;  %10470 = vrcp.f32 %v2163_v41  ;;  %v2165_v1 = vadd.f32 1.0, %v10449_v24  ;;  %v12248_v17 = vpop.f32.mrb[80].mxu0  ;;  %vm4288_vm15 = vcmp.eq.s32.totalorder %v11388_v21, %v12038_v50 }
 0x2e8   : > { %v10453_v3 = vpop.eup %10452  ;;  %10472 = vrcp.f32 %v2166_v13  ;;  %v7536_v48 = vmul.f32 -1.442695, %v12248_v17  ;;  %v12255_v10 = vpop.f32.mrb[81].mxu0  ;;  %9343 = vmatmul.mubr.msk.f32.gmra.mrb[186].mxu0 %vm4599_vm6, %v7770_v18  ;;  %v2544_v14 = vmul.f32 %v10451_v34, %v12057_v56  ;;  %v7774_v56 = vsel %vm4276_vm0, 1.0, %v10854_v37 }
 0x2e9   : > { %v10455_v22 = vpop.eup %10454  ;;  %v2543_v59 = vmul.f32 %v10453_v3, %v12060_v4  ;;  %10474 = vrcp.f32 %v2165_v1  ;;  %9156 = vmatmul.mubr.msk.f32.gmra.mrb[64].mxu1 %vm2609_vm3, %v2542_v20  ;;  %9345 = vmatprep.mubr.msk.f32.mxu0 %vm4599_vm6, %v7771_v49  ;;  %v7535_v4 = vmul.f32 -1.442695, %v12255_v10  ;;  %vm4289_vm0 = vcmp.eq.s32.totalorder %v11388_v21, %v12063_v52 }
 0x2ea   : > { %v10457_v28 = vpop.eup %10456  ;;  %v2168_v43 = vadd.f32 1.0, %v10455_v22  ;;  %10476 = vpow2.f32 %v7533_v19  ;;  %v7775_v19 = vsel %vm4277_vm1, 1.0, %v10854_v37  ;;  %v12322_v42 = vpop.permute.xlu1 %4097  ;;  %vm4290_vm1 = vcmp.eq.s32.totalorder %v11388_v21, %v12079_v54 }
 0x2eb   : > { %v10459_v7 = vpop.eup %10458  ;;  %v2167_v18 = vadd.f32 1.0, %v10457_v28  ;;  %10478 = vpow2.f32 %v7536_v48  ;;  %9158 = vmatprep.mubr.msk.f32.mxu1 %vm2609_vm3, %v2543_v59  ;;  %v12274_v27 = vpop.f32.mrb[82].mxu0  ;;  %v7776_v28 = vsel %vm4278_vm4, 1.0, %v10854_v37  ;;  %vm4291_vm4 = vcmp.eq.s32.totalorder %v11388_v21, %v12105_v8 }
 0x2ec   : > { %v10461_v51 = vpop.eup %10460  ;;  %10480 = vrcp.f32 %v2168_v43  ;;  %v7538_v41 = vmul.f32 -1.442695, %v12274_v27  ;;  %v12277_v49 = vpop.f32.mrb[83].mxu0  ;;  %9346 = vmatmul.mubr.msk.f32.gmra.mrb[188].mxu0 %vm4599_vm6, %v7772_v0  ;;  %v2546_v47 = vmul.f32 %v10459_v7, %v12084_v55 }
 0x2ed   : > { %v10463_v24 = vpop.eup %10462  ;;  %v2545_v13 = vmul.f32 %v10461_v51, %v12088_v38  ;;  %10482 = vrcp.f32 %v2167_v18  ;;  %9159 = vmatmul.mubr.msk.f32.gmra.mrb[66].mxu1 %vm2609_vm3, %v2544_v14  ;;  %9348 = vmatprep.mubr.msk.f32.mxu0 %vm4599_vm6, %v7773_v5  ;;  %v7537_v38 = vmul.f32 -1.442695, %v12277_v49  ;;  %v12306_v59 = vpop.permute.xlu0 %4094  ;;  %v7777_v14 = vsel %vm4279_vm5, 1.0, %v10854_v37 }
 0x2ee   : > { %v10465_v34 = vpop.eup %10464  ;;  %v2170_v20 = vadd.f32 1.0, %v10463_v24  ;;  %10484 = vpow2.f32 %v7535_v4  ;;  %vm4292_vm5 = vcmp.eq.s32.totalorder %v11388_v21, %v12117_v45 }
 0x2ef   : > { %v10467_v1 = vpop.eup %10466  ;;  %v2169_v3 = vadd.f32 1.0, %v10465_v34  ;;  %10486 = vpow2.f32 %v7538_v41  ;;  %9161 = vmatprep.mubr.msk.f32.mxu1 %vm2609_vm3, %v2545_v13  ;;  %v12300_v32 = vpop.f32.mrb[84].mxu0  ;;  %v7790_v8 = vsel %vm4292_vm5, 1.0, %v10854_v37 }
 0x2f0   : > { %v10469_v0 = vpop.eup %10468  ;;  %10488 = vrcp.f32 %v2170_v20  ;;  %v7540_v48 = vmul.f32 -1.442695, %v12300_v32  ;;  %v12303_v22 = vpop.f32.mrb[85].mxu0  ;;  %9349 = vmatmul.mubr.msk.f32.gmra.mrb[190].mxu0 %vm4599_vm6, %v7774_v56  ;;  %v2548_v51 = vmul.f32 %v10467_v1, %v12110_v6 }
 0x2f1   : > { %v10471_v55 = vpop.eup %10470  ;;  %10490 = vrcp.f32 %v2169_v3  ;;  %v2172_v5 = vadd.f32 1.0, %v10469_v0  ;;  %9162 = vmatmul.mubr.msk.f32.gmra.mrb[68].mxu1 %vm2609_vm3, %v2546_v47  ;;  %v7539_v43 = vmul.f32 -1.442695, %v12303_v22  ;;  %9351 = vmatprep.mubr.msk.f32.mxu0 %vm4599_vm6, %v7775_v19  ;;  %v7778_v19 = vsel %vm4280_vm7, 1.0, %v10854_v37  ;;  %v12349_v16 = vpop.permute.xlu0 %4100 }
 0x2f2   : > { %v10473_v4 = vpop.eup %10472  ;;  %v2547_v7 = vmul.f32 %v10471_v55, %v12114_v53  ;;  %10492 = vpow2.f32 %v7537_v38  ;;  %v7779_v38 = vsel %vm4281_vm8, 1.0, %v10854_v37  ;;  %vm4293_vm7 = vcmp.eq.s32.totalorder %v11388_v21, %v12147_v15 }
 0x2f3   : > { %v10475_v18 = vpop.eup %10474  ;;  %10494 = vrcp.f32 %v2172_v5  ;;  %v12327_v41 = vpop.f32.mrb[86].mxu0  ;;  %v2550_v47 = vmul.f32 %v10473_v4, %v12136_v44  ;;  %vm4294_vm8 = vcmp.eq.s32.totalorder %v11388_v21, %v12159_v29 }
 0x2f4   : > { %v10477_v53 = vpop.eup %10476  ;;  %v2549_v24 = vmul.f32 %v10475_v18, %v12144_v35  ;;  %10496 = vpow2.f32 %v7540_v48  ;;  %9164 = vmatprep.mubr.msk.f32.mxu1 %vm2609_vm3, %v2547_v7  ;;  %v7542_v61 = vmul.f32 -1.442695, %v12327_v41  ;;  %v12332_v13 = vpop.f32.mrb[87].mxu0  ;;  %9352 = vmatmul.mubr.msk.f32.gmra.mrb[192].mxu0 %vm4599_vm6, %v7776_v28  ;;  %v7792_v15 = vsel %vm4294_vm8, 1.0, %v10854_v37 }
 0x2f5   : > { %v10479_v56 = vpop.eup %10478  ;;  %v2171_v6 = vadd.f32 1.0, %v10477_v53  ;;  %10498 = vpow2.f32 %v7539_v43  ;;  %9165 = vmatmul.mubr.msk.f32.gmra.mrb[70].mxu1 %vm2609_vm3, %v2548_v51  ;;  %v7541_v35 = vmul.f32 -1.442695, %v12332_v13  ;;  %9354 = vmatprep.mubr.msk.f32.mxu0 %vm4599_vm6, %v7777_v14  ;;  %v12361_v5 = vpop.permute.xlu1 %4103  ;;  %v7780_v43 = vsel %vm4282_vm9, 1.0, %v10854_v37 }
 0x2f6   : > { %v10481_v34 = vpop.eup %10480  ;;  %v2174_v20 = vadd.f32 1.0, %v10479_v56  ;;  %10500 = vpow2.f32 %v7542_v61  ;;  %9167 = vmatprep.mubr.msk.f32.mxu1 %vm2609_vm3, %v2549_v24  ;;  %v7781_v14 = vsel %vm4283_vm10, 1.0, %v10854_v37  ;;  %v12387_v56 = vpop.permute.xlu0 %4106  ;;  %vm4295_vm9 = vcmp.eq.s32.totalorder %v11388_v21, %v12185_v30 }
 0x2f7   : > { %v10483_v1 = vpop.eup %10482  ;;  %10502 = vrcp.f32 %v2171_v6  ;;  %v12354_v3 = vpop.f32.mrb[88].mxu0  ;;  %v2552_v18 = vmul.f32 %v10481_v34, %v12165_v11  ;;  %v7783_v34 = vsel %vm4285_vm12, 1.0, %v10854_v37  ;;  %vm4296_vm10 = vcmp.eq.s32.totalorder %v11388_v21, %v12201_v23 }
 0x2f8   : > { %v10485_v0 = vpop.eup %10484  ;;  %v2551_v40 = vmul.f32 %v10483_v1, %v12172_v2  ;;  %10504 = vrcp.f32 %v2174_v20  ;;  %v7544_v48 = vmul.f32 -1.442695, %v12354_v3  ;;  %v12358_v55 = vpop.f32.mrb[89].mxu0  ;;  %9355 = vmatmul.mubr.msk.f32.gmra.mrb[194].mxu0 %vm4599_vm6, %v7778_v19  ;;  %v7782_v19 = vsel %vm4284_vm11, 1.0, %v10854_v37 }
 0x2f9   : > { %v10487_v28 = vpop.eup %10486  ;;  %v2173_v44 = vadd.f32 1.0, %v10485_v0  ;;  %10506 = vpow2.f32 %v7541_v35  ;;  %9168 = vmatmul.mubr.msk.f32.gmra.mrb[72].mxu1 %vm2609_vm3, %v2550_v47  ;;  %v7543_v2 = vmul.f32 -1.442695, %v12358_v55  ;;  %9357 = vmatprep.mubr.msk.f32.mxu0 %vm4599_vm6, %v7779_v38  ;;  %v12403_v33 = vpop.permute.xlu1 %4109  ;;  %vm4297_vm11 = vcmp.eq.s32.totalorder %v11388_v21, %v12228_v36 }
 0x2fa   : > { %v10489_v4 = vpop.eup %10488  ;;  %v2176_v7 = vadd.f32 1.0, %v10487_v28  ;;  %10508 = vpow2.f32 %v7544_v48  ;;  %9170 = vmatprep.mubr.msk.f32.mxu1 %vm2609_vm3, %v2551_v40  ;;  %v12428_v39 = vpop.permute.xlu0 %4112  ;;  %v7794_v30 = vsel %vm4296_vm10, 1.0, %v10854_v37  ;;  %vm4298_vm12 = vcmp.eq.s32.totalorder %v11388_v21, %v12245_v46 }
 0x2fb   : > { %v10491_v58 = vpop.eup %10490  ;;  %10510 = vrcp.f32 %v2173_v44  ;;  %v12380_v51 = vpop.f32.mrb[90].mxu0  ;;  %v2554_v38 = vmul.f32 %v10489_v4, %v12191_v9  ;;  %v7784_v9 = vsel %vm4286_vm13, 1.0, %v10854_v37  ;;  %vm4299_vm13 = vcmp.eq.s32.totalorder %v11388_v21, %v12270_v63 }
 0x2fc   : > { %v10493_v53 = vpop.eup %10492  ;;  %v2553_v24 = vmul.f32 %v10491_v58, %v12198_v62  ;;  %10512 = vrcp.f32 %v2176_v7  ;;  %v7546_v31 = vmul.f32 -1.442695, %v12380_v51  ;;  %v12384_v61 = vpop.f32.mrb[91].mxu0  ;;  %9358 = vmatmul.mubr.msk.f32.gmra.mrb[196].mxu0 %vm4599_vm6, %v7780_v43  ;;  %v7785_v7 = vsel %vm4287_vm14, 1.0, %v10854_v37 }
 0x2fd   : > { %v10495_v6 = vpop.eup %10494  ;;  %v2175_v11 = vadd.f32 1.0, %v10493_v53  ;;  %10514 = vpow2.f32 %v7543_v2  ;;  %9171 = vmatmul.mubr.msk.f32.gmra.mrb[74].mxu1 %vm2609_vm3, %v2552_v18  ;;  %v7545_v62 = vmul.f32 -1.442695, %v12384_v61  ;;  %9360 = vmatprep.mubr.msk.f32.mxu0 %vm4599_vm6, %v7781_v14  ;;  %v7796_v36 = vsel %vm4298_vm12, 1.0, %v10854_v37 }
 0x2fe   : > { %v10497_v35 = vpop.eup %10496  ;;  %10516 = vpow2.f32 %v7546_v31  ;;  %9173 = vmatprep.mubr.msk.f32.mxu1 %vm2609_vm3, %v2553_v24  ;;  %v2556_v58 = vmul.f32 %v10495_v6, %v12217_v26  ;;  %v12440_v31 = vpop.permute.xlu1 %4115  ;;  %vm4300_vm14 = vcmp.eq.s32.totalorder %v11388_v21, %v12280_v60  ;;  %vm4305_vm5 = vcmp.eq.s32.totalorder %v11388_v21, %v12387_v56 }
 0x2ff   : > { %v10499_v20 = vpop.eup %10498  ;;  %10518 = vrcp.f32 %v2175_v11  ;;  %v2178_v1 = vadd.f32 1.0, %v10497_v35  ;;  %v12408_v47 = vpop.f32.mrb[92].mxu0  ;;  %v7786_v11 = vsel %vm4288_vm15, 1.0, %v10854_v37  ;;  %vm4301_vm15 = vcmp.eq.s32.totalorder %v11388_v21, %v12306_v59 }
 0x300   : > { %v10501_v12 = vpop.eup %10500  ;;  %v2177_v0 = vadd.f32 1.0, %v10499_v20  ;;  %10520 = vpow2.f32 %v7545_v62  ;;  %v7548_v40 = vmul.f32 -1.442695, %v12408_v47  ;;  %v12411_v48 = vpop.f32.mrb[93].mxu0  ;;  %9361 = vmatmul.mubr.msk.f32.gmra.mrb[198].mxu0 %vm4599_vm6, %v7782_v19  ;;  %vm4307_vm8 = vcmp.eq.s32.totalorder %v11388_v21, %v12428_v39 }
 0x301   : > { %v10503_v28 = vpop.eup %10502  ;;  %10522 = vrcp.f32 %v2178_v1  ;;  %v2180_v44 = vadd.f32 1.0, %v10501_v12  ;;  %9174 = vmatmul.mubr.msk.f32.gmra.mrb[76].mxu1 %vm2609_vm3, %v2554_v38  ;;  %v7547_v43 = vmul.f32 -1.442695, %v12411_v48  ;;  %9363 = vmatprep.mubr.msk.f32.mxu0 %vm4599_vm6, %v7783_v34  ;;  %v7787_v34 = vsel %vm4289_vm0, 1.0, %v10854_v37 }
 0x302   : > { %v10505_v2 = vpop.eup %10504  ;;  %v2555_v4 = vmul.f32 %v10503_v28, %v12225_v57  ;;  %10524 = vrcp.f32 %v2177_v0  ;;  %v12466_v0 = vpop.permute.xlu0 %4118  ;;  %v7788_v28 = vsel %vm4290_vm1, 1.0, %v10854_v37  ;;  %vm4302_vm0 = vcmp.eq.s32.totalorder %v11388_v21, %v12322_v42 }
 0x303   : > { %v10507_v14 = vpop.eup %10506  ;;  %10526 = vrcp.f32 %v2180_v44  ;;  %v12433_v18 = vpop.f32.mrb[94].mxu0  ;;  %v2558_v20 = vmul.f32 %v10505_v2, %v12248_v17  ;;  %vm4303_vm1 = vcmp.eq.s32.totalorder %v11388_v21, %v12349_v16  ;;  %vm4309_vm10 = vcmp.eq.s32.totalorder %v11388_v21, %v12466_v0 }
 0x304   : > { %v10509_v57 = vpop.eup %10508  ;;  %v2179_v53 = vadd.f32 1.0, %v10507_v14  ;;  %10528 = vpow2.f32 %v7548_v40  ;;  %9176 = vmatprep.mubr.msk.f32.mxu1 %vm2609_vm3, %v2555_v4  ;;  %v7550_v25 = vmul.f32 -1.442695, %v12433_v18  ;;  %v12437_v24 = vpop.f32.mrb[95].mxu0  ;;  %9364 = vmatmul.mubr.msk.f32.gmra.mrb[200].mxu0 %vm4599_vm6, %v7784_v9 }
 0x305   : > { %v10511_v26 = vpop.eup %10510  ;;  %v2182_v6 = vadd.f32 1.0, %v10509_v57  ;;  %10530 = vpow2.f32 %v7547_v43  ;;  %9177 = vmatmul.mubr.msk.f32.gmra.mrb[78].mxu1 %vm2609_vm3, %v2556_v58  ;;  %v7549_v19 = vmul.f32 -1.442695, %v12437_v24  ;;  %9366 = vmatprep.mubr.msk.f32.mxu0 %vm4599_vm6, %v7785_v7  ;;  %v7789_v43 = vsel %vm4291_vm4, 1.0, %v10854_v37  ;;  %v12482_v2 = vpop.permute.xlu1 %4121 }
 0x306   : > { %v10513_v62 = vpop.eup %10512  ;;  %v2557_v35 = vmul.f32 %v10511_v26, %v12255_v10  ;;  %10532 = vrcp.f32 %v2179_v53  ;;  %vm4304_vm4 = vcmp.eq.s32.totalorder %v11388_v21, %v12361_v5 }
 0x307   : > { %v10515_v50 = vpop.eup %10514  ;;  %10534 = vrcp.f32 %v2182_v6  ;;  %v12459_v38 = vpop.f32.mrb[96].mxu0  ;;  %v2560_v7 = vmul.f32 %v10513_v62, %v12274_v27  ;;  %v7791_v6 = vsel %vm4293_vm7, 1.0, %v10854_v37  ;;  %v7802_v16 = vsel %vm4304_vm4, 1.0, %v10854_v37 }
 0x308   : > { %v10517_v1 = vpop.eup %10516  ;;  %v2181_v10 = vadd.f32 1.0, %v10515_v50  ;;  %10536 = vpow2.f32 %v7550_v25  ;;  %9179 = vmatprep.mubr.msk.f32.mxu1 %vm2609_vm3, %v2557_v35  ;;  %v7552_v52 = vmul.f32 -1.442695, %v12459_v38  ;;  %v12463_v12 = vpop.f32.mrb[97].mxu0  ;;  %9367 = vmatmul.mubr.msk.f32.gmra.mrb[202].mxu0 %vm4599_vm6, %v7786_v11  ;;  %vm4306_vm7 = vcmp.eq.s32.totalorder %v11388_v21, %v12403_v33 }
 0x309   : > { %v10519_v17 = vpop.eup %10518  ;;  %v2184_v40 = vadd.f32 1.0, %v10517_v1  ;;  %10538 = vpow2.f32 %v7549_v19  ;;  %9180 = vmatmul.mubr.msk.f32.gmra.mrb[80].mxu1 %vm2609_vm3, %v2558_v20  ;;  %9369 = vmatprep.mubr.msk.f32.mxu0 %vm4599_vm6, %v7787_v34  ;;  %v7551_v54 = vmul.f32 -1.442695, %v12463_v12  ;;  %v12508_v11 = vpop.permute.xlu0 %4124  ;;  %v7804_v56 = vsel %vm4306_vm7, 1.0, %v10854_v37 }
 0x30a   : > { %v10521_v44 = vpop.eup %10520  ;;  %v2559_v9 = vmul.f32 %v10519_v17, %v12277_v49  ;;  %10540 = vrcp.f32 %v2181_v10  ;;  %v12524_v1 = vpop.permute.xlu1 %4127  ;;  %vm4311_vm12 = vcmp.eq.s32.totalorder %v11388_v21, %v12508_v11 }
 0x30b   : > { %v10523_v4 = vpop.eup %10522  ;;  %10542 = vrcp.f32 %v2184_v40  ;;  %v2183_v14 = vadd.f32 1.0, %v10521_v44  ;;  %v12487_v58 = vpop.f32.mrb[98].mxu0  ;;  %v7793_v40 = vsel %vm4295_vm9, 1.0, %v10854_v37  ;;  %vm4308_vm9 = vcmp.eq.s32.totalorder %v11388_v21, %v12440_v31 }
 0x30c   : > { %v10525_v49 = vpop.eup %10524  ;;  %10544 = vpow2.f32 %v7552_v52  ;;  %9182 = vmatprep.mubr.msk.f32.mxu1 %vm2609_vm3, %v2559_v9  ;;  %v7554_v57 = vmul.f32 -1.442695, %v12487_v58  ;;  %v12495_v53 = vpop.f32.mrb[99].mxu0  ;;  %9370 = vmatmul.mubr.msk.f32.gmra.mrb[204].mxu0 %vm4599_vm6, %v7788_v28  ;;  %v2562_v19 = vmul.f32 %v10523_v4, %v12300_v32  ;;  %v7806_v39 = vsel %vm4308_vm9, 1.0, %v10854_v37 }
 0x30d   : > { %v10527_v27 = vpop.eup %10526  ;;  %v2561_v25 = vmul.f32 %v10525_v49, %v12303_v22  ;;  %10546 = vrcp.f32 %v2183_v14  ;;  %9183 = vmatmul.mubr.msk.f32.gmra.mrb[82].mxu1 %vm2609_vm3, %v2560_v7  ;;  %v7553_v45 = vmul.f32 -1.442695, %v12495_v53  ;;  %9372 = vmatprep.mubr.msk.f32.mxu0 %vm4599_vm6, %v7789_v43  ;;  %v12550_v7 = vpop.permute.xlu0 %4130 }
 0x30e   : > { %v10529_v26 = vpop.eup %10528  ;;  %10548 = vpow2.f32 %v7551_v54 }
 0x30f   : > { %v10531_v22 = vpop.eup %10530  ;;  %v2186_v62 = vadd.f32 1.0, %v10529_v26  ;;  %10550 = vpow2.f32 %v7554_v57  ;;  %9185 = vmatprep.mubr.msk.f32.mxu1 %vm2609_vm3, %v2561_v25  ;;  %v12514_v35 = vpop.f32.mrb[100].mxu0  ;;  %v7795_v57 = vsel %vm4297_vm11, 1.0, %v10854_v37  ;;  %vm4310_vm11 = vcmp.eq.s32.totalorder %v11388_v21, %v12482_v2 }
 0x310   : > { %v10533_v34 = vpop.eup %10532  ;;  %v2185_v50 = vadd.f32 1.0, %v10531_v22  ;;  %10552 = vpow2.f32 %v7553_v45  ;;  %v7556_v20 = vmul.f32 -1.442695, %v12514_v35  ;;  %v12521_v32 = vpop.f32.mrb[101].mxu0  ;;  %9373 = vmatmul.mubr.msk.f32.gmra.mrb[206].mxu0 %vm4599_vm6, %v7790_v8  ;;  %v7808_v0 = vsel %vm4310_vm11, 1.0, %v10854_v37 }
 0x311   : > { %v10535_v10 = vpop.eup %10534  ;;  %v2563_v52 = vmul.f32 %v10533_v34, %v12332_v13  ;;  %10554 = vrcp.f32 %v2186_v62  ;;  %9186 = vmatmul.mubr.msk.f32.gmra.mrb[84].mxu1 %vm2609_vm3, %v2562_v19  ;;  %v7555_v29 = vmul.f32 -1.442695, %v12521_v32  ;;  %9375 = vmatprep.mubr.msk.f32.mxu0 %vm4599_vm6, %v7791_v6  ;;  %v2564_v13 = vmul.f32 %v10527_v27, %v12327_v41 }
 0x312   : > { %v10537_v17 = vpop.eup %10536  ;;  %10556 = vrcp.f32 %v2185_v50  ;;  %v2566_v25 = vmul.f32 %v10535_v10, %v12354_v3 }
 0x313   : > { %v10539_v28 = vpop.eup %10538  ;;  %v2188_v44 = vadd.f32 1.0, %v10537_v17  ;;  %10558 = vpow2.f32 %v7556_v20  ;;  %9188 = vmatprep.mubr.msk.f32.mxu1 %vm2609_vm3, %v2563_v52  ;;  %v12540_v9 = vpop.f32.mrb[102].mxu0 }
 0x314   : > { %v10541_v43 = vpop.eup %10540  ;;  %v2187_v54 = vadd.f32 1.0, %v10539_v28  ;;  %10560 = vpow2.f32 %v7555_v29  ;;  %v7558_v4 = vmul.f32 -1.442695, %v12540_v9  ;;  %v12547_v41 = vpop.f32.mrb[103].mxu0  ;;  %9376 = vmatmul.mubr.msk.f32.gmra.mrb[208].mxu0 %vm4599_vm6, %v7792_v15 }
 0x315   : > { %v10543_v14 = vpop.eup %10542  ;;  %v2565_v49 = vmul.f32 %v10541_v43, %v12358_v55  ;;  %10562 = vrcp.f32 %v2188_v44  ;;  %9189 = vmatmul.mubr.msk.f32.gmra.mrb[86].mxu1 %vm2609_vm3, %v2564_v13  ;;  %v7557_v23 = vmul.f32 -1.442695, %v12547_v41  ;;  %9378 = vmatprep.mubr.msk.f32.mxu0 %vm4599_vm6, %v7793_v40  ;;  %v12564_v55 = vpop.permute.xlu1 %4133 }
 0x316   : > { %v10545_v8 = vpop.eup %10544  ;;  %10564 = vrcp.f32 %v2187_v54  ;;  %v12591_v20 = vpop.permute.xlu0 %4136  ;;  %v2568_v10 = vmul.f32 %v10543_v14, %v12380_v51  ;;  %v7798_v51 = vsel %vm4300_vm14, 1.0, %v10854_v37  ;;  %v7799_v54 = vsel %vm4301_vm15, 1.0, %v10854_v37 }
 0x317   : > { %v10547_v27 = vpop.eup %10546  ;;  %v2190_v45 = vadd.f32 1.0, %v10545_v8  ;;  %10566 = vpow2.f32 %v7558_v4  ;;  %9191 = vmatprep.mubr.msk.f32.mxu1 %vm2609_vm3, %v2565_v49  ;;  %v12568_v26 = vpop.f32.mrb[104].mxu0  ;;  %vm4313_vm14 = vcmp.eq.s32.totalorder %v11388_v21, %v12550_v7  ;;  %vm4314_vm15 = vcmp.eq.s32.totalorder %v11388_v21, %v12564_v55 }
 0x318   : > { %v10549_v6 = vpop.eup %10548  ;;  %v2567_v22 = vmul.f32 %v10547_v27, %v12384_v61  ;;  %10568 = vpow2.f32 %v7557_v23  ;;  %v7560_v19 = vmul.f32 -1.442695, %v12568_v26  ;;  %v12576_v62 = vpop.f32.mrb[105].mxu0  ;;  %9379 = vmatmul.mubr.msk.f32.gmra.mrb[210].mxu0 %vm4599_vm6, %v7794_v30  ;;  %v7797_v61 = vsel %vm4299_vm13, 1.0, %v10854_v37 }
 0x319   : > { %v10551_v3 = vpop.eup %10550  ;;  %10570 = vrcp.f32 %v2190_v45  ;;  %v2189_v34 = vadd.f32 1.0, %v10549_v6  ;;  %9192 = vmatmul.mubr.msk.f32.gmra.mrb[88].mxu1 %vm2609_vm3, %v2566_v25  ;;  %9381 = vmatprep.mubr.msk.f32.mxu0 %vm4599_vm6, %v7795_v57  ;;  %v7559_v15 = vmul.f32 -1.442695, %v12576_v62  ;;  %v12600_v13 = vpop.permute.xlu1 %4139  ;;  %v7800_v45 = vsel %vm4302_vm0, 1.0, %v10854_v37 }
 0x31a   : > { %v10553_v46 = vpop.eup %10552  ;;  %v2192_v50 = vadd.f32 1.0, %v10551_v3  ;;  %10572 = vpow2.f32 %v7560_v19  ;;  %9194 = vmatprep.mubr.msk.f32.mxu1 %vm2609_vm3, %v2567_v22  ;;  %v12626_v27 = vpop.permute.xlu0 %4142  ;;  %vm4312_vm13 = vcmp.eq.s32.totalorder %v11388_v21, %v12524_v1  ;;  %vm4315_vm0 = vcmp.eq.s32.totalorder %v11388_v21, %v12591_v20 }
 0x31b   : > { %v10555_v63 = vpop.eup %10554  ;;  %10574 = vrcp.f32 %v2189_v34  ;;  %v2191_v52 = vadd.f32 1.0, %v10553_v46  ;;  %v12594_v29 = vpop.f32.mrb[106].mxu0  ;;  %v7810_v11 = vsel %vm4312_vm13, 1.0, %v10854_v37  ;;  %vm4317_vm4 = vcmp.eq.s32.totalorder %v11388_v21, %v12626_v27 }
 0x31c   : > { %v10557_v17 = vpop.eup %10556  ;;  %10576 = vrcp.f32 %v2192_v50  ;;  %v7562_v40 = vmul.f32 -1.442695, %v12594_v29  ;;  %v12597_v28 = vpop.f32.mrb[107].mxu0  ;;  %9382 = vmatmul.mubr.msk.f32.gmra.mrb[212].mxu0 %vm4599_vm6, %v7796_v36  ;;  %v2570_v60 = vmul.f32 %v10555_v63, %v12408_v47 }
 0x31d   : > { %v10559_v44 = vpop.eup %10558  ;;  %v2569_v43 = vmul.f32 %v10557_v17, %v12411_v48  ;;  %10578 = vrcp.f32 %v2191_v52  ;;  %9195 = vmatmul.mubr.msk.f32.gmra.mrb[90].mxu1 %vm2609_vm3, %v2568_v10  ;;  %9384 = vmatprep.mubr.msk.f32.mxu0 %vm4599_vm6, %v7797_v61  ;;  %v7561_v48 = vmul.f32 -1.442695, %v12597_v28  ;;  %v12642_v19 = vpop.permute.xlu1 %4145  ;;  %v7803_v17 = vsel %vm4305_vm5, 1.0, %v10854_v37 }
 0x31e   : > { %v10561_v30 = vpop.eup %10560  ;;  %v2194_v4 = vadd.f32 1.0, %v10559_v44  ;;  %10580 = vpow2.f32 %v7559_v15  ;;  %vm4318_vm5 = vcmp.eq.s32.totalorder %v11388_v21, %v12642_v19 }
 0x31f   : > { %v10563_v14 = vpop.eup %10562  ;;  %v2193_v49 = vadd.f32 1.0, %v10561_v30  ;;  %10582 = vpow2.f32 %v7562_v40  ;;  %9197 = vmatprep.mubr.msk.f32.mxu1 %vm2609_vm3, %v2569_v43  ;;  %v12620_v59 = vpop.f32.mrb[108].mxu0 }
 0x320   : > { %v10565_v23 = vpop.eup %10564  ;;  %10584 = vrcp.f32 %v2194_v4  ;;  %v7564_v8 = vmul.f32 -1.442695, %v12620_v59  ;;  %v12623_v57 = vpop.f32.mrb[109].mxu0  ;;  %9385 = vmatmul.mubr.msk.f32.gmra.mrb[214].mxu0 %vm4599_vm6, %v7798_v51  ;;  %v2572_v3 = vmul.f32 %v10563_v14, %v12433_v18 }
 0x321   : > { %v10567_v47 = vpop.eup %10566  ;;  %v2571_v25 = vmul.f32 %v10565_v23, %v12437_v24  ;;  %10586 = vrcp.f32 %v2193_v49  ;;  %9198 = vmatmul.mubr.msk.f32.gmra.mrb[92].mxu1 %vm2609_vm3, %v2570_v60  ;;  %9387 = vmatprep.mubr.msk.f32.mxu0 %vm4599_vm6, %v7799_v54  ;;  %v7801_v24 = vsel %vm4303_vm1, 1.0, %v10854_v37  ;;  %v7563_v36 = vmul.f32 -1.442695, %v12623_v57  ;;  %v12668_v40 = vpop.permute.xlu0 %4148 }
 0x322   : > { %v10569_v6 = vpop.eup %10568  ;;  %v2196_v22 = vadd.f32 1.0, %v10567_v47  ;;  %10588 = vpow2.f32 %v7561_v48  ;;  %v12685_v4 = vpop.permute.xlu1 %4151  ;;  %v7805_v49 = vsel %vm4307_vm8, 1.0, %v10854_v37  ;;  %vm4316_vm1 = vcmp.eq.s32.totalorder %v11388_v21, %v12600_v13 }
 0x323   : > { %v10571_v42 = vpop.eup %10570  ;;  %v2195_v34 = vadd.f32 1.0, %v10569_v6  ;;  %10590 = vpow2.f32 %v7564_v8  ;;  %9200 = vmatprep.mubr.msk.f32.mxu1 %vm2609_vm3, %v2571_v25  ;;  %v12648_v61 = vpop.f32.mrb[110].mxu0  ;;  %vm4319_vm7 = vcmp.eq.s32.totalorder %v11388_v21, %v12668_v40  ;;  %vm4320_vm8 = vcmp.eq.s32.totalorder %v11388_v21, %v12685_v4 }
 0x324   : > { %v10573_v46 = vpop.eup %10572  ;;  %10592 = vrcp.f32 %v2196_v22  ;;  %v7566_v50 = vmul.f32 -1.442695, %v12648_v61  ;;  %v12655_v15 = vpop.f32.mrb[111].mxu0  ;;  %9388 = vmatmul.mubr.msk.f32.gmra.mrb[216].mxu0 %vm4599_vm6, %v7800_v45  ;;  %v2574_v43 = vmul.f32 %v10571_v42, %v12459_v38 }
 0x325   : > { %v10575_v18 = vpop.eup %10574  ;;  %10594 = vrcp.f32 %v2195_v34  ;;  %v2198_v63 = vadd.f32 1.0, %v10573_v46  ;;  %9201 = vmatmul.mubr.msk.f32.gmra.mrb[94].mxu1 %vm2609_vm3, %v2572_v3  ;;  %v7565_v10 = vmul.f32 -1.442695, %v12655_v15  ;;  %9390 = vmatprep.mubr.msk.f32.mxu0 %vm4599_vm6, %v7801_v24  ;;  %v7807_v3 = vsel %vm4309_vm10, 1.0, %v10854_v37 }
 0x326   : > { %v10577_v5 = vpop.eup %10576  ;;  %v2573_v52 = vmul.f32 %v10575_v18, %v12463_v12  ;;  %10596 = vpow2.f32 %v7563_v36  ;;  %v12723_v34 = vpop.permute.xlu1 %4157 }
 0x327   : > { %v10579_v44 = vpop.eup %10578  ;;  %10598 = vrcp.f32 %v2198_v63  ;;  %v12673_v51 = vpop.f32.mrb[112].mxu0  ;;  %v2576_v8 = vmul.f32 %v10577_v5, %v12487_v58  ;;  %vm4322_vm10 = vcmp.eq.s32.totalorder %v11388_v21, %v12723_v34 }
 0x328   : > { %v10581_v54 = vpop.eup %10580  ;;  %v2575_v12 = vmul.f32 %v10579_v44, %v12495_v53  ;;  %10600 = vpow2.f32 %v7566_v50  ;;  %9203 = vmatprep.mubr.msk.f32.mxu1 %vm2609_vm3, %v2573_v52  ;;  %v7568_v30 = vmul.f32 -1.442695, %v12673_v51  ;;  %v12682_v38 = vpop.f32.mrb[113].mxu0  ;;  %9391 = vmatmul.mubr.msk.f32.gmra.mrb[218].mxu0 %vm4599_vm6, %v7802_v16 }
 0x329   : > { %v10583_v48 = vpop.eup %10582  ;;  %v2197_v14 = vadd.f32 1.0, %v10581_v54  ;;  %10602 = vpow2.f32 %v7565_v10  ;;  %9204 = vmatmul.mubr.msk.f32.gmra.mrb[96].mxu1 %vm2609_vm3, %v2574_v43  ;;  %v7567_v33 = vmul.f32 -1.442695, %v12682_v38  ;;  %9393 = vmatprep.mubr.msk.f32.mxu0 %vm4599_vm6, %v7803_v17  ;;  %v12711_v58 = vpop.permute.xlu0 %4154  ;;  %v7809_v17 = vsel %vm4311_vm12, 1.0, %v10854_v37 }
 0x32a   : > { %v10585_v53 = vpop.eup %10584  ;;  %v2200_v60 = vadd.f32 1.0, %v10583_v48  ;;  %10604 = vpow2.f32 %v7568_v30  ;;  %9206 = vmatprep.mubr.msk.f32.mxu1 %vm2609_vm3, %v2575_v12  ;;  %vm4321_vm9 = vcmp.eq.s32.totalorder %v11388_v21, %v12711_v58 }
 0x32b   : > { %v10587_v23 = vpop.eup %10586  ;;  %10606 = vrcp.f32 %v2197_v14  ;;  %v12700_v47 = vpop.f32.mrb[114].mxu0  ;;  %v2578_v16 = vmul.f32 %v10585_v53, %v12514_v35 }
 0x32c   : > { %v10589_v25 = vpop.eup %10588  ;;  %v2577_v45 = vmul.f32 %v10587_v23, %v12521_v32  ;;  %10608 = vrcp.f32 %v2200_v60  ;;  %v7570_v6 = vmul.f32 -1.442695, %v12700_v47  ;;  %v12708_v22 = vpop.f32.mrb[115].mxu0  ;;  %9394 = vmatmul.mubr.msk.f32.gmra.mrb[220].mxu0 %vm4599_vm6, %v7804_v56 }
 0x32d   : > { %v10591_v24 = vpop.eup %10590  ;;  %v2199_v36 = vadd.f32 1.0, %v10589_v25  ;;  %10610 = vpow2.f32 %v7567_v33  ;;  %9207 = vmatmul.mubr.msk.f32.gmra.mrb[98].mxu1 %vm2609_vm3, %v2576_v8  ;;  %v7569_v32 = vmul.f32 -1.442695, %v12708_v22  ;;  %9396 = vmatprep.mubr.msk.f32.mxu0 %vm4599_vm6, %v7805_v49  ;;  %v12749_v44 = vpop.permute.xlu0 %4160  ;;  %v7811_v8 = vsel %vm4313_vm14, 1.0, %v10854_v37 }
 0x32e   : > { %v10593_v31 = vpop.eup %10592  ;;  %v2202_v42 = vadd.f32 1.0, %v10591_v24  ;;  %10612 = vpow2.f32 %v7570_v6  ;;  %9209 = vmatprep.mubr.msk.f32.mxu1 %vm2609_vm3, %v2577_v45  ;;  %v7812_v24 = vsel %vm4314_vm15, 1.0, %v10854_v37  ;;  %vm4323_vm11 = vcmp.eq.s32.totalorder %v11388_v21, %v12749_v44 }
 0x32f   : > { %v10595_v46 = vpop.eup %10594  ;;  %10614 = vrcp.f32 %v2199_v36  ;;  %v12728_v50 = vpop.f32.mrb[116].mxu0  ;;  %v2580_v54 = vmul.f32 %v10593_v31, %v12540_v9  ;;  %v7813_v31 = vsel %vm4315_vm0, 1.0, %v10854_v37 }
 0x330   : > { %v10597_v18 = vpop.eup %10596  ;;  %v2579_v63 = vmul.f32 %v10595_v46, %v12547_v41  ;;  %10616 = vrcp.f32 %v2202_v42  ;;  %v7572_v10 = vmul.f32 -1.442695, %v12728_v50  ;;  %v12736_v5 = vpop.f32.mrb[117].mxu0  ;;  %9397 = vmatmul.mubr.msk.f32.gmra.mrb[222].mxu0 %vm4599_vm6, %v7806_v39 }
 0x331   : > { %v10599_v35 = vpop.eup %10598  ;;  %v2201_v52 = vadd.f32 1.0, %v10597_v18  ;;  %10618 = vpow2.f32 %v7569_v32  ;;  %9210 = vmatmul.mubr.msk.f32.gmra.mrb[100].mxu1 %vm2609_vm3, %v2578_v16  ;;  %v7571_v41 = vmul.f32 -1.442695, %v12736_v5  ;;  %9399 = vmatprep.mubr.msk.f32.mxu0 %vm4599_vm6, %v7807_v3  ;;  %v12764_v9 = vpop.permute.xlu1 %4163 }
 0x332   : > { %v10601_v2 = vpop.eup %10600  ;;  %10620 = vpow2.f32 %v7572_v10  ;;  %9212 = vmatprep.mubr.msk.f32.mxu1 %vm2609_vm3, %v2579_v63  ;;  %v2582_v55 = vmul.f32 %v10599_v35, %v12568_v26  ;;  %v12787_v36 = vpop.permute.xlu0 %4166  ;;  %vm4324_vm12 = vcmp.eq.s32.totalorder %v11388_v21, %v12764_v9 }
 0x333   : > { %v10603_v43 = vpop.eup %10602  ;;  %10622 = vrcp.f32 %v2201_v52  ;;  %v2204_v12 = vadd.f32 1.0, %v10601_v2  ;;  %v12754_v56 = vpop.f32.mrb[118].mxu0  ;;  %vm4325_vm13 = vcmp.eq.s32.totalorder %v11388_v21, %v12787_v36 }
 0x334   : > { %v10605_v30 = vpop.eup %10604  ;;  %v2203_v48 = vadd.f32 1.0, %v10603_v43  ;;  %10624 = vpow2.f32 %v7571_v41  ;;  %v7574_v14 = vmul.f32 -1.442695, %v12754_v56  ;;  %v12761_v33 = vpop.f32.mrb[119].mxu0  ;;  %9400 = vmatmul.mubr.msk.f32.gmra.mrb[224].mxu0 %vm4599_vm6, %v7808_v0  ;;  %v7815_v43 = vsel %vm4317_vm4, 1.0, %v10854_v37 }
 0x335   : > { %v10607_v53 = vpop.eup %10606  ;;  %10626 = vrcp.f32 %v2204_v12  ;;  %v2206_v60 = vadd.f32 1.0, %v10605_v30  ;;  %9213 = vmatmul.mubr.msk.f32.gmra.mrb[102].mxu1 %vm2609_vm3, %v2580_v54  ;;  %v7573_v1 = vmul.f32 -1.442695, %v12761_v33  ;;  %9402 = vmatprep.mubr.msk.f32.mxu0 %vm4599_vm6, %v7809_v17  ;;  %v12805_v18 = vpop.permute.xlu1 %4169 }
 0x336   : > { %v10609_v49 = vpop.eup %10608  ;;  %v2581_v23 = vmul.f32 %v10607_v53, %v12576_v62  ;;  %10628 = vrcp.f32 %v2203_v48  ;;  %v12833_v27 = vpop.permute.xlu0 %4172  ;;  %vm4326_vm14 = vcmp.eq.s32.totalorder %v11388_v21, %v12805_v18 }
 0x337   : > { %v10611_v25 = vpop.eup %10610  ;;  %10630 = vrcp.f32 %v2206_v60  ;;  %v12779_v45 = vpop.f32.mrb[120].mxu0  ;;  %v2584_v0 = vmul.f32 %v10609_v49, %v12594_v29  ;;  %v7814_v29 = vsel %vm4316_vm1, 1.0, %v10854_v37  ;;  %vm4327_vm15 = vcmp.eq.s32.totalorder %v11388_v21, %v12833_v27 }
 0x338   : > { %v10613_v39 = vpop.eup %10612  ;;  %v2205_v6 = vadd.f32 1.0, %v10611_v25  ;;  %10632 = vpow2.f32 %v7574_v14  ;;  %9215 = vmatprep.mubr.msk.f32.mxu1 %vm2609_vm3, %v2581_v23  ;;  %v7576_v62 = vmul.f32 -1.442695, %v12779_v45  ;;  %v12784_v7 = vpop.f32.mrb[121].mxu0  ;;  %9403 = vmatmul.mubr.msk.f32.gmra.mrb[226].mxu0 %vm4599_vm6, %v7810_v11  ;;  %v7816_v25 = vsel %vm4318_vm5, 1.0, %v10854_v37 }
 0x339   : > { %v10615_v32 = vpop.eup %10614  ;;  %v2208_v26 = vadd.f32 1.0, %v10613_v39  ;;  %10634 = vpow2.f32 %v7573_v1  ;;  %9216 = vmatmul.mubr.msk.f32.gmra.mrb[104].mxu1 %vm2609_vm3, %v2582_v55  ;;  %v7575_v42 = vmul.f32 -1.442695, %v12784_v7  ;;  %v12795_v3 = vpop.f32.mrb[0].mxu1  ;;  %9405 = vmatprep.mubr.msk.f32.mxu0 %vm4599_vm6, %v7811_v8 }
 0x33a   : > { %v10617_v46 = vpop.eup %10616  ;;  %v2583_v16 = vmul.f32 %v10615_v32, %v12597_v28  ;;  %10636 = vrcp.f32 %v2205_v6  ;;  %v12803_v20 = vpop.f32.mrb[1].mxu1 }
 0x33b   : > { %v10619_v63 = vpop.eup %10618  ;;  %10638 = vrcp.f32 %v2208_v26  ;;  %v12808_v10 = vpop.f32.mrb[122].mxu0  ;;  %v2586_v14 = vmul.f32 %v10617_v46, %v12620_v59 }
 0x33c   : > { %v10621_v35 = vpop.eup %10620  ;;  %v2207_v52 = vadd.f32 1.0, %v10619_v63  ;;  %10640 = vpow2.f32 %v7576_v62  ;;  %9218 = vmatprep.mubr.msk.f32.mxu1 %vm2609_vm3, %v2583_v16  ;;  %v7578_v28 = vmul.f32 -1.442695, %v12808_v10  ;;  %v12812_v41 = vpop.f32.mrb[123].mxu0  ;;  %9406 = vmatmul.mubr.msk.f32.gmra.mrb[228].mxu0 %vm4599_vm6, %v7812_v24 }
 0x33d   : > { %v10623_v2 = vpop.eup %10622  ;;  %v2210_v17 = vadd.f32 1.0, %v10621_v35  ;;  %10642 = vpow2.f32 %v7575_v42  ;;  %9219 = vmatmul.mubr.msk.f32.gmra.mrb[106].mxu1 %vm2609_vm3, %v2584_v0  ;;  %v12824_v54 = vpop.f32.mrb[2].mxu1  ;;  %9408 = vmatprep.mubr.msk.f32.mxu0 %vm4599_vm6, %v7813_v31  ;;  %v7577_v13 = vmul.f32 -1.442695, %v12812_v41  ;;  %v7818_v0 = vsel %vm4320_vm8, 1.0, %v10854_v37 }
 0x33e   : > { %v10625_v12 = vpop.eup %10624  ;;  %v2585_v30 = vmul.f32 %v10623_v2, %v12623_v57  ;;  %10644 = vrcp.f32 %v2207_v52  ;;  %v12831_v48 = vpop.f32.mrb[3].mxu1 }
 0x33f   : > { %v10627_v11 = vpop.eup %10626  ;;  %10646 = vrcp.f32 %v2210_v17  ;;  %v2209_v53 = vadd.f32 1.0, %v10625_v12  ;;  %v12838_v60 = vpop.f32.mrb[124].mxu0 }
 0x340   : > { %v10629_v57 = vpop.eup %10628  ;;  %10648 = vpow2.f32 %v7578_v28  ;;  %9221 = vmatprep.mubr.msk.f32.mxu1 %vm2609_vm3, %v2585_v30  ;;  %v7580_v1 = vmul.f32 -1.442695, %v12838_v60  ;;  %v12842_v49 = vpop.f32.mrb[125].mxu0  ;;  %9409 = vmatmul.mubr.msk.f32.gmra.mrb[230].mxu0 %vm4599_vm6, %v7814_v29  ;;  %v2588_v62 = vmul.f32 %v10627_v11, %v12648_v61  ;;  %v7819_v28 = vsel %vm4321_vm9, 1.0, %v10854_v37 }
 0x341   : > { %v12845_v23 = vpop.permute.xlu1 %4175  ;;  %v10631_v59 = vpop.eup %10630  ;;  %v2587_v8 = vmul.f32 %v10629_v57, %v12655_v15  ;;  %10650 = vrcp.f32 %v2209_v53  ;;  %9222 = vmatmul.mubr.msk.f32.gmra.mrb[108].mxu1 %vm2609_vm3, %v2586_v14  ;;  %v7579_v55 = vmul.f32 -1.442695, %v12842_v49  ;;  %9411 = vmatprep.mubr.msk.f32.mxu0 %vm4599_vm6, %v7815_v43  ;;  %v7817_v15 = vsel %vm4319_vm7, 1.0, %v10854_v37 }
 0x342   : > { %v12854_v39 = vpop.f32.mrb[4].mxu1  ;;  %v10633_v6 = vpop.eup %10632  ;;  %10652 = vpow2.f32 %v7577_v13  ;;  %v2590_v2 = vmul.f32 %v10631_v59, %v12673_v51  ;;  %v7820_v53 = vsel %vm4322_vm10, 1.0, %v10854_v37  ;;  %vm4328_vm0 = vcmp.eq.s32.totalorder %v11388_v21, %v12845_v23 }
 0x343   : > { %v12863_v19 = vpop.f32.mrb[5].mxu1  ;;  %v10635_v24 = vpop.eup %10634  ;;  %v2212_v32 = vadd.f32 1.0, %v10633_v6  ;;  %10654 = vpow2.f32 %v7580_v1  ;;  %9224 = vmatprep.mubr.msk.f32.mxu1 %vm2609_vm3, %v2587_v8 }
 0x344   : > { %v12869_v26 = vpop.f32.mrb[126].mxu0  ;;  %v10637_v40 = vpop.eup %10636  ;;  %v2211_v31 = vadd.f32 1.0, %v10635_v24  ;;  %10656 = vpow2.f32 %v7579_v55  ;;  %9412 = vmatmul.mubr.msk.f32.gmra.mrb[232].mxu0 %vm4599_vm6, %v7816_v25 }
 0x345   : > { %v7582_v42 = vmul.f32 -1.442695, %v12869_v26  ;;  %v12872_v46 = vpop.f32.mrb[127].mxu0  ;;  %v12875_v16 = vpop.permute.xlu0 %4178  ;;  %v2589_v63 = vmul.f32 %v10637_v40, %v12682_v38  ;;  %10658 = vrcp.f32 %v2212_v32  ;;  %9225 = vmatmul.mubr.msk.f32.gmra.mrb[110].mxu1 %vm2609_vm3, %v2588_v62  ;;  %9414 = vmatprep.mubr.msk.f32.mxu0 %vm4599_vm6, %v7817_v15  ;;  %v7822_v32 = vsel %vm4324_vm12, 1.0, %v10854_v37 }
 0x346   : > { %v10639_v61 = vpop.eup %10638  ;;  %v7581_v35 = vmul.f32 -1.442695, %v12872_v46  ;;  %10660 = vrcp.f32 %v2211_v31  ;;  %v12891_v38 = vpop.permute.xlu1 %4181  ;;  %v7823_v31 = vsel %vm4325_vm13, 1.0, %v10854_v37  ;;  %vm4329_vm1 = vcmp.eq.s32.totalorder %v11388_v21, %v12875_v16 }
 0x347   : > { %v10641_v52 = vpop.eup %10640  ;;  %10662 = vpow2.f32 %v7582_v42  ;;  %v12896_v29 = vpop.f32.mrb[6].mxu1  ;;  %9227 = vmatprep.mubr.msk.f32.mxu1 %vm2609_vm3, %v2589_v63  ;;  %v2592_v59 = vmul.f32 %v10639_v61, %v12700_v47  ;;  %vm4330_vm4 = vcmp.eq.s32.totalorder %v11388_v21, %v12891_v38 }
 0x348   : > { %v10643_v4 = vpop.eup %10642  ;;  %v2214_v17 = vadd.f32 1.0, %v10641_v52  ;;  %v9257_v43 = vpop.f32.mrb[128].mxu0  ;;  %10664 = vpow2.f32 %v7581_v35  ;;  %9415 = vmatmul.mubr.msk.f32.gmra.mrb[234].mxu0 %vm4599_vm6, %v7818_v0  ;;  %v7828_v38 = vsel %vm4330_vm4, 1.0, %v10854_v37 }
 0x349   : > { %v10645_v58 = vpop.eup %10644  ;;  %v2213_v12 = vadd.f32 1.0, %v10643_v4  ;;  %v12899_v30 = vpop.f32.mrb[7].mxu1  ;;  %v12902_v13 = vmul.f32 %v9257_v43, %v12795_v3  ;;  %9228 = vmatmul.mubr.msk.f32.gmra.mrb[112].mxu1 %vm2609_vm3, %v2590_v2  ;;  %9417 = vmatprep.mubr.msk.f32.mxu0 %vm4599_vm6, %v7819_v28  ;;  %v7824_v2 = vsel %vm4326_vm14, 1.0, %v10854_v37 }
 0x34a   : > { %v5050_v11 = vpop.f32.mrb[129].mxu0  ;;  %v10647_v51 = vpop.eup %10646  ;;  %v2591_v14 = vmul.f32 %v10645_v58, %v12708_v22  ;;  %10666 = vrcp.f32 %v2214_v17  ;;  %v7821_v22 = vsel %vm4323_vm11, 1.0, %v10854_v37 }
 0x34b   : > { %v12912_v57 = vmul.f32 %v5050_v11, %v12803_v20  ;;  %v10649_v3 = vpop.eup %10648  ;;  %10668 = vrcp.f32 %v2213_v12  ;;  %v12921_v1 = vpop.permute.xlu0 %4184 }
 0x34c   : > { %v10651_v34 = vpop.eup %10650  ;;  %v2216_v8 = vadd.f32 1.0, %v10649_v3  ;;  %v12926_v20 = vpop.f32.mrb[8].mxu1  ;;  %9230 = vmatprep.mubr.msk.f32.mxu1 %vm2609_vm3, %v2591_v14  ;;  %9418 = vmatmul.mubr.msk.f32.gmra.mrb[236].mxu0 %vm4599_vm6, %v7820_v53  ;;  %vm4331_vm5 = vcmp.eq.s32.totalorder %v11388_v21, %v12921_v1 }
 0x34d   : > { %v9260_v25 = vpop.f32.mrb[130].mxu0  ;;  %v10653_v55 = vpop.eup %10652  ;;  %v2593_v44 = vmul.f32 %v10651_v34, %v12736_v5  ;;  %9231 = vmatmul.mubr.msk.f32.gmra.mrb[114].mxu1 %vm2609_vm3, %v2592_v59  ;;  %9420 = vmatprep.mubr.msk.f32.mxu0 %vm4599_vm6, %v7821_v22  ;;  %v7826_v22 = vsel %vm4328_vm0, 1.0, %v10854_v37 }
 0x34e   : > { %v12930_v6 = vpop.f32.mrb[9].mxu1  ;;  %v12933_v15 = vmul.f32 %v9260_v25, %v12824_v54  ;;  %v5060_v24 = vpop.f32.mrb[131].mxu0  ;;  %v2215_v62 = vadd.f32 1.0, %v10653_v55  ;;  %10670 = vrcp.f32 %v2216_v8 }
 0x34f   : > { %v10655_v47 = vpop.eup %10654  ;;  %v12942_v40 = vmul.f32 %v5060_v24, %v12831_v48  ;;  %9233 = vmatprep.mubr.msk.f32.mxu1 %vm2609_vm3, %v2593_v44  ;;  %v12952_v9 = vpop.permute.xlu1 %4187  ;;  %v2594_v48 = vmul.f32 %v10647_v51, %v12728_v50 }
 0x350   : > { %v10657_v5 = vpop.eup %10656  ;;  %v2218_v54 = vadd.f32 1.0, %v10655_v47  ;;  %10672 = vrcp.f32 %v2215_v62  ;;  %v12957_v63 = vpop.f32.mrb[10].mxu1  ;;  %9421 = vmatmul.mubr.msk.f32.gmra.mrb[238].mxu0 %vm4599_vm6, %v7822_v32  ;;  %vm4332_vm7 = vcmp.eq.s32.totalorder %v11388_v21, %v12952_v9 }
 0x351   : > { %v10659_v42 = vpop.eup %10658  ;;  %v2217_v61 = vadd.f32 1.0, %v10657_v5  ;;  %v9263_v0 = vpop.f32.mrb[132].mxu0  ;;  %9234 = vmatmul.mubr.msk.f32.gmra.mrb[116].mxu1 %vm2609_vm3, %v2594_v48  ;;  %9423 = vmatprep.mubr.msk.f32.mxu0 %vm4599_vm6, %v7823_v31  ;;  %v7830_v9 = vsel %vm4332_vm7, 1.0, %v10854_v37 }
 0x352   : > { %v10661_v36 = vpop.eup %10660  ;;  %v12959_v35 = vpop.f32.mrb[11].mxu1  ;;  %v12962_v52 = vmul.f32 %v9263_v0, %v12854_v39  ;;  %v2596_v12 = vmul.f32 %v10659_v42, %v12754_v56 }
 0x353   : > { %v5070_v28 = vpop.f32.mrb[133].mxu0  ;;  %v10663_v4 = vpop.eup %10662  ;;  %v2595_v50 = vmul.f32 %v10661_v36, %v12761_v33  ;;  %10674 = vrcp.f32 %v2217_v61  ;;  %v7825_v33 = vsel %vm4327_vm15, 1.0, %v10854_v37 }
 0x354   : > { %v12972_v17 = vmul.f32 %v5070_v28, %v12863_v19  ;;  %v10665_v39 = vpop.eup %10664  ;;  %10676 = vrcp.f32 %v2218_v54  ;;  %v2220_v43 = vadd.f32 1.0, %v10663_v4  ;;  %v4191_v18 = vpop.permute.xlu0 %4190  ;;  %9424 = vmatmul.mubr.msk.f32.gmra.mrb[240].mxu0 %vm4599_vm6, %v7824_v2 }
 0x355   : > { %v10667_v58 = vpop.eup %10666  ;;  %v2219_v11 = vadd.f32 1.0, %v10665_v39  ;;  %v12984_v19 = vpop.f32.mrb[12].mxu1  ;;  %9236 = vmatprep.mubr.msk.f32.mxu1 %vm2609_vm3, %v2595_v50  ;;  %9426 = vmatprep.mubr.msk.f32.mxu0 %vm4599_vm6, %v7825_v33  ;;  %vm4333_vm8 = vcmp.eq.s32.totalorder %v11388_v21, %v4191_v18 }
 0x356   : > { %v9266_v51 = vpop.f32.mrb[134].mxu0  ;;  %v10669_v14 = vpop.eup %10668  ;;  %9237 = vmatmul.mubr.msk.f32.gmra.mrb[118].mxu1 %vm2609_vm3, %v2596_v12  ;;  %v2598_v23 = vmul.f32 %v10667_v58, %v12779_v45 }
 0x357   : > { %v12987_v53 = vpop.f32.mrb[13].mxu1  ;;  %v12990_v27 = vmul.f32 %v9266_v51, %v12896_v29  ;;  %v5080_v3 = vpop.f32.mrb[135].mxu0  ;;  %v2597_v56 = vmul.f32 %v10669_v14, %v12784_v7  ;;  %10678 = vrcp.f32 %v2219_v11  ;;  %v7827_v29 = vsel %vm4329_vm1, 1.0, %v10854_v37 }
 0x358   : > { %v13000_v34 = vmul.f32 %v5080_v3, %v12899_v30  ;;  %10680 = vrcp.f32 %v2220_v43  ;;  %v4194_v7 = vpop.permute.xlu1 %4193  ;;  %v9082_v59 = vpop.f32.mrb[14].mxu1  ;;  %9427 = vmatmul.mubr.msk.f32.gmra.mrb[242].mxu0 %vm4599_vm6, %v7826_v22 }
 0x359   : > { %9239 = vmatprep.mubr.msk.f32.mxu1 %vm2609_vm3, %v2597_v56  ;;  %v9269_v30 = vpop.f32.mrb[136].mxu0  ;;  %v10671_v8 = vpop.eup %10670  ;;  %9429 = vmatprep.mubr.msk.f32.mxu0 %vm4599_vm6, %v7827_v29  ;;  %vm4334_vm9 = vcmp.eq.s32.totalorder %v11388_v21, %v4194_v7 }
 0x35a   : > { %v3130_v25 = vpop.f32.mrb[15].mxu1  ;;  %v13014_v55 = vmul.f32 %v9269_v30, %v12926_v20  ;;  %v5090_v16 = vpop.f32.mrb[137].mxu0  ;;  %9240 = vmatmul.mubr.msk.f32.gmra.mrb[120].mxu1 %vm2609_vm3, %v2598_v23  ;;  %v7829_v20 = vsel %vm4331_vm5, 1.0, %v10854_v37  ;;  %v2600_v32 = vmul.f32 %v10671_v8, %v12808_v10  ;;  %v7832_v39 = vsel %vm4334_vm9, 1.0, %v10854_v37  ;;  %v10683_v8 = vld [vmem:[%s10932_s20 + $0x8] sm:$0xff] }
 0x35b   : > { %v10673_v44 = vpop.eup %10672  ;;  %v4197_v24 = vpop.permute.xlu0 %4196  ;;  %v13020_v45 = vmul.f32 %v5090_v16, %v12930_v6  ;;  %v10684_v16 = vld [vmem:[%s10932_s20 + $0x10] sm:$0xff] }
 0x35c   : > { %v2599_v47 = vmul.f32 %v10673_v44, %v12812_v41  ;;  %v9085_v5 = vpop.f32.mrb[16].mxu1  ;;  %v9272_v6 = vpop.f32.mrb[138].mxu0  ;;  %9430 = vmatmul.mubr.msk.f32.gmra.mrb[244].mxu0 %vm4599_vm6, %v7828_v38  ;;  %vm4335_vm10 = vcmp.eq.s32.totalorder %v11388_v21, %v4197_v24 }
 0x35d   : > { %v10675_v62 = vpop.eup %10674  ;;  %v3140_v41 = vpop.f32.mrb[17].mxu1  ;;  %v13035_v42 = vmul.f32 %v9272_v6, %v12957_v63  ;;  %9432 = vmatprep.mubr.msk.f32.mxu0 %vm4599_vm6, %v7829_v20  ;;  %v7833_v58 = vsel %vm4335_vm10, 1.0, %v10854_v37 }
 0x35e   : > { %v10677_v54 = vpop.eup %10676  ;;  %v2601_v31 = vmul.f32 %v10675_v62, %v12842_v49  ;;  %9242 = vmatprep.mubr.msk.f32.mxu1 %vm2609_vm3, %v2599_v47  ;;  %v5100_v1 = vpop.f32.mrb[139].mxu0  ;;  %v7831_v49 = vsel %vm4333_vm8, 1.0, %v10854_v37 }
 0x35f   : > { %v4200_v48 = vpop.permute.xlu1 %4199  ;;  %9243 = vmatmul.mubr.msk.f32.gmra.mrb[122].mxu1 %vm2609_vm3, %v2600_v32  ;;  %v13041_v10 = vmul.f32 %v5100_v1, %v12959_v35  ;;  %v2602_v63 = vmul.f32 %v10677_v54, %v12838_v60  ;;  %v4203_v0 = vpop.permute.xlu0 %4202  ;;  %v10686_v54 = vld [vmem:[%s10932_s20 + $0x20] sm:$0xff] }
 0x360   : > { %9245 = vmatprep.mubr.msk.f32.mxu1 %vm2609_vm3, %v2601_v31  ;;  %v9275_v36 = vpop.f32.mrb[140].mxu0  ;;  %v9088_v50 = vpop.f32.mrb[18].mxu1  ;;  %9433 = vmatmul.mubr.msk.f32.gmra.mrb[246].mxu0 %vm4599_vm6, %v7830_v9  ;;  %vm4336_vm11 = vcmp.eq.s32.totalorder %v11388_v21, %v4200_v48  ;;  %vm4337_vm12 = vcmp.eq.s32.totalorder %v11388_v21, %v4203_v0 }
 0x361   : > { %v10679_v61 = vpop.eup %10678  ;;  %v13050_v35 = vmul.f32 %v9275_v36, %v12984_v19  ;;  %v5110_v2 = vpop.f32.mrb[141].mxu0  ;;  %9435 = vmatprep.mubr.msk.f32.mxu0 %vm4599_vm6, %v7831_v49  ;;  %v7834_v3 = vsel %vm4336_vm11, 1.0, %v10854_v37  ;;  %v7835_v22 = vsel %vm4337_vm12, 1.0, %v10854_v37  ;;  %v10687_v49 = vld [vmem:[%s10932_s20 + $0x28] sm:$0xff] }
 0x362   : > { %v10681_v28 = vpop.eup %10680  ;;  %v2603_v4 = vmul.f32 %v10679_v61, %v12872_v46  ;;  %v3150_v43 = vpop.f32.mrb[19].mxu1  ;;  %v13057_v60 = vmul.f32 %v5110_v2, %v12987_v53  ;;  %v10682_v53 = vld [vmem:[%s10932_s20] sm:$0xff] }
 0x363   : > { %9246 = vmatmul.mubr.msk.f32.gmra.mrb[124].mxu1 %vm2609_vm3, %v2602_v63  ;;  %v2604_v46 = vmul.f32 %v10681_v28, %v12869_v26  ;;  %v4206_v33 = vpop.permute.xlu1 %4205  ;;  %v9278_v18 = vpop.f32.mrb[142].mxu0  ;;  %v10688_v63 = vld [vmem:[%s10932_s20 + $0x30] sm:$0xff] }
 0x364   : > { %9248 = vmatprep.mubr.msk.f32.mxu1 %vm2609_vm3, %v2603_v4  ;;  %v9091_v12 = vpop.f32.mrb[20].mxu1  ;;  %v13064_v11 = vmul.f32 %v9278_v18, %v9082_v59  ;;  %v5120_v19 = vpop.f32.mrb[143].mxu0  ;;  %9436 = vmatmul.mubr.msk.f32.gmra.mrb[248].mxu0 %vm4599_vm6, %v7832_v39  ;;  %vm4338_vm13 = vcmp.eq.s32.totalorder %v11388_v21, %v4206_v33  ;;  %v10690_v39 = vld [vmem:[%s10932_s20 + $0x40] sm:$0xff] }
 0x365   : > { %v3160_v51 = vpop.f32.mrb[21].mxu1  ;;  %v13069_v14 = vmul.f32 %v5120_v19, %v3130_v25  ;;  %9438 = vmatprep.mubr.msk.f32.mxu0 %vm4599_vm6, %v7833_v58  ;;  %v4209_v26 = vpop.permute.xlu0 %4208  ;;  %v7836_v44 = vsel %vm4338_vm13, 1.0, %v10854_v37 }
 0x366   : > { %vm4339_vm14 = vcmp.eq.s32.totalorder %v11388_v21, %v4209_v26 }
 0x367   : > { %9249 = vmatmul.mubr.msk.f32.gmra.mrb[126].mxu1 %vm2609_vm3, %v2604_v46  ;;  %v9281_v56 = vpop.f32.mrb[144].mxu0  ;;  %v4212_v59 = vpop.permute.xlu1 %4211  ;;  %v7837_v24 = vsel %vm4339_vm14, 1.0, %v10854_v37 }
 0x368   : > { %9453 = vmatprep.mubr.msk.f32.mxu1 %vm619_vm2, %v10682_v53  ;;  %v9094_v29 = vpop.f32.mrb[22].mxu1  ;;  %v13077_v7 = vmul.f32 %v9281_v56, %v9085_v5  ;;  %v5130_v23 = vpop.f32.mrb[145].mxu0  ;;  %9439 = vmatmul.mubr.msk.f32.gmra.mrb[250].mxu0 %vm4599_vm6, %v7834_v3  ;;  %vm4340_vm15 = vcmp.eq.s32.totalorder %v11388_v21, %v4212_v59  ;;  %v10685_v5 = vld [vmem:[%s10932_s20 + $0x18] sm:$0xff]  ;;  %v10694_v59 = vld [vmem:[%s10932_s20 + $0x60] sm:$0xff] }
 0x369   : > { %v3170_v30 = vpop.f32.mrb[23].mxu1  ;;  %v13083_v25 = vmul.f32 %v5130_v23, %v3140_v41  ;;  %9441 = vmatprep.mubr.msk.f32.mxu0 %vm4599_vm6, %v7835_v22  ;;  %v7838_v21 = vsel %vm4340_vm15, 1.0, %v10854_v37 }
 0x36b   : > { %9454 = vmatmul.mubr.msk.f32.vlgmr.msra.gmra.mrb[128].mxu1 %vm619_vm2, %v10683_v8  ;;  %v9284_v38 = vpop.f32.mrb[146].mxu0 }
 0x36c   : > { %9456 = vmatprep.mubr.msk.f32.mxu1 %vm619_vm2, %v10684_v16  ;;  %v9097_v47 = vpop.f32.mrb[24].mxu1  ;;  %v13091_v20 = vmul.f32 %v9284_v38, %v9088_v50  ;;  %v5140_v62 = vpop.f32.mrb[147].mxu0  ;;  %9442 = vmatmul.mubr.msk.f32.gmra.mrb[252].mxu0 %vm4599_vm6, %v7836_v44  ;;  %v10689_v50 = vld [vmem:[%s10932_s20 + $0x38] sm:$0xff] }
 0x36d   : > { %v3180_v32 = vpop.f32.mrb[25].mxu1  ;;  %v13096_v6 = vmul.f32 %v5140_v62, %v3150_v43  ;;  %9444 = vmatprep.mubr.msk.f32.mxu0 %vm4599_vm6, %v7837_v24  ;;  %v10695_v24 = vld [vmem:[%s10932_s20 + $0x68] sm:$0xff]  ;;  %v10696_v62 = vld [vmem:[%s10932_s20 + $0x70] sm:$0xff] }
 0x36f   : > { %9457 = vmatmul.mubr.msk.f32.gmra.mrb[130].mxu1 %vm619_vm2, %v10685_v5  ;;  %v9287_v31 = vpop.f32.mrb[148].mxu0 }
 0x370   : > { %9459 = vmatprep.mubr.msk.f32.mxu1 %vm619_vm2, %v10686_v54  ;;  %v9100_v41 = vpop.f32.mrb[26].mxu1  ;;  %v13102_v1 = vmul.f32 %v9287_v31, %v9091_v12  ;;  %v5150_v9 = vpop.f32.mrb[149].mxu0  ;;  %9445 = vmatmul.mubr.msk.f32.gmra.mrb[254].mxu0 %vm4599_vm6, %v7838_v21  ;;  %v10691_v12 = vld [vmem:[%s10932_s20 + $0x48] sm:$0xff] }
 0x371   : > { %v3190_v48 = vpop.f32.mrb[27].mxu1  ;;  %v13107_v61 = vmul.f32 %v5150_v9, %v3160_v51  ;;  %v10692_v51 = vld [vmem:[%s10932_s20 + $0x50] sm:$0xff] }
 0x373   : > { %9460 = vmatmul.mubr.msk.f32.gmra.mrb[132].mxu1 %vm619_vm2, %v10687_v49  ;;  %v9290_v37 = vpop.f32.mrb[150].mxu0 }
 0x374   : > { %9462 = vmatprep.mubr.msk.f32.mxu1 %vm619_vm2, %v10688_v63  ;;  %v9103_v0 = vpop.f32.mrb[28].mxu1  ;;  %v13111_v36 = vmul.f32 %v9290_v37, %v9094_v29  ;;  %v5160_v28 = vpop.f32.mrb[151].mxu0  ;;  %v10693_v29 = vld [vmem:[%s10932_s20 + $0x58] sm:$0xff] }
 0x375   : > { %v3200_v4 = vpop.f32.mrb[29].mxu1  ;;  %v13115_v2 = vmul.f32 %v5160_v28, %v3170_v30 }
 0x377   : > { %9463 = vmatmul.mubr.msk.f32.gmra.mrb[134].mxu1 %vm619_vm2, %v10689_v50  ;;  %v9293_v43 = vpop.f32.mrb[152].mxu0 }
 0x378   : > { %9465 = vmatprep.mubr.msk.f32.mxu1 %vm619_vm2, %v10690_v39  ;;  %v9106_v46 = vpop.f32.mrb[30].mxu1  ;;  %v13119_v33 = vmul.f32 %v9293_v43, %v9097_v47  ;;  %v5170_v18 = vpop.f32.mrb[153].mxu0  ;;  %v10700_v39 = vld [vmem:[%s10932_s20 + $0x90] sm:$0xff] }
 0x379   : > { %v3210_v58 = vpop.f32.mrb[31].mxu1  ;;  %v13123_v19 = vmul.f32 %v5170_v18, %v3180_v32 }
 0x37b   : > { %9466 = vmatmul.mubr.msk.f32.gmra.mrb[136].mxu1 %vm619_vm2, %v10691_v12  ;;  %v9296_v26 = vpop.f32.mrb[154].mxu0 }
 0x37c   : > { %9468 = vmatprep.mubr.msk.f32.mxu1 %vm619_vm2, %v10692_v51  ;;  %v9109_v53 = vpop.f32.mrb[32].mxu1  ;;  %v13127_v3 = vmul.f32 %v9296_v26, %v9100_v41  ;;  %v5180_v56 = vpop.f32.mrb[155].mxu0  ;;  %v10697_v41 = vld [vmem:[%s10932_s20 + $0x78] sm:$0xff] }
 0x37d   : > { %v3220_v22 = vpop.f32.mrb[33].mxu1  ;;  %v13131_v23 = vmul.f32 %v5180_v56, %v3190_v48  ;;  %v10698_v48 = vld [vmem:[%s10932_s20 + $0x80] sm:$0xff]  ;;  %v10701_v51 = vld [vmem:[%s10932_s20 + $0x98] sm:$0xff] }
 0x37f   : > { %9469 = vmatmul.mubr.msk.f32.gmra.mrb[138].mxu1 %vm619_vm2, %v10693_v29  ;;  %v9299_v30 = vpop.f32.mrb[156].mxu0 }
 0x380   : > { %9471 = vmatprep.mubr.msk.f32.mxu1 %vm619_vm2, %v10694_v59  ;;  %v9112_v8 = vpop.f32.mrb[34].mxu1  ;;  %v13135_v16 = vmul.f32 %v9299_v30, %v9103_v0  ;;  %v5190_v44 = vpop.f32.mrb[157].mxu0 }
 0x381   : > { %v3230_v38 = vpop.f32.mrb[35].mxu1  ;;  %v13139_v47 = vmul.f32 %v5190_v44, %v3200_v4  ;;  %v10699_v4 = vld [vmem:[%s10932_s20 + $0x88] sm:$0xff] }
 0x383   : > { %9472 = vmatmul.mubr.msk.f32.gmra.mrb[140].mxu1 %vm619_vm2, %v10695_v24  ;;  %v9302_v32 = vpop.f32.mrb[158].mxu0  ;;  %v10704_v24 = vld [vmem:[%s10932_s20 + $0xb0] sm:$0xff] }
 0x384   : > { %9474 = vmatprep.mubr.msk.f32.mxu1 %vm619_vm2, %v10696_v62  ;;  %v9115_v5 = vpop.f32.mrb[36].mxu1  ;;  %v13143_v54 = vmul.f32 %v9302_v32, %v9106_v46  ;;  %v5200_v21 = vpop.f32.mrb[159].mxu0 }
 0x385   : > { %v3240_v31 = vpop.f32.mrb[37].mxu1  ;;  %v13147_v9 = vmul.f32 %v5200_v21, %v3210_v58 }
 0x387   : > { %9475 = vmatmul.mubr.msk.f32.gmra.mrb[142].mxu1 %vm619_vm2, %v10697_v41  ;;  %v9305_v49 = vpop.f32.mrb[160].mxu0  ;;  %v10705_v41 = vld [vmem:[%s10932_s20 + $0xb8] sm:$0xff] }
 0x388   : > { %9477 = vmatprep.mubr.msk.f32.mxu1 %vm619_vm2, %v10698_v48  ;;  %v9118_v63 = vpop.f32.mrb[38].mxu1  ;;  %v13151_v37 = vmul.f32 %v9305_v49, %v9109_v53  ;;  %v5210_v0 = vpop.f32.mrb[161].mxu0  ;;  %v10702_v53 = vld [vmem:[%s10932_s20 + $0xa0] sm:$0xff] }
 0x389   : > { %v3250_v28 = vpop.f32.mrb[39].mxu1  ;;  %v13155_v50 = vmul.f32 %v5210_v0, %v3220_v22  ;;  %v10706_v49 = vld [vmem:[%s10932_s20 + $0xc0] sm:$0xff] }
 0x38b   : > { %9478 = vmatmul.mubr.msk.f32.gmra.mrb[144].mxu1 %vm619_vm2, %v10699_v4  ;;  %v9308_v43 = vpop.f32.mrb[162].mxu0 }
 0x38c   : > { %9480 = vmatprep.mubr.msk.f32.mxu1 %vm619_vm2, %v10700_v39  ;;  %v9121_v46 = vpop.f32.mrb[40].mxu1  ;;  %v13159_v18 = vmul.f32 %v9308_v43, %v9112_v8  ;;  %v5220_v58 = vpop.f32.mrb[163].mxu0  ;;  %v10703_v8 = vld [vmem:[%s10932_s20 + $0xa8] sm:$0xff] }
 0x38d   : > { %v3260_v12 = vpop.f32.mrb[41].mxu1  ;;  %v13163_v26 = vmul.f32 %v5220_v58, %v3230_v38  ;;  %v10707_v43 = vld [vmem:[%s10932_s20 + $0xc8] sm:$0xff] }
 0x38f   : > { %9481 = vmatmul.mubr.msk.f32.gmra.mrb[146].mxu1 %vm619_vm2, %v10701_v51  ;;  %v9311_v56 = vpop.f32.mrb[164].mxu0  ;;  %v10708_v51 = vld [vmem:[%s10932_s20 + $0xd0] sm:$0xff] }
 0x390   : > { %9483 = vmatprep.mubr.msk.f32.mxu1 %vm619_vm2, %v10702_v53  ;;  %v9124_v22 = vpop.f32.mrb[42].mxu1  ;;  %v13167_v29 = vmul.f32 %v9311_v56, %v9115_v5  ;;  %v5230_v59 = vpop.f32.mrb[165].mxu0 }
 0x391   : > { %v3270_v30 = vpop.f32.mrb[43].mxu1  ;;  %v13171_v44 = vmul.f32 %v5230_v59, %v3240_v31 }
 0x393   : > { %9484 = vmatmul.mubr.msk.f32.gmra.mrb[148].mxu1 %vm619_vm2, %v10703_v8  ;;  %v9314_v38 = vpop.f32.mrb[166].mxu0  ;;  %v10709_v8 = vld [vmem:[%s10932_s20 + $0xd8] sm:$0xff] }
 0x394   : > { %9486 = vmatprep.mubr.msk.f32.mxu1 %vm619_vm2, %v10704_v24  ;;  %v9127_v62 = vpop.f32.mrb[44].mxu1  ;;  %v13175_v32 = vmul.f32 %v9314_v38, %v9118_v63  ;;  %v5240_v21 = vpop.f32.mrb[167].mxu0  ;;  %v10710_v38 = vld [vmem:[%s10932_s20 + $0xe0] sm:$0xff] }
 0x395   : > { %v3280_v5 = vpop.f32.mrb[45].mxu1  ;;  %v13179_v48 = vmul.f32 %v5240_v21, %v3250_v28 }
 0x397   : > { %9487 = vmatmul.mubr.msk.f32.gmra.mrb[150].mxu1 %vm619_vm2, %v10705_v41  ;;  %v9317_v31 = vpop.f32.mrb[168].mxu0 }
 0x398   : > { %9489 = vmatprep.mubr.msk.f32.mxu1 %vm619_vm2, %v10706_v49  ;;  %v9130_v0 = vpop.f32.mrb[46].mxu1  ;;  %v13183_v4 = vmul.f32 %v9317_v31, %v9121_v46  ;;  %v5250_v39 = vpop.f32.mrb[169].mxu0  ;;  %v10711_v31 = vld [vmem:[%s10932_s20 + $0xe8] sm:$0xff] }
 0x399   : > { %v3290_v63 = vpop.f32.mrb[47].mxu1  ;;  %v13187_v58 = vmul.f32 %v5250_v39, %v3260_v12 }
 0x39b   : > { %9490 = vmatmul.mubr.msk.f32.gmra.mrb[152].mxu1 %vm619_vm2, %v10707_v43  ;;  %v9320_v28 = vpop.f32.mrb[170].mxu0  ;;  %v10712_v43 = vld [vmem:[%s10932_s20 + $0xf0] sm:$0xff] }
 0x39c   : > { %9492 = vmatprep.mubr.msk.f32.mxu1 %vm619_vm2, %v10708_v51  ;;  %v9133_v53 = vpop.f32.mrb[48].mxu1  ;;  %v13191_v56 = vmul.f32 %v9320_v28, %v9124_v22  ;;  %v5260_v59 = vpop.f32.mrb[171].mxu0 }
 0x39d   : > { %v3300_v46 = vpop.f32.mrb[49].mxu1  ;;  %v13195_v24 = vmul.f32 %v5260_v59, %v3270_v30 }
 0x39f   : > { %9493 = vmatmul.mubr.msk.f32.gmra.mrb[154].mxu1 %vm619_vm2, %v10709_v8  ;;  %v9323_v12 = vpop.f32.mrb[172].mxu0  ;;  %v10713_v8 = vld [vmem:[%s10932_s20 + $0xf8] sm:$0xff] }
 0x3a0   : > { %9495 = vmatprep.mubr.msk.f32.mxu1 %vm619_vm2, %v10710_v38  ;;  %v9136_v21 = vpop.f32.mrb[50].mxu1  ;;  %v13199_v41 = vmul.f32 %v9323_v12, %v9127_v62  ;;  %v5270_v49 = vpop.f32.mrb[173].mxu0  ;;  %v10714_v12 = vld [vmem:[%s10932_s20 + $0x100] sm:$0xff] }
 0x3a1   : > { %v3310_v22 = vpop.f32.mrb[51].mxu1  ;;  %v13203_v39 = vmul.f32 %v5270_v49, %v3280_v5 }
 0x3a3   : > { %9496 = vmatmul.mubr.msk.f32.gmra.mrb[156].mxu1 %vm619_vm2, %v10711_v31  ;;  %14088 = vst [vmem:[#allocation8_spill] sm:$0xff] %v13203_v39  ;;  %v9326_v30 = vpop.f32.mrb[174].mxu0  ;;  %v10716_v39 = vld [vmem:[%s10932_s20 + $0x110] sm:$0xff] }
 0x3a4   : > { %9498 = vmatprep.mubr.msk.f32.mxu1 %vm619_vm2, %v10712_v43  ;;  %v9139_v51 = vpop.f32.mrb[52].mxu1  ;;  %v13207_v28 = vmul.f32 %v9326_v30, %v9130_v0  ;;  %v5280_v59 = vpop.f32.mrb[175].mxu0  ;;  %v10715_v30 = vld [vmem:[%s10932_s20 + $0x108] sm:$0xff] }
 0x3a5   : > { %v3320_v62 = vpop.f32.mrb[53].mxu1  ;;  %v13211_v38 = vmul.f32 %v5280_v59, %v3290_v63 }
 0x3a6   : > { %14089 = vst [vmem:[#allocation9_spill] sm:$0xff] %v13207_v28 }
 0x3a7   : > { %9499 = vmatmul.mubr.msk.f32.gmra.mrb[158].mxu1 %vm619_vm2, %v10713_v8  ;;  %14090 = vst [vmem:[#allocation10_spill] sm:$0xff] %v13211_v38  ;;  %v9329_v5 = vpop.f32.mrb[176].mxu0  ;;  %v10718_v38 = vld [vmem:[%s10932_s20 + $0x120] sm:$0xff] }
 0x3a8   : > { %9501 = vmatprep.mubr.msk.f32.mxu1 %vm619_vm2, %v10714_v12  ;;  %v9142_v49 = vpop.f32.mrb[54].mxu1  ;;  %v13215_v31 = vmul.f32 %v9329_v5, %v9133_v53  ;;  %v5290_v43 = vpop.f32.mrb[177].mxu0  ;;  %v10717_v5 = vld [vmem:[%s10932_s20 + $0x118] sm:$0xff] }
 0x3a9   : > { %v3330_v0 = vpop.f32.mrb[55].mxu1  ;;  %v13219_v28 = vmul.f32 %v5290_v43, %v3300_v46 }
 0x3aa   : > { %14091 = vst [vmem:[#allocation11_spill] sm:$0xff] %v13215_v31 }
 0x3ab   : > { %9502 = vmatmul.mubr.msk.f32.gmra.mrb[160].mxu1 %vm619_vm2, %v10715_v30  ;;  %14092 = vst [vmem:[#allocation12_spill] sm:$0xff] %v13219_v28  ;;  %v9332_v63 = vpop.f32.mrb[178].mxu0  ;;  %v10720_v28 = vld [vmem:[%s10932_s20 + $0x130] sm:$0xff] }
 0x3ac   : > { %9504 = vmatprep.mubr.msk.f32.mxu1 %vm619_vm2, %v10716_v39  ;;  %v9145_v59 = vpop.f32.mrb[56].mxu1  ;;  %v13223_v8 = vmul.f32 %v9332_v63, %v9136_v21  ;;  %v5300_v12 = vpop.f32.mrb[179].mxu0  ;;  %v10719_v63 = vld [vmem:[%s10932_s20 + $0x128] sm:$0xff] }
 0x3ad   : > { %v3340_v53 = vpop.f32.mrb[57].mxu1  ;;  %v13227_v31 = vmul.f32 %v5300_v12, %v3310_v22 }
 0x3ae   : > { %14093 = vst [vmem:[#allocation13_spill] sm:$0xff] %v13223_v8 }
 0x3af   : > { %9505 = vmatmul.mubr.msk.f32.gmra.mrb[162].mxu1 %vm619_vm2, %v10717_v5  ;;  %14094 = vst [vmem:[#allocation14_spill] sm:$0xff] %v13227_v31  ;;  %v9335_v46 = vpop.f32.mrb[180].mxu0  ;;  %v10722_v31 = vld [vmem:[%s10932_s20 + $0x140] sm:$0xff] }
 0x3b0   : > { %9507 = vmatprep.mubr.msk.f32.mxu1 %vm619_vm2, %v10718_v38  ;;  %v9148_v43 = vpop.f32.mrb[58].mxu1  ;;  %v13231_v39 = vmul.f32 %v9335_v46, %v9139_v51  ;;  %v5310_v30 = vpop.f32.mrb[181].mxu0  ;;  %v10721_v46 = vld [vmem:[%s10932_s20 + $0x138] sm:$0xff] }
 0x3b1   : > { %v3350_v21 = vpop.f32.mrb[59].mxu1  ;;  %v13235_v8 = vmul.f32 %v5310_v30, %v3320_v62 }
 0x3b2   : > { %14095 = vst [vmem:[#allocation15_spill] sm:$0xff] %v13231_v39 }
 0x3b3   : > { %9508 = vmatmul.mubr.msk.f32.gmra.mrb[164].mxu1 %vm619_vm2, %v10719_v63  ;;  %14096 = vst [vmem:[#allocation16_spill] sm:$0xff] %v13235_v8  ;;  %v9338_v22 = vpop.f32.mrb[182].mxu0  ;;  %v10724_v8 = vld [vmem:[%s10932_s20 + $0x150] sm:$0xff] }
 0x3b4   : > { %9510 = vmatprep.mubr.msk.f32.mxu1 %vm619_vm2, %v10720_v28  ;;  %v9151_v12 = vpop.f32.mrb[60].mxu1  ;;  %v13239_v38 = vmul.f32 %v9338_v22, %v9142_v49  ;;  %v5320_v5 = vpop.f32.mrb[183].mxu0  ;;  %v10723_v22 = vld [vmem:[%s10932_s20 + $0x148] sm:$0xff] }
 0x3b5   : > { %v3360_v51 = vpop.f32.mrb[61].mxu1  ;;  %v13243_v39 = vmul.f32 %v5320_v5, %v3330_v0 }
 0x3b6   : > { %14097 = vst [vmem:[#allocation17_spill] sm:$0xff] %v13239_v38 }
 0x3b7   : > { %9511 = vmatmul.mubr.msk.f32.gmra.mrb[166].mxu1 %vm619_vm2, %v10721_v46  ;;  %14098 = vst [vmem:[#allocation18_spill] sm:$0xff] %v13243_v39  ;;  %v9341_v62 = vpop.f32.mrb[184].mxu0  ;;  %v10726_v39 = vld [vmem:[%s10932_s20 + $0x160] sm:$0xff] }
 0x3b8   : > { %9513 = vmatprep.mubr.msk.f32.mxu1 %vm619_vm2, %v10722_v31  ;;  %v9154_v30 = vpop.f32.mrb[62].mxu1  ;;  %v13247_v28 = vmul.f32 %v9341_v62, %v9145_v59  ;;  %v5330_v63 = vpop.f32.mrb[185].mxu0  ;;  %v10725_v62 = vld [vmem:[%s10932_s20 + $0x158] sm:$0xff] }
 0x3b9   : > { %v3370_v49 = vpop.f32.mrb[63].mxu1  ;;  %v13251_v38 = vmul.f32 %v5330_v63, %v3340_v53 }
 0x3ba   : > { %14099 = vst [vmem:[#allocation19_spill] sm:$0xff] %v13247_v28 }
 0x3bb   : > { %9514 = vmatmul.mubr.msk.f32.gmra.mrb[168].mxu1 %vm619_vm2, %v10723_v22  ;;  %14100 = vst [vmem:[#allocation20_spill] sm:$0xff] %v13251_v38  ;;  %v9344_v0 = vpop.f32.mrb[186].mxu0  ;;  %v10728_v38 = vld [vmem:[%s10932_s20 + $0x170] sm:$0xff] }
 0x3bc   : > { %9516 = vmatprep.mubr.msk.f32.mxu1 %vm619_vm2, %v10724_v8  ;;  %v9157_v5 = vpop.f32.mrb[64].mxu1  ;;  %v13255_v31 = vmul.f32 %v9344_v0, %v9148_v43  ;;  %v5340_v46 = vpop.f32.mrb[187].mxu0  ;;  %v10727_v0 = vld [vmem:[%s10932_s20 + $0x168] sm:$0xff] }
 0x3bd   : > { %v3380_v59 = vpop.f32.mrb[65].mxu1  ;;  %v13259_v28 = vmul.f32 %v5340_v46, %v3350_v21 }
 0x3be   : > { %14101 = vst [vmem:[#allocation21_spill] sm:$0xff] %v13255_v31 }
 0x3bf   : > { %9517 = vmatmul.mubr.msk.f32.gmra.mrb[170].mxu1 %vm619_vm2, %v10725_v62  ;;  %14102 = vst [vmem:[#allocation22_spill] sm:$0xff] %v13259_v28  ;;  %v9347_v53 = vpop.f32.mrb[188].mxu0  ;;  %v10730_v28 = vld [vmem:[%s10932_s20 + $0x180] sm:$0xff] }
 0x3c0   : > { %9519 = vmatprep.mubr.msk.f32.mxu1 %vm619_vm2, %v10726_v39  ;;  %v9160_v63 = vpop.f32.mrb[66].mxu1  ;;  %v13263_v8 = vmul.f32 %v9347_v53, %v9151_v12  ;;  %v5350_v22 = vpop.f32.mrb[189].mxu0  ;;  %v10729_v53 = vld [vmem:[%s10932_s20 + $0x178] sm:$0xff] }
 0x3c1   : > { %v3390_v43 = vpop.f32.mrb[67].mxu1  ;;  %v13267_v31 = vmul.f32 %v5350_v22, %v3360_v51 }
 0x3c2   : > { %14103 = vst [vmem:[#allocation23_spill] sm:$0xff] %v13263_v8 }
 0x3c3   : > { %9520 = vmatmul.mubr.msk.f32.gmra.mrb[172].mxu1 %vm619_vm2, %v10727_v0  ;;  %14104 = vst [vmem:[#allocation24_spill] sm:$0xff] %v13267_v31  ;;  %v9350_v21 = vpop.f32.mrb[190].mxu0  ;;  %v10732_v31 = vld [vmem:[%s10932_s20 + $0x190] sm:$0xff] }
 0x3c4   : > { %9522 = vmatprep.mubr.msk.f32.mxu1 %vm619_vm2, %v10728_v38  ;;  %v9163_v46 = vpop.f32.mrb[68].mxu1  ;;  %v13271_v39 = vmul.f32 %v9350_v21, %v9154_v30  ;;  %v5360_v62 = vpop.f32.mrb[191].mxu0  ;;  %v10731_v21 = vld [vmem:[%s10932_s20 + $0x188] sm:$0xff] }
 0x3c5   : > { %v3400_v12 = vpop.f32.mrb[69].mxu1  ;;  %v13275_v8 = vmul.f32 %v5360_v62, %v3370_v49 }
 0x3c6   : > { %14105 = vst [vmem:[#allocation25_spill] sm:$0xff] %v13271_v39 }
 0x3c7   : > { %9523 = vmatmul.mubr.msk.f32.gmra.mrb[174].mxu1 %vm619_vm2, %v10729_v53  ;;  %14106 = vst [vmem:[#allocation26_spill] sm:$0xff] %v13275_v8  ;;  %v9353_v51 = vpop.f32.mrb[192].mxu0  ;;  %v10734_v8 = vld [vmem:[%s10932_s20 + $0x1a0] sm:$0xff] }
 0x3c8   : > { %9525 = vmatprep.mubr.msk.f32.mxu1 %vm619_vm2, %v10730_v28  ;;  %v9166_v22 = vpop.f32.mrb[70].mxu1  ;;  %v13279_v38 = vmul.f32 %v9353_v51, %v9157_v5  ;;  %v5370_v0 = vpop.f32.mrb[193].mxu0  ;;  %v10733_v51 = vld [vmem:[%s10932_s20 + $0x198] sm:$0xff] }
 0x3c9   : > { %v3410_v30 = vpop.f32.mrb[71].mxu1  ;;  %v13283_v39 = vmul.f32 %v5370_v0, %v3380_v59 }
 0x3ca   : > { %14107 = vst [vmem:[#allocation27_spill] sm:$0xff] %v13279_v38 }
 0x3cb   : > { %9526 = vmatmul.mubr.msk.f32.gmra.mrb[176].mxu1 %vm619_vm2, %v10731_v21  ;;  %14108 = vst [vmem:[#allocation28_spill] sm:$0xff] %v13283_v39  ;;  %v9356_v49 = vpop.f32.mrb[194].mxu0  ;;  %v10736_v39 = vld [vmem:[%s10932_s20 + $0x1b0] sm:$0xff] }
 0x3cc   : > { %9528 = vmatprep.mubr.msk.f32.mxu1 %vm619_vm2, %v10732_v31  ;;  %v9169_v62 = vpop.f32.mrb[72].mxu1  ;;  %v13287_v28 = vmul.f32 %v9356_v49, %v9160_v63  ;;  %v5380_v53 = vpop.f32.mrb[195].mxu0  ;;  %v10735_v49 = vld [vmem:[%s10932_s20 + $0x1a8] sm:$0xff] }
 0x3cd   : > { %v3420_v5 = vpop.f32.mrb[73].mxu1  ;;  %v13291_v38 = vmul.f32 %v5380_v53, %v3390_v43 }
 0x3ce   : > { %14109 = vst [vmem:[#allocation29_spill] sm:$0xff] %v13287_v28 }
 0x3cf   : > { %9529 = vmatmul.mubr.msk.f32.gmra.mrb[178].mxu1 %vm619_vm2, %v10733_v51  ;;  %14110 = vst [vmem:[#allocation30_spill] sm:$0xff] %v13291_v38  ;;  %v9359_v59 = vpop.f32.mrb[196].mxu0  ;;  %v10738_v38 = vld [vmem:[%s10932_s20 + $0x1c0] sm:$0xff] }
 0x3d0   : > { %9531 = vmatprep.mubr.msk.f32.mxu1 %vm619_vm2, %v10734_v8  ;;  %v9172_v0 = vpop.f32.mrb[74].mxu1  ;;  %v13295_v31 = vmul.f32 %v9359_v59, %v9163_v46  ;;  %v5390_v21 = vpop.f32.mrb[197].mxu0  ;;  %v10737_v59 = vld [vmem:[%s10932_s20 + $0x1b8] sm:$0xff] }
 0x3d1   : > { %v3430_v63 = vpop.f32.mrb[75].mxu1  ;;  %v13299_v28 = vmul.f32 %v5390_v21, %v3400_v12 }
 0x3d2   : > { %14111 = vst [vmem:[#allocation31_spill] sm:$0xff] %v13295_v31 }
 0x3d3   : > { %9532 = vmatmul.mubr.msk.f32.gmra.mrb[180].mxu1 %vm619_vm2, %v10735_v49  ;;  %14112 = vst [vmem:[#allocation32_spill] sm:$0xff] %v13299_v28  ;;  %v9362_v43 = vpop.f32.mrb[198].mxu0  ;;  %v10740_v28 = vld [vmem:[%s10932_s20 + $0x1d0] sm:$0xff] }
 0x3d4   : > { %9534 = vmatprep.mubr.msk.f32.mxu1 %vm619_vm2, %v10736_v39  ;;  %v9175_v53 = vpop.f32.mrb[76].mxu1  ;;  %v13303_v8 = vmul.f32 %v9362_v43, %v9166_v22  ;;  %v5400_v51 = vpop.f32.mrb[199].mxu0  ;;  %v10739_v43 = vld [vmem:[%s10932_s20 + $0x1c8] sm:$0xff] }
 0x3d5   : > { %v3440_v46 = vpop.f32.mrb[77].mxu1  ;;  %v13307_v31 = vmul.f32 %v5400_v51, %v3410_v30 }
 0x3d6   : > { %14113 = vst [vmem:[#allocation33_spill] sm:$0xff] %v13303_v8 }
 0x3d7   : > { %9535 = vmatmul.mubr.msk.f32.gmra.mrb[182].mxu1 %vm619_vm2, %v10737_v59  ;;  %14114 = vst [vmem:[#allocation34_spill] sm:$0xff] %v13307_v31  ;;  %v9365_v12 = vpop.f32.mrb[200].mxu0  ;;  %v10742_v31 = vld [vmem:[%s10932_s20 + $0x1e0] sm:$0xff] }
 0x3d8   : > { %9537 = vmatprep.mubr.msk.f32.mxu1 %vm619_vm2, %v10738_v38  ;;  %v9178_v21 = vpop.f32.mrb[78].mxu1  ;;  %v13311_v39 = vmul.f32 %v9365_v12, %v9169_v62  ;;  %v5410_v49 = vpop.f32.mrb[201].mxu0  ;;  %v10741_v12 = vld [vmem:[%s10932_s20 + $0x1d8] sm:$0xff] }
 0x3d9   : > { %v3450_v22 = vpop.f32.mrb[79].mxu1  ;;  %v13315_v8 = vmul.f32 %v5410_v49, %v3420_v5 }
 0x3da   : > { %14115 = vst [vmem:[#allocation35_spill] sm:$0xff] %v13311_v39 }
 0x3db   : > { %9538 = vmatmul.mubr.msk.f32.gmra.mrb[184].mxu1 %vm619_vm2, %v10739_v43  ;;  %14116 = vst [vmem:[#allocation36_spill] sm:$0xff] %v13315_v8  ;;  %v9368_v30 = vpop.f32.mrb[202].mxu0  ;;  %v10744_v8 = vld [vmem:[%s10932_s20 + $0x1f0] sm:$0xff] }
 0x3dc   : > { %9540 = vmatprep.mubr.msk.f32.mxu1 %vm619_vm2, %v10740_v28  ;;  %v9181_v51 = vpop.f32.mrb[80].mxu1  ;;  %v13319_v38 = vmul.f32 %v9368_v30, %v9172_v0  ;;  %v5420_v59 = vpop.f32.mrb[203].mxu0  ;;  %v10743_v30 = vld [vmem:[%s10932_s20 + $0x1e8] sm:$0xff] }
 0x3dd   : > { %v3460_v62 = vpop.f32.mrb[81].mxu1  ;;  %v13323_v39 = vmul.f32 %v5420_v59, %v3430_v63 }
 0x3de   : > { %14117 = vst [vmem:[#allocation37_spill] sm:$0xff] %v13319_v38 }
 0x3df   : > { %9541 = vmatmul.mubr.msk.f32.gmra.mrb[186].mxu1 %vm619_vm2, %v10741_v12  ;;  %14118 = vst [vmem:[#allocation38_spill] sm:$0xff] %v13323_v39  ;;  %v9371_v5 = vpop.f32.mrb[204].mxu0  ;;  %v10746_v39 = vld [vmem:[%s10932_s20 + $0x200] sm:$0xff] }
 0x3e0   : > { %9543 = vmatprep.mubr.msk.f32.mxu1 %vm619_vm2, %v10742_v31  ;;  %v9184_v49 = vpop.f32.mrb[82].mxu1  ;;  %v13327_v28 = vmul.f32 %v9371_v5, %v9175_v53  ;;  %v5430_v43 = vpop.f32.mrb[205].mxu0  ;;  %v10745_v5 = vld [vmem:[%s10932_s20 + $0x1f8] sm:$0xff] }
 0x3e1   : > { %v3470_v0 = vpop.f32.mrb[83].mxu1  ;;  %v13331_v38 = vmul.f32 %v5430_v43, %v3440_v46 }
 0x3e2   : > { %14119 = vst [vmem:[#allocation39_spill] sm:$0xff] %v13327_v28 }
 0x3e3   : > { %9544 = vmatmul.mubr.msk.f32.gmra.mrb[188].mxu1 %vm619_vm2, %v10743_v30  ;;  %14120 = vst [vmem:[#allocation40_spill] sm:$0xff] %v13331_v38  ;;  %v9374_v63 = vpop.f32.mrb[206].mxu0  ;;  %v10748_v38 = vld [vmem:[%s10932_s20 + $0x210] sm:$0xff] }
 0x3e4   : > { %9546 = vmatprep.mubr.msk.f32.mxu1 %vm619_vm2, %v10744_v8  ;;  %v9187_v59 = vpop.f32.mrb[84].mxu1  ;;  %v13335_v31 = vmul.f32 %v9374_v63, %v9178_v21  ;;  %v5440_v12 = vpop.f32.mrb[207].mxu0  ;;  %v10747_v63 = vld [vmem:[%s10932_s20 + $0x208] sm:$0xff] }
 0x3e5   : > { %v3480_v53 = vpop.f32.mrb[85].mxu1  ;;  %v13339_v28 = vmul.f32 %v5440_v12, %v3450_v22 }
 0x3e6   : > { %14121 = vst [vmem:[#allocation41_spill] sm:$0xff] %v13335_v31 }
 0x3e7   : > { %9547 = vmatmul.mubr.msk.f32.gmra.mrb[190].mxu1 %vm619_vm2, %v10745_v5  ;;  %14122 = vst [vmem:[#allocation42_spill] sm:$0xff] %v13339_v28  ;;  %v9377_v46 = vpop.f32.mrb[208].mxu0  ;;  %v10750_v28 = vld [vmem:[%s10932_s20 + $0x220] sm:$0xff] }
 0x3e8   : > { %9549 = vmatprep.mubr.msk.f32.mxu1 %vm619_vm2, %v10746_v39  ;;  %v9190_v43 = vpop.f32.mrb[86].mxu1  ;;  %v13343_v8 = vmul.f32 %v9377_v46, %v9181_v51  ;;  %v5450_v30 = vpop.f32.mrb[209].mxu0  ;;  %v10749_v46 = vld [vmem:[%s10932_s20 + $0x218] sm:$0xff] }
 0x3e9   : > { %v3490_v21 = vpop.f32.mrb[87].mxu1  ;;  %v13347_v31 = vmul.f32 %v5450_v30, %v3460_v62 }
 0x3ea   : > { %14123 = vst [vmem:[#allocation43_spill] sm:$0xff] %v13343_v8 }
 0x3eb   : > { %9550 = vmatmul.mubr.msk.f32.gmra.mrb[192].mxu1 %vm619_vm2, %v10747_v63  ;;  %14124 = vst [vmem:[#allocation44_spill] sm:$0xff] %v13347_v31  ;;  %v9380_v22 = vpop.f32.mrb[210].mxu0  ;;  %v10752_v31 = vld [vmem:[%s10932_s20 + $0x230] sm:$0xff] }
 0x3ec   : > { %9552 = vmatprep.mubr.msk.f32.mxu1 %vm619_vm2, %v10748_v38  ;;  %v9193_v12 = vpop.f32.mrb[88].mxu1  ;;  %v13351_v39 = vmul.f32 %v9380_v22, %v9184_v49  ;;  %v5460_v5 = vpop.f32.mrb[211].mxu0  ;;  %v10751_v22 = vld [vmem:[%s10932_s20 + $0x228] sm:$0xff] }
 0x3ed   : > { %v3500_v51 = vpop.f32.mrb[89].mxu1  ;;  %v13355_v8 = vmul.f32 %v5460_v5, %v3470_v0 }
 0x3ee   : > { %14125 = vst [vmem:[#allocation45_spill] sm:$0xff] %v13351_v39 }
 0x3ef   : > { %9553 = vmatmul.mubr.msk.f32.gmra.mrb[194].mxu1 %vm619_vm2, %v10749_v46  ;;  %14126 = vst [vmem:[#allocation46_spill] sm:$0xff] %v13355_v8  ;;  %v9383_v62 = vpop.f32.mrb[212].mxu0  ;;  %v10754_v8 = vld [vmem:[%s10932_s20 + $0x240] sm:$0xff] }
 0x3f0   : > { %9555 = vmatprep.mubr.msk.f32.mxu1 %vm619_vm2, %v10750_v28  ;;  %v9196_v30 = vpop.f32.mrb[90].mxu1  ;;  %v13359_v38 = vmul.f32 %v9383_v62, %v9187_v59  ;;  %v5470_v63 = vpop.f32.mrb[213].mxu0  ;;  %v10753_v62 = vld [vmem:[%s10932_s20 + $0x238] sm:$0xff] }
 0x3f1   : > { %v3510_v49 = vpop.f32.mrb[91].mxu1  ;;  %v13363_v39 = vmul.f32 %v5470_v63, %v3480_v53 }
 0x3f2   : > { %14127 = vst [vmem:[#allocation47_spill] sm:$0xff] %v13359_v38 }
 0x3f3   : > { %9556 = vmatmul.mubr.msk.f32.gmra.mrb[196].mxu1 %vm619_vm2, %v10751_v22  ;;  %14128 = vst [vmem:[#allocation48_spill] sm:$0xff] %v13363_v39  ;;  %v9386_v0 = vpop.f32.mrb[214].mxu0  ;;  %v10756_v39 = vld [vmem:[%s10932_s20 + $0x250] sm:$0xff] }
 0x3f4   : > { %9558 = vmatprep.mubr.msk.f32.mxu1 %vm619_vm2, %v10752_v31  ;;  %v9199_v5 = vpop.f32.mrb[92].mxu1  ;;  %v13367_v28 = vmul.f32 %v9386_v0, %v9190_v43  ;;  %v5480_v46 = vpop.f32.mrb[215].mxu0  ;;  %v10755_v0 = vld [vmem:[%s10932_s20 + $0x248] sm:$0xff] }
 0x3f5   : > { %v3520_v59 = vpop.f32.mrb[93].mxu1  ;;  %v13371_v38 = vmul.f32 %v5480_v46, %v3490_v21 }
 0x3f6   : > { %14129 = vst [vmem:[#allocation49_spill] sm:$0xff] %v13367_v28 }
 0x3f7   : > { %9559 = vmatmul.mubr.msk.f32.gmra.mrb[198].mxu1 %vm619_vm2, %v10753_v62  ;;  %14130 = vst [vmem:[#allocation50_spill] sm:$0xff] %v13371_v38  ;;  %v9389_v53 = vpop.f32.mrb[216].mxu0  ;;  %v10758_v38 = vld [vmem:[%s10932_s20 + $0x260] sm:$0xff] }
 0x3f8   : > { %9561 = vmatprep.mubr.msk.f32.mxu1 %vm619_vm2, %v10754_v8  ;;  %v9202_v63 = vpop.f32.mrb[94].mxu1  ;;  %v13375_v31 = vmul.f32 %v9389_v53, %v9193_v12  ;;  %v5490_v22 = vpop.f32.mrb[217].mxu0  ;;  %v10757_v53 = vld [vmem:[%s10932_s20 + $0x258] sm:$0xff] }
 0x3f9   : > { %v3530_v43 = vpop.f32.mrb[95].mxu1  ;;  %v13379_v28 = vmul.f32 %v5490_v22, %v3500_v51 }
 0x3fa   : > { %14131 = vst [vmem:[#allocation51_spill] sm:$0xff] %v13375_v31 }
 0x3fb   : > { %9562 = vmatmul.mubr.msk.f32.gmra.mrb[200].mxu1 %vm619_vm2, %v10755_v0  ;;  %14132 = vst [vmem:[#allocation52_spill] sm:$0xff] %v13379_v28  ;;  %v9392_v21 = vpop.f32.mrb[218].mxu0  ;;  %v10760_v28 = vld [vmem:[%s10932_s20 + $0x270] sm:$0xff] }
 0x3fc   : > { %9564 = vmatprep.mubr.msk.f32.mxu1 %vm619_vm2, %v10756_v39  ;;  %v9205_v46 = vpop.f32.mrb[96].mxu1  ;;  %v13383_v8 = vmul.f32 %v9392_v21, %v9196_v30  ;;  %v5500_v62 = vpop.f32.mrb[219].mxu0  ;;  %v10759_v21 = vld [vmem:[%s10932_s20 + $0x268] sm:$0xff] }
 0x3fd   : > { %v3540_v12 = vpop.f32.mrb[97].mxu1  ;;  %v13387_v31 = vmul.f32 %v5500_v62, %v3510_v49 }
 0x3fe   : > { %14133 = vst [vmem:[#allocation53_spill] sm:$0xff] %v13383_v8 }
 0x3ff   : > { %9565 = vmatmul.mubr.msk.f32.gmra.mrb[202].mxu1 %vm619_vm2, %v10757_v53  ;;  %14134 = vst [vmem:[#allocation54_spill] sm:$0xff] %v13387_v31  ;;  %v9395_v51 = vpop.f32.mrb[220].mxu0  ;;  %v10762_v31 = vld [vmem:[%s10932_s20 + $0x280] sm:$0xff] }
 0x400   : > { %9567 = vmatprep.mubr.msk.f32.mxu1 %vm619_vm2, %v10758_v38  ;;  %v9208_v22 = vpop.f32.mrb[98].mxu1  ;;  %v13391_v39 = vmul.f32 %v9395_v51, %v9199_v5  ;;  %v5510_v0 = vpop.f32.mrb[221].mxu0  ;;  %v10761_v51 = vld [vmem:[%s10932_s20 + $0x278] sm:$0xff] }
 0x401   : > { %v3550_v30 = vpop.f32.mrb[99].mxu1  ;;  %v13395_v8 = vmul.f32 %v5510_v0, %v3520_v59 }
 0x402   : > { %14135 = vst [vmem:[#allocation55_spill] sm:$0xff] %v13391_v39 }
 0x403   : > { %9568 = vmatmul.mubr.msk.f32.gmra.mrb[204].mxu1 %vm619_vm2, %v10759_v21  ;;  %14136 = vst [vmem:[#allocation56_spill] sm:$0xff] %v13395_v8  ;;  %v9398_v49 = vpop.f32.mrb[222].mxu0  ;;  %v10764_v8 = vld [vmem:[%s10932_s20 + $0x290] sm:$0xff] }
 0x404   : > { %9570 = vmatprep.mubr.msk.f32.mxu1 %vm619_vm2, %v10760_v28  ;;  %v9211_v62 = vpop.f32.mrb[100].mxu1  ;;  %v13399_v38 = vmul.f32 %v9398_v49, %v9202_v63  ;;  %v5520_v53 = vpop.f32.mrb[223].mxu0  ;;  %v10763_v49 = vld [vmem:[%s10932_s20 + $0x288] sm:$0xff] }
 0x405   : > { %v3560_v5 = vpop.f32.mrb[101].mxu1  ;;  %v13403_v39 = vmul.f32 %v5520_v53, %v3530_v43 }
 0x406   : > { %14137 = vst [vmem:[#allocation57_spill] sm:$0xff] %v13399_v38 }
 0x407   : > { %9571 = vmatmul.mubr.msk.f32.gmra.mrb[206].mxu1 %vm619_vm2, %v10761_v51  ;;  %14138 = vst [vmem:[#allocation58_spill] sm:$0xff] %v13403_v39  ;;  %v9401_v59 = vpop.f32.mrb[224].mxu0  ;;  %v10766_v39 = vld [vmem:[%s10932_s20 + $0x2a0] sm:$0xff] }
 0x408   : > { %9573 = vmatprep.mubr.msk.f32.mxu1 %vm619_vm2, %v10762_v31  ;;  %v9214_v0 = vpop.f32.mrb[102].mxu1  ;;  %v13407_v28 = vmul.f32 %v9401_v59, %v9205_v46  ;;  %v5530_v21 = vpop.f32.mrb[225].mxu0  ;;  %v10765_v59 = vld [vmem:[%s10932_s20 + $0x298] sm:$0xff] }
 0x409   : > { %v3570_v63 = vpop.f32.mrb[103].mxu1  ;;  %v13411_v38 = vmul.f32 %v5530_v21, %v3540_v12 }
 0x40a   : > { %14139 = vst [vmem:[#allocation59_spill] sm:$0xff] %v13407_v28 }
 0x40b   : > { %9574 = vmatmul.mubr.msk.f32.gmra.mrb[208].mxu1 %vm619_vm2, %v10763_v49  ;;  %14140 = vst [vmem:[#allocation60_spill] sm:$0xff] %v13411_v38  ;;  %v9404_v43 = vpop.f32.mrb[226].mxu0  ;;  %v10768_v38 = vld [vmem:[%s10932_s20 + $0x2b0] sm:$0xff] }
 0x40c   : > { %9576 = vmatprep.mubr.msk.f32.mxu1 %vm619_vm2, %v10764_v8  ;;  %v9217_v53 = vpop.f32.mrb[104].mxu1  ;;  %v13415_v31 = vmul.f32 %v9404_v43, %v9208_v22  ;;  %v5540_v51 = vpop.f32.mrb[227].mxu0  ;;  %v10767_v43 = vld [vmem:[%s10932_s20 + $0x2a8] sm:$0xff] }
 0x40d   : > { %v3580_v46 = vpop.f32.mrb[105].mxu1  ;;  %v13419_v28 = vmul.f32 %v5540_v51, %v3550_v30 }
 0x40e   : > { %14141 = vst [vmem:[#allocation61_spill] sm:$0xff] %v13415_v31 }
 0x40f   : > { %9577 = vmatmul.mubr.msk.f32.gmra.mrb[210].mxu1 %vm619_vm2, %v10765_v59  ;;  %14142 = vst [vmem:[#allocation62_spill] sm:$0xff] %v13419_v28  ;;  %v9407_v12 = vpop.f32.mrb[228].mxu0  ;;  %v10770_v28 = vld [vmem:[%s10932_s20 + $0x2c0] sm:$0xff] }
 0x410   : > { %9579 = vmatprep.mubr.msk.f32.mxu1 %vm619_vm2, %v10766_v39  ;;  %v9220_v21 = vpop.f32.mrb[106].mxu1  ;;  %v13423_v8 = vmul.f32 %v9407_v12, %v9211_v62  ;;  %v5550_v49 = vpop.f32.mrb[229].mxu0  ;;  %v10769_v12 = vld [vmem:[%s10932_s20 + $0x2b8] sm:$0xff] }
 0x411   : > { %v3590_v22 = vpop.f32.mrb[107].mxu1  ;;  %v13427_v31 = vmul.f32 %v5550_v49, %v3560_v5 }
 0x412   : > { %14143 = vst [vmem:[#allocation63_spill] sm:$0xff] %v13423_v8 }
 0x413   : > { %9580 = vmatmul.mubr.msk.f32.gmra.mrb[212].mxu1 %vm619_vm2, %v10767_v43  ;;  %14144 = vst [vmem:[#allocation64_spill] sm:$0xff] %v13427_v31  ;;  %v9410_v30 = vpop.f32.mrb[230].mxu0  ;;  %v10772_v31 = vld [vmem:[%s10932_s20 + $0x2d0] sm:$0xff] }
 0x414   : > { %9582 = vmatprep.mubr.msk.f32.mxu1 %vm619_vm2, %v10768_v38  ;;  %v9223_v51 = vpop.f32.mrb[108].mxu1  ;;  %v13431_v39 = vmul.f32 %v9410_v30, %v9214_v0  ;;  %v5560_v59 = vpop.f32.mrb[231].mxu0  ;;  %v10771_v30 = vld [vmem:[%s10932_s20 + $0x2c8] sm:$0xff] }
 0x415   : > { %v3600_v62 = vpop.f32.mrb[109].mxu1  ;;  %v13435_v8 = vmul.f32 %v5560_v59, %v3570_v63 }
 0x416   : > { %14145 = vst [vmem:[#allocation65_spill] sm:$0xff] %v13431_v39 }
 0x417   : > { %9583 = vmatmul.mubr.msk.f32.gmra.mrb[214].mxu1 %vm619_vm2, %v10769_v12  ;;  %14146 = vst [vmem:[#allocation66_spill] sm:$0xff] %v13435_v8  ;;  %v9413_v5 = vpop.f32.mrb[232].mxu0  ;;  %v10774_v8 = vld [vmem:[%s10932_s20 + $0x2e0] sm:$0xff] }
 0x418   : > { %9585 = vmatprep.mubr.msk.f32.mxu1 %vm619_vm2, %v10770_v28  ;;  %v9226_v49 = vpop.f32.mrb[110].mxu1  ;;  %v13439_v38 = vmul.f32 %v9413_v5, %v9217_v53  ;;  %v5570_v43 = vpop.f32.mrb[233].mxu0  ;;  %v10773_v5 = vld [vmem:[%s10932_s20 + $0x2d8] sm:$0xff] }
 0x419   : > { %v3610_v0 = vpop.f32.mrb[111].mxu1  ;;  %v13443_v39 = vmul.f32 %v5570_v43, %v3580_v46 }
 0x41a   : > { %14147 = vst [vmem:[#allocation67_spill] sm:$0xff] %v13439_v38 }
 0x41b   : > { %9586 = vmatmul.mubr.msk.f32.gmra.mrb[216].mxu1 %vm619_vm2, %v10771_v30  ;;  %14148 = vst [vmem:[#allocation68_spill] sm:$0xff] %v13443_v39  ;;  %v9416_v63 = vpop.f32.mrb[234].mxu0  ;;  %v10776_v39 = vld [vmem:[%s10932_s20 + $0x2f0] sm:$0xff] }
 0x41c   : > { %9588 = vmatprep.mubr.msk.f32.mxu1 %vm619_vm2, %v10772_v31  ;;  %v9229_v59 = vpop.f32.mrb[112].mxu1  ;;  %v13447_v28 = vmul.f32 %v9416_v63, %v9220_v21  ;;  %v5580_v12 = vpop.f32.mrb[235].mxu0  ;;  %v10775_v63 = vld [vmem:[%s10932_s20 + $0x2e8] sm:$0xff] }
 0x41d   : > { %v3620_v53 = vpop.f32.mrb[113].mxu1  ;;  %v13451_v38 = vmul.f32 %v5580_v12, %v3590_v22 }
 0x41e   : > { %14149 = vst [vmem:[#allocation69_spill] sm:$0xff] %v13447_v28 }
 0x41f   : > { %9589 = vmatmul.mubr.msk.f32.gmra.mrb[218].mxu1 %vm619_vm2, %v10773_v5  ;;  %14150 = vst [vmem:[#allocation70_spill] sm:$0xff] %v13451_v38  ;;  %v9419_v46 = vpop.f32.mrb[236].mxu0  ;;  %v10778_v38 = vld [vmem:[%s10932_s20 + $0x300] sm:$0xff] }
 0x420   : > { %9591 = vmatprep.mubr.msk.f32.mxu1 %vm619_vm2, %v10774_v8  ;;  %v9232_v43 = vpop.f32.mrb[114].mxu1  ;;  %v13455_v31 = vmul.f32 %v9419_v46, %v9223_v51  ;;  %v5590_v30 = vpop.f32.mrb[237].mxu0  ;;  %v10777_v46 = vld [vmem:[%s10932_s20 + $0x2f8] sm:$0xff] }
 0x421   : > { %v3630_v21 = vpop.f32.mrb[115].mxu1  ;;  %v13459_v28 = vmul.f32 %v5590_v30, %v3600_v62 }
 0x422   : > { %14151 = vst [vmem:[#allocation71_spill] sm:$0xff] %v13455_v31 }
 0x423   : > { %9592 = vmatmul.mubr.msk.f32.gmra.mrb[220].mxu1 %vm619_vm2, %v10775_v63  ;;  %14152 = vst [vmem:[#allocation72_spill] sm:$0xff] %v13459_v28  ;;  %v9422_v22 = vpop.f32.mrb[238].mxu0  ;;  %v10780_v28 = vld [vmem:[%s10932_s20 + $0x310] sm:$0xff] }
 0x424   : > { %9594 = vmatprep.mubr.msk.f32.mxu1 %vm619_vm2, %v10776_v39  ;;  %v9235_v12 = vpop.f32.mrb[116].mxu1  ;;  %v13463_v8 = vmul.f32 %v9422_v22, %v9226_v49  ;;  %v5600_v5 = vpop.f32.mrb[239].mxu0  ;;  %v10779_v22 = vld [vmem:[%s10932_s20 + $0x308] sm:$0xff] }
 0x425   : > { %v3640_v51 = vpop.f32.mrb[117].mxu1  ;;  %v13467_v31 = vmul.f32 %v5600_v5, %v3610_v0 }
 0x426   : > { %14153 = vst [vmem:[#allocation73_spill] sm:$0xff] %v13463_v8 }
 0x427   : > { %9595 = vmatmul.mubr.msk.f32.gmra.mrb[222].mxu1 %vm619_vm2, %v10777_v46  ;;  %14154 = vst [vmem:[#allocation74_spill] sm:$0xff] %v13467_v31  ;;  %v9425_v62 = vpop.f32.mrb[240].mxu0  ;;  %v10782_v31 = vld [vmem:[%s10932_s20 + $0x320] sm:$0xff] }
 0x428   : > { %9597 = vmatprep.mubr.msk.f32.mxu1 %vm619_vm2, %v10778_v38  ;;  %v13471_v39 = vmul.f32 %v9425_v62, %v9229_v59  ;;  %v5610_v63 = vpop.f32.mrb[241].mxu0  ;;  %v10781_v62 = vld [vmem:[%s10932_s20 + $0x318] sm:$0xff] }
 0x429   : > { %v9238_v30 = vpop.f32.mrb[118].mxu1  ;;  %v13475_v8 = vmul.f32 %v5610_v63, %v3620_v53 }
 0x42a   : > { %14155 = vst [vmem:[#allocation75_spill] sm:$0xff] %v13471_v39  ;;  %v3650_v49 = vpop.f32.mrb[119].mxu1 }
 0x42b   : > { %9598 = vmatmul.mubr.msk.f32.gmra.mrb[224].mxu1 %vm619_vm2, %v10779_v22  ;;  %14156 = vst [vmem:[#allocation76_spill] sm:$0xff] %v13475_v8  ;;  %v9428_v0 = vpop.f32.mrb[242].mxu0  ;;  %v10784_v8 = vld [vmem:[%s10932_s20 + $0x330] sm:$0xff] }
 0x42c   : > { %9600 = vmatprep.mubr.msk.f32.mxu1 %vm619_vm2, %v10780_v28  ;;  %v13479_v38 = vmul.f32 %v9428_v0, %v9232_v43  ;;  %v5620_v46 = vpop.f32.mrb[243].mxu0  ;;  %v10783_v0 = vld [vmem:[%s10932_s20 + $0x328] sm:$0xff] }
 0x42d   : > { %v9241_v5 = vpop.f32.mrb[120].mxu1  ;;  %v13483_v39 = vmul.f32 %v5620_v46, %v3630_v21 }
 0x42e   : > { %14157 = vst [vmem:[#allocation77_spill] sm:$0xff] %v13479_v38  ;;  %v3660_v59 = vpop.f32.mrb[121].mxu1 }
 0x42f   : > { %9601 = vmatmul.mubr.msk.f32.gmra.mrb[226].mxu1 %vm619_vm2, %v10781_v62  ;;  %14158 = vst [vmem:[#allocation78_spill] sm:$0xff] %v13483_v39  ;;  %v9431_v53 = vpop.f32.mrb[244].mxu0  ;;  %v10786_v39 = vld [vmem:[%s10932_s20 + $0x340] sm:$0xff] }
 0x430   : > { %9603 = vmatprep.mubr.msk.f32.mxu1 %vm619_vm2, %v10782_v31  ;;  %v13487_v28 = vmul.f32 %v9431_v53, %v9235_v12  ;;  %v5630_v22 = vpop.f32.mrb[245].mxu0  ;;  %v10785_v53 = vld [vmem:[%s10932_s20 + $0x338] sm:$0xff] }
 0x431   : > { %v13491_v38 = vmul.f32 %v5630_v22, %v3640_v51 }
 0x432   : > { %v9244_v63 = vpop.f32.mrb[122].mxu1  ;;  %14159 = vst [vmem:[#allocation79_spill] sm:$0xff] %v13487_v28 }
 0x433   : > { %v3670_v43 = vpop.f32.mrb[123].mxu1  ;;  %9604 = vmatmul.mubr.msk.f32.gmra.mrb[228].mxu1 %vm619_vm2, %v10783_v0  ;;  %14160 = vst [vmem:[#allocation80_spill] sm:$0xff] %v13491_v38  ;;  %v9434_v21 = vpop.f32.mrb[246].mxu0 }
 0x434   : > { %9606 = vmatprep.mubr.msk.f32.mxu1 %vm619_vm2, %v10784_v8  ;;  %v13495_v31 = vmul.f32 %v9434_v21, %v9238_v30  ;;  %v5640_v62 = vpop.f32.mrb[247].mxu0  ;;  %v10787_v30 = vld [vmem:[%s10932_s20 + $0x348] sm:$0xff] }
 0x435   : > { %v13499_v28 = vmul.f32 %v5640_v62, %v3650_v49 }
 0x436   : > { %v9247_v46 = vpop.f32.mrb[124].mxu1  ;;  %14161 = vst [vmem:[#allocation81_spill] sm:$0xff] %v13495_v31  ;;  %v10788_v31 = vld [vmem:[%s10932_s20 + $0x350] sm:$0xff] }
 0x437   : > { %v3680_v12 = vpop.f32.mrb[125].mxu1  ;;  %9607 = vmatmul.mubr.msk.f32.gmra.mrb[230].mxu1 %vm619_vm2, %v10785_v53  ;;  %v9437_v51 = vpop.f32.mrb[248].mxu0 }
 0x438   : > { %9609 = vmatprep.mubr.msk.f32.mxu1 %vm619_vm2, %v10786_v39  ;;  %v13503_v8 = vmul.f32 %v9437_v51, %v9241_v5  ;;  %v5650_v0 = vpop.f32.mrb[249].mxu0 }
 0x439   : > { %v13507_v21 = vmul.f32 %v5650_v0, %v3660_v59 }
 0x43a   : > { %v9250_v22 = vpop.f32.mrb[126].mxu1  ;;  %14162 = vst [vmem:[#allocation82_spill] sm:$0xff] %v13503_v8  ;;  %v10789_v8 = vld [vmem:[%s10932_s20 + $0x358] sm:$0xff] }
 0x43b   : > { %v3690_v38 = vpop.f32.mrb[127].mxu1  ;;  %9610 = vmatmul.mubr.msk.f32.gmra.mrb[232].mxu1 %vm619_vm2, %v10787_v30  ;;  %v9440_v49 = vpop.f32.mrb[250].mxu0 }
 0x43c   : > { %9612 = vmatprep.mubr.msk.f32.mxu1 %vm619_vm2, %v10788_v31  ;;  %v13511_v53 = vmul.f32 %v9440_v49, %v9244_v63  ;;  %v5660_v39 = vpop.f32.mrb[251].mxu0  ;;  %v10790_v31 = vld [vmem:[%s10932_s20 + $0x360] sm:$0xff] }
 0x43d   : > { %v13518_v30 = vmul.f32 %v5660_v39, %v3670_v43  ;;  %v10791_v39 = vld [vmem:[%s10932_s20 + $0x368] sm:$0xff] }
 0x43e   : > { %v9455_v62 = vpop.f32.mrb[128].mxu1 }
 0x43f   : > { %v13514_v5 = vmul.f32 %v9455_v62, %v12902_v13  ;;  %v5758_v51 = vpop.f32.mrb[129].mxu1  ;;  %9613 = vmatmul.mubr.msk.f32.gmra.mrb[234].mxu1 %vm619_vm2, %v10789_v8  ;;  %v9443_v63 = vpop.f32.mrb[252].mxu0 }
 0x440   : > { %v13521_v59 = vmul.f32 %v12912_v57, %v5758_v51  ;;  %9615 = vmatprep.mubr.msk.f32.mxu1 %vm619_vm2, %v10790_v31  ;;  %v13527_v13 = vmul.f32 %v9443_v63, %v9247_v46  ;;  %v5670_v62 = vpop.f32.mrb[253].mxu0  ;;  %v10792_v31 = vld [vmem:[%s10932_s20 + $0x370] sm:$0xff]  ;;  %v10795_v63 = vld [vmem:[%s10932_s20 + $0x388] sm:$0xff] }
 0x441   : > { %v13534_v57 = vmul.f32 %v5670_v62, %v3680_v12  ;;  %v10793_v62 = vld [vmem:[%s10932_s20 + $0x378] sm:$0xff] }
 0x442   : > { %v9458_v49 = vpop.f32.mrb[130].mxu1 }
 0x443   : > { %v13530_v8 = vmul.f32 %v9458_v49, %v12933_v15  ;;  %v5768_v43 = vpop.f32.mrb[131].mxu1  ;;  %9616 = vmatmul.mubr.msk.f32.gmra.mrb[236].mxu1 %vm619_vm2, %v10791_v39  ;;  %v9446_v46 = vpop.f32.mrb[254].mxu0 }
 0x444   : > { %v13537_v51 = vmul.f32 %v12942_v40, %v5768_v43  ;;  %9618 = vmatprep.mubr.msk.f32.mxu1 %vm619_vm2, %v10792_v31  ;;  %v13543_v49 = vmul.f32 %v9446_v46, %v9250_v22  ;;  %v5680_v0 = vpop.f32.mrb[255].mxu0  ;;  %v10794_v31 = vld [vmem:[%s10932_s20 + $0x380] sm:$0xff]  ;;  %v10805_v22 = vld [vmem:[%s10932_s20 + $0x3d8] sm:$0xff] }
 0x445   : > { %v13550_v40 = vmul.f32 %v5680_v0, %v3690_v38 }
 0x446   : > { %v9461_v15 = vpop.f32.mrb[132].mxu1 }
 0x447   : > { %v13546_v39 = vmul.f32 %v9461_v15, %v12962_v52  ;;  %v5778_v12 = vpop.f32.mrb[133].mxu1  ;;  %9619 = vmatmul.mubr.msk.f32.gmra.mrb[238].mxu1 %vm619_vm2, %v10793_v62  ;;  %14163 = vst [vmem:[#allocation83_spill] sm:$0xff] %v13550_v40  ;;  %v10807_v40 = vld [vmem:[%s10932_s20 + $0x3e8] sm:$0xff] }
 0x448   : > { %v13553_v43 = vmul.f32 %v12972_v17, %v5778_v12  ;;  %9621 = vmatprep.mubr.msk.f32.mxu1 %vm619_vm2, %v10794_v31  ;;  %v10796_v17 = vld [vmem:[%s10932_s20 + $0x390] sm:$0xff]  ;;  %v10797_v31 = vld [vmem:[%s10932_s20 + $0x398] sm:$0xff] }
 0x44a   : > { %v9464_v46 = vpop.f32.mrb[134].mxu1 }
 0x44b   : > { %v13560_v52 = vmul.f32 %v9464_v46, %v12990_v27  ;;  %v5788_v15 = vpop.f32.mrb[135].mxu1  ;;  %9622 = vmatmul.mubr.msk.f32.gmra.mrb[240].mxu1 %vm619_vm2, %v10795_v63 }
 0x44c   : > { %v13565_v38 = vmul.f32 %v13000_v34, %v5788_v15  ;;  %9624 = vmatprep.mubr.msk.f32.mxu1 %vm619_vm2, %v10796_v17  ;;  %v10798_v34 = vld [vmem:[%s10932_s20 + $0x3a0] sm:$0xff] }
 0x44e   : > { %v9467_v12 = vpop.f32.mrb[136].mxu1 }
 0x44f   : > { %v13572_v62 = vmul.f32 %v9467_v12, %v13014_v55  ;;  %v5798_v27 = vpop.f32.mrb[137].mxu1  ;;  %9625 = vmatmul.mubr.msk.f32.gmra.mrb[242].mxu1 %vm619_vm2, %v10797_v31  ;;  %v10799_v12 = vld [vmem:[%s10932_s20 + $0x3a8] sm:$0xff] }
 0x450   : > { %v13577_v63 = vmul.f32 %v13020_v45, %v5798_v27  ;;  %9627 = vmatprep.mubr.msk.f32.mxu1 %vm619_vm2, %v10798_v34  ;;  %v10800_v45 = vld [vmem:[%s10932_s20 + $0x3b0] sm:$0xff] }
 0x452   : > { %v9470_v15 = vpop.f32.mrb[138].mxu1 }
 0x453   : > { %v13584_v17 = vmul.f32 %v9470_v15, %v13035_v42  ;;  %v5808_v55 = vpop.f32.mrb[139].mxu1  ;;  %9628 = vmatmul.mubr.msk.f32.gmra.mrb[244].mxu1 %vm619_vm2, %v10799_v12  ;;  %v10801_v15 = vld [vmem:[%s10932_s20 + $0x3b8] sm:$0xff] }
 0x454   : > { %v13589_v31 = vmul.f32 %v13041_v10, %v5808_v55  ;;  %9630 = vmatprep.mubr.msk.f32.mxu1 %vm619_vm2, %v10800_v45  ;;  %v10802_v10 = vld [vmem:[%s10932_s20 + $0x3c0] sm:$0xff] }
 0x456   : > { %v9473_v34 = vpop.f32.mrb[140].mxu1 }
 0x457   : > { %v13596_v46 = vmul.f32 %v9473_v34, %v13050_v35  ;;  %v5818_v42 = vpop.f32.mrb[141].mxu1  ;;  %9631 = vmatmul.mubr.msk.f32.gmra.mrb[246].mxu1 %vm619_vm2, %v10801_v15  ;;  %v10803_v34 = vld [vmem:[%s10932_s20 + $0x3c8] sm:$0xff]  ;;  %v14164_v15 = vlaneseq }
 0x458   : > { %v13601_v12 = vmul.f32 %v13057_v60, %v5818_v42  ;;  %9633 = vmatprep.mubr.msk.f32.mxu1 %vm619_vm2, %v10802_v10  ;;  %v10804_v42 = vld [vmem:[%s10932_s20 + $0x3d0] sm:$0xff] }
 0x459   : > { %v13618_v10 = vshrl.u32 %v14164_v15, 7 }
 0x45a   : > { %v9476_v45 = vpop.f32.mrb[142].mxu1 }
 0x45b   : > { %v13608_v27 = vmul.f32 %v9476_v45, %v13064_v11  ;;  %v5828_v35 = vpop.f32.mrb[143].mxu1  ;;  %9634 = vmatmul.mubr.msk.f32.gmra.mrb[248].mxu1 %vm619_vm2, %v10803_v34  ;;  %v10806_v34 = vld [vmem:[%s10932_s20 + $0x3e0] sm:$0xff] }
 0x45c   : > { %v13613_v60 = vmul.f32 %v13069_v14, %v5828_v35  ;;  %9636 = vmatprep.mubr.msk.f32.mxu1 %vm619_vm2, %v10804_v42  ;;  %v6663_v14 = vsub.s32 1, %v13618_v10  ;;  %v13634_v42 = vld [vmem:[%s365_s23] sm:$0xff] }
 0x45e   : > { %v9479_v11 = vpop.f32.mrb[144].mxu1 }
 0x45f   : > { %v6542_v45 = vmul.f32 %v9479_v11, %v13077_v7  ;;  %v5838_v0 = vpop.f32.mrb[145].mxu1  ;;  %9637 = vmatmul.mubr.msk.f32.gmra.mrb[250].mxu1 %vm619_vm2, %v10805_v22  ;;  %v13637_v7 = vrot.slane %v13634_v42, %v6663_v14  ;;  %v10855_v14 = vmov 1.0  }
 0x460   : > { %v6541_v35 = vmul.f32 %v13083_v25, %v5838_v0  ;;  %9639 = vmatprep.mubr.msk.f32.mxu1 %vm619_vm2, %v10806_v34  ;;  %v10808_v0 = vld [vmem:[%s10932_s20 + $0x3f0] sm:$0xff] }
 0x461   : > { %vm6690_vm6 = vcmp.eq.s32.totalorder %v13618_v10, %v13637_v7 }
 0x462   : > { %v9719_v15 = vpack.c.bf16 %v6542_v45, %v6541_v35  ;;  %v9482_v11 = vpop.f32.mrb[146].mxu1  ;;  %v14165_v45 = vpack.c.bf16 %v13514_v5, %v13521_v59  ;;  %8111 = vmatprep.mubr.msk.f32.mxu0 %vm6690_vm6, %v10855_v14 }
 0x463   : > { %v6544_v22 = vmul.f32 %v9482_v11, %v13091_v20  ;;  %v5848_v55 = vpop.f32.mrb[147].mxu1  ;;  %9640 = vmatmul.mubr.msk.f32.gmra.mrb[252].mxu1 %vm619_vm2, %v10807_v40  ;;  %v10809_v11 = vld [vmem:[%s10932_s20 + $0x3f8] sm:$0xff] }
 0x464   : > { %v6543_v25 = vmul.f32 %v13096_v6, %v5848_v55  ;;  %9720 = vmatprep.subr.bf16.mxu0 %v9719_v15  ;;  %9642 = vmatprep.mubr.msk.f32.mxu1 %vm619_vm2, %v10808_v0  ;;  %v14166_v55 = vpack.c.bf16 %v13530_v8, %v13537_v51  ;;  %v14168_v51 = vpack.c.bf16 %v13560_v52, %v13565_v38 }
 0x465   : > { %9722 = vmatpush3.bf16.msra.mxu0 %v14165_v45  ;;  %v14170_v38 = vpack.c.bf16 %v13584_v17, %v13589_v31 }
 0x466   : > { %v9723_v20 = vpack.c.bf16 %v6544_v22, %v6543_v25  ;;  %v9485_v35 = vpop.f32.mrb[148].mxu1 }
 0x467   : > { %v6546_v40 = vmul.f32 %v9485_v35, %v13102_v1  ;;  %v5858_v34 = vpop.f32.mrb[149].mxu1  ;;  %9643 = vmatmul.mubr.msk.f32.gmra.mrb[254].mxu1 %vm619_vm2, %v10809_v11  ;;  %v14167_v1 = vpack.c.bf16 %v13546_v39, %v13553_v43  ;;  %v14169_v43 = vpack.c.bf16 %v13572_v62, %v13577_v63 }
 0x468   : > { %v6545_v6 = vmul.f32 %v13107_v61, %v5858_v34  ;;  %9724 = vmatprep.subr.bf16.mxu0 %v9723_v20 }
 0x469   : > { %9726 = vmatpush3.bf16.msra.mxu0 %v14166_v55 }
 0x46a   : > { %v9727_v5 = vpack.c.bf16 %v6546_v40, %v6545_v6  ;;  %v9488_v59 = vpop.f32.mrb[150].mxu1 }
 0x46b   : > { %v6548_v15 = vmul.f32 %v9488_v59, %v13111_v36  ;;  %v5868_v0 = vpop.f32.mrb[151].mxu1 }
 0x46c   : > { %v6547_v22 = vmul.f32 %v13115_v2, %v5868_v0  ;;  %9728 = vmatprep.subr.bf16.mxu0 %v9727_v5 }
 0x46d   : > { %9730 = vmatpush3.bf16.msra.mxu0 %v14167_v1 }
 0x46e   : > { %v9731_v25 = vpack.c.bf16 %v6548_v15, %v6547_v22  ;;  %v9491_v45 = vpop.f32.mrb[152].mxu1 }
 0x46f   : > { %v6550_v61 = vmul.f32 %v9491_v45, %v13119_v33  ;;  %v5878_v20 = vpop.f32.mrb[153].mxu1 }
 0x470   : > { %v6549_v8 = vmul.f32 %v13123_v19, %v5878_v20  ;;  %9732 = vmatprep.subr.bf16.mxu0 %v9731_v25 }
 0x471   : > { %9734 = vmatpush3.bf16.msra.mxu0 %v14168_v51 }
 0x472   : > { %v9735_v36 = vpack.c.bf16 %v6550_v61, %v6549_v8  ;;  %v9494_v35 = vpop.f32.mrb[154].mxu1 }
 0x473   : > { %v6552_v2 = vmul.f32 %v9494_v35, %v13127_v3  ;;  %v5888_v40 = vpop.f32.mrb[155].mxu1  ;;  %v6659_v3 = vsub.s32 0, %v13618_v10 }
 0x474   : > { %v6551_v39 = vmul.f32 %v13131_v23, %v5888_v40  ;;  %9736 = vmatprep.subr.bf16.mxu0 %v9735_v36 }
 0x475   : > { %9738 = vmatpush3.bf16.msra.mxu0 %v14169_v43  ;;  %v14173_v43 = vld [vmem:[#allocation8_spill] sm:$0xff] }
 0x476   : > { %v9739_v33 = vpack.c.bf16 %v6552_v2, %v6551_v39  ;;  %v9497_v34 = vpop.f32.mrb[156].mxu1 }
 0x477   : > { %v6554_v19 = vmul.f32 %v9497_v34, %v13135_v16  ;;  %v5898_v11 = vpop.f32.mrb[157].mxu1  ;;  %v14171_v16 = vpack.c.bf16 %v13596_v46, %v13601_v12 }
 0x478   : > { %v6553_v52 = vmul.f32 %v13139_v47, %v5898_v11  ;;  %9740 = vmatprep.subr.bf16.mxu0 %v9739_v33  ;;  %v6660_v47 = vrot.slane %v13634_v42, %v6659_v3  ;;  %v6671_v3 = vsub.s32 3, %v13618_v10 }
 0x479   : > { %9742 = vmatpush3.bf16.msra.mxu0 %v14170_v38 }
 0x47a   : > { %v9743_v23 = vpack.c.bf16 %v6554_v19, %v6553_v52  ;;  %v9500_v6 = vpop.f32.mrb[158].mxu1  ;;  %vm6689_vm2 = vcmp.eq.s32.totalorder %v13618_v10, %v6660_v47  ;;  %v14174_v19 = vld [vmem:[#allocation9_spill] sm:$0xff]  ;;  %v14175_v52 = vld [vmem:[#allocation10_spill] sm:$0xff] }
 0x47b   : > { %v6556_v55 = vmul.f32 %v9500_v6, %v13143_v54  ;;  %v5908_v62 = vpop.f32.mrb[159].mxu1  ;;  %v14172_v54 = vpack.c.bf16 %v13608_v27, %v13613_v60 }
 0x47c   : > { %v6555_v63 = vmul.f32 %v13147_v9, %v5908_v62  ;;  %9744 = vmatprep.subr.bf16.mxu0 %v9743_v23  ;;  %v6679_v62 = vsub.s32 5, %v13618_v10 }
 0x47d   : > { %9746 = vmatpush3.bf16.msra.mxu0 %v14171_v16 }
 0x47e   : > { %v9747_v5 = vpack.c.bf16 %v6556_v55, %v6555_v63  ;;  %v9503_v59 = vpop.f32.mrb[160].mxu1  ;;  %v13759_v55 = vrot.slane %v13634_v42, %v6671_v3  ;;  %v14176_v63 = vld [vmem:[#allocation11_spill] sm:$0xff]  ;;  %v14185_v3 = vld [vmem:[#allocation20_spill] sm:$0xff] }
 0x47f   : > { %v13686_v17 = vmul.f32 %v9503_v59, %v13151_v37  ;;  %v5918_v31 = vpop.f32.mrb[161].mxu1  ;;  %v14177_v59 = vld [vmem:[#allocation12_spill] sm:$0xff] }
 0x480   : > { %v13689_v15 = vmul.f32 %v13155_v50, %v5918_v31  ;;  %9748 = vmatprep.subr.bf16.mxu0 %v9747_v5  ;;  %vm6692_vm4 = vcmp.eq.s32.totalorder %v13618_v10, %v13759_v55  ;;  %v13772_v31 = vrot.slane %v13634_v42, %v6679_v62 }
 0x481   : > { %9750 = vmatpush3.bf16.msra.mxu0 %v14172_v54  ;;  %8115 = vmatprep.mubr.msk.f32.mxu1 %vm6692_vm4, %v10855_v14  ;;  %v14178_v54 = vld [vmem:[#allocation13_spill] sm:$0xff] }
 0x482   : > { %v9753_v9 = vpack.c.bf16 %v13686_v17, %v13689_v15  ;;  %v9506_v46 = vpop.f32.mrb[162].mxu1  ;;  %vm6694_vm5 = vcmp.eq.s32.totalorder %v13618_v10, %v13772_v31 }
 0x483   : > { %v13698_v12 = vmul.f32 %v9506_v46, %v13159_v18  ;;  %v5928_v37 = vpop.f32.mrb[163].mxu1 }
 0x484   : > { %v13701_v0 = vmul.f32 %v13163_v26, %v5928_v37  ;;  %8112 = vmatmul.mubr.msk.f32.vlgmr.msra.gmra.mrb[0].mxu0 %vm6689_vm2, %v10855_v14  ;;  %vm7041_vm2 = vcmask 654336  }
 0x486   : > { %v9757_v50 = vpack.c.bf16 %v13698_v12, %v13701_v0  ;;  %v9509_v27 = vpop.f32.mrb[164].mxu1  ;;  %v14179_v12 = vld [vmem:[#allocation14_spill] sm:$0xff] }
 0x487   : > { %v13707_v60 = vmul.f32 %v9509_v27, %v13167_v29  ;;  %v5938_v22 = vpop.f32.mrb[165].mxu1 }
 0x488   : > { %v13710_v1 = vmul.f32 %v13171_v44, %v5938_v22 }
 0x48a   : > { %v9761_v18 = vpack.c.bf16 %v13707_v60, %v13710_v1  ;;  %v9512_v25 = vpop.f32.mrb[166].mxu1  ;;  %v14180_v60 = vld [vmem:[#allocation15_spill] sm:$0xff] }
 0x48b   : > { %v13715_v26 = vmul.f32 %v9512_v25, %v13175_v32  ;;  %v5948_v45 = vpop.f32.mrb[167].mxu1  ;;  %v14181_v25 = vld [vmem:[#allocation16_spill] sm:$0xff] }
 0x48c   : > { %v13718_v61 = vmul.f32 %v13179_v48, %v5948_v45 }
 0x48e   : > { %v9765_v20 = vpack.c.bf16 %v13715_v26, %v13718_v61  ;;  %v9515_v29 = vpop.f32.mrb[168].mxu1  ;;  %v6667_v61 = vsub.s32 2, %v13618_v10 }
 0x48f   : > { %v13723_v8 = vmul.f32 %v9515_v29, %v13183_v4  ;;  %v5958_v44 = vpop.f32.mrb[169].mxu1 }
 0x490   : > { %v13726_v51 = vmul.f32 %v13187_v58, %v5958_v44 }
 0x492   : > { %v9769_v36 = vpack.c.bf16 %v13723_v8, %v13726_v51  ;;  %v9518_v32 = vpop.f32.mrb[170].mxu1  ;;  %v14191_v51 = vld [vmem:[#allocation26_spill] sm:$0xff] }
 0x493   : > { %v13731_v35 = vmul.f32 %v9518_v32, %v13191_v56  ;;  %v5968_v48 = vpop.f32.mrb[171].mxu1  ;;  %v14182_v32 = vld [vmem:[#allocation17_spill] sm:$0xff] }
 0x494   : > { %v13734_v2 = vmul.f32 %v13195_v24, %v5968_v48 }
 0x496   : > { %v9773_v40 = vpack.c.bf16 %v13731_v35, %v13734_v2  ;;  %v9521_v4 = vpop.f32.mrb[172].mxu1 }
 0x497   : > { %v13739_v39 = vmul.f32 %v9521_v4, %v13199_v41  ;;  %v5978_v58 = vpop.f32.mrb[173].mxu1  ;;  %v13754_v41 = vadd.s32 8, %v13618_v10 }
 0x498   : > { %v13742_v33 = vmul.f32 %v14173_v43, %v5978_v58  ;;  %v14183_v58 = vld [vmem:[#allocation18_spill] sm:$0xff] }
 0x499   : > { %vm6698_vm0 = vcmp.eq.s32.totalorder %v13754_v41, %v13637_v7  ;;  %vm6697_vm1 = vcmp.eq.s32.totalorder %v13754_v41, %v6660_v47  ;;  %vm6702_vm7 = vcmp.eq.s32.totalorder %v13754_v41, %v13772_v31  ;;  %vm6700_vm9 = vcmp.eq.s32.totalorder %v13754_v41, %v13759_v55 }
 0x49a   : > { %v9777_v34 = vpack.c.bf16 %v13739_v39, %v13742_v33  ;;  %v9524_v56 = vpop.f32.mrb[174].mxu1  ;;  %8113 = vmatprep.mubr.msk.f32.mxu0 %vm6698_vm0, %v10855_v14 }
 0x49b   : > { %v13747_v11 = vmul.f32 %v9524_v56, %v14174_v19  ;;  %v5988_v24 = vpop.f32.mrb[175].mxu1  ;;  %8114 = vmatmul.mubr.msk.f32.gmra.mrb[2].mxu0 %vm6697_vm1, %v10855_v14  ;;  %v14184_v19 = vld [vmem:[#allocation19_spill] sm:$0xff] }
 0x49c   : > { %v13750_v38 = vmul.f32 %v14175_v52, %v5988_v24  ;;  %8119 = vmatprep.mubr.msk.f32.mxu0 %vm6694_vm5, %v10855_v14 }
 0x49e   : > { %v9781_v23 = vpack.c.bf16 %v13747_v11, %v13750_v38  ;;  %v9527_v6 = vpop.f32.mrb[176].mxu1 }
 0x49f   : > { %v6574_v16 = vmul.f32 %v9527_v6, %v14176_v63  ;;  %v5998_v5 = vpop.f32.mrb[177].mxu1  ;;  %v14186_v63 = vld [vmem:[#allocation21_spill] sm:$0xff] }
 0x4a0   : > { %v6573_v17 = vmul.f32 %v14177_v59, %v5998_v5  ;;  %v14187_v59 = vld [vmem:[#allocation22_spill] sm:$0xff] }
 0x4a2   : > { %v9751_v7 = vpack.c.bf16 %v6574_v16, %v6573_v17  ;;  %v9530_v15 = vpop.f32.mrb[178].mxu1 }
 0x4a3   : > { %v6576_v46 = vmul.f32 %v9530_v15, %v14178_v54  ;;  %v6008_v47 = vpop.f32.mrb[179].mxu1  ;;  %v14188_v15 = vld [vmem:[#allocation23_spill] sm:$0xff] }
 0x4a4   : > { %v6575_v37 = vmul.f32 %v14179_v12, %v6008_v47  ;;  %9752 = vmatprep.subr.bf16.mxu1 %v9751_v7  ;;  %v14189_v47 = vld [vmem:[#allocation24_spill] sm:$0xff] }
 0x4a5   : > { %9754 = vmatpush3.bf16.msra.mxu1 %v9753_v9 }
 0x4a6   : > { %v9755_v0 = vpack.c.bf16 %v6576_v46, %v6575_v37  ;;  %v9533_v27 = vpop.f32.mrb[180].mxu1  ;;  %v14190_v37 = vld [vmem:[#allocation25_spill] sm:$0xff] }
 0x4a7   : > { %v6578_v22 = vmul.f32 %v9533_v27, %v14180_v60  ;;  %v6018_v1 = vpop.f32.mrb[181].mxu1  ;;  %v6668_v27 = vrot.slane %v13634_v42, %v6667_v61  ;;  %v14192_v60 = vld [vmem:[#allocation27_spill] sm:$0xff] }
 0x4a8   : > { %v6577_v45 = vmul.f32 %v14181_v25, %v6018_v1  ;;  %9756 = vmatprep.subr.bf16.mxu1 %v9755_v0  ;;  %v14193_v25 = vld [vmem:[#allocation28_spill] sm:$0xff] }
 0x4a9   : > { %9758 = vmatpush3.bf16.msra.mxu1 %v9757_v50  ;;  %vm6691_vm8 = vcmp.eq.s32.totalorder %v13618_v10, %v6668_v27  ;;  %vm6699_vm11 = vcmp.eq.s32.totalorder %v13754_v41, %v6668_v27 }
 0x4aa   : > { %v9759_v29 = vpack.c.bf16 %v6578_v22, %v6577_v45  ;;  %v9536_v44 = vpop.f32.mrb[182].mxu1 }
 0x4ab   : > { %v6580_v48 = vmul.f32 %v9536_v44, %v14182_v32  ;;  %v6028_v4 = vpop.f32.mrb[183].mxu1 }
 0x4ac   : > { %v6579_v43 = vmul.f32 %v14183_v58, %v6028_v4  ;;  %9760 = vmatprep.subr.bf16.mxu1 %v9759_v29  ;;  %v14194_v29 = vld [vmem:[#allocation29_spill] sm:$0xff] }
 0x4ad   : > { %9762 = vmatpush3.bf16.msra.mxu1 %v9761_v18 }
 0x4ae   : > { %v9763_v56 = vpack.c.bf16 %v6580_v48, %v6579_v43  ;;  %v9539_v9 = vpop.f32.mrb[184].mxu1  ;;  %v14195_v48 = vld [vmem:[#allocation30_spill] sm:$0xff]  ;;  %v14197_v43 = vld [vmem:[#allocation32_spill] sm:$0xff] }
 0x4af   : > { %v6582_v24 = vmul.f32 %v9539_v9, %v14184_v19  ;;  %v6038_v52 = vpop.f32.mrb[185].mxu1 }
 0x4b0   : > { %v6581_v6 = vmul.f32 %v14185_v3, %v6038_v52  ;;  %9764 = vmatprep.subr.bf16.mxu1 %v9763_v56 }
 0x4b1   : > { %9766 = vmatpush3.bf16.msra.mxu1 %v9765_v20 }
 0x4b2   : > { %v9767_v50 = vpack.c.bf16 %v6582_v24, %v6581_v6  ;;  %v9542_v62 = vpop.f32.mrb[186].mxu1  ;;  %v14198_v24 = vld [vmem:[#allocation33_spill] sm:$0xff]  ;;  %v14199_v6 = vld [vmem:[#allocation34_spill] sm:$0xff] }
 0x4b3   : > { %v6584_v16 = vmul.f32 %v9542_v62, %v14186_v63  ;;  %v6048_v5 = vpop.f32.mrb[187].mxu1 }
 0x4b4   : > { %v6583_v17 = vmul.f32 %v14187_v59, %v6048_v5  ;;  %9768 = vmatprep.subr.bf16.mxu1 %v9767_v50 }
 0x4b5   : > { %9770 = vmatpush3.bf16.msra.mxu1 %v9769_v36 }
 0x4b6   : > { %v9771_v18 = vpack.c.bf16 %v6584_v16, %v6583_v17  ;;  %v9545_v7 = vpop.f32.mrb[188].mxu1  ;;  %v14200_v16 = vld [vmem:[#allocation35_spill] sm:$0xff]  ;;  %v14201_v17 = vld [vmem:[#allocation36_spill] sm:$0xff] }
 0x4b7   : > { %v6586_v54 = vmul.f32 %v9545_v7, %v14188_v15  ;;  %v6058_v46 = vpop.f32.mrb[189].mxu1 }
 0x4b8   : > { %v6585_v26 = vmul.f32 %v14189_v47, %v6058_v46  ;;  %9772 = vmatprep.subr.bf16.mxu1 %v9771_v18 }
 0x4b9   : > { %9774 = vmatpush3.bf16.msra.mxu1 %v9773_v40  ;;  %v6687_v40 = vsub.s32 7, %v13618_v10 }
 0x4ba   : > { %v9775_v20 = vpack.c.bf16 %v6586_v54, %v6585_v26  ;;  %v9548_v12 = vpop.f32.mrb[190].mxu1  ;;  %v14202_v54 = vld [vmem:[#allocation37_spill] sm:$0xff]  ;;  %v14203_v26 = vld [vmem:[#allocation38_spill] sm:$0xff] }
 0x4bb   : > { %v6588_v0 = vmul.f32 %v9548_v12, %v14190_v37  ;;  %v6068_v8 = vpop.f32.mrb[191].mxu1  ;;  %v14204_v37 = vld [vmem:[#allocation39_spill] sm:$0xff] }
 0x4bc   : > { %v6587_v36 = vmul.f32 %v14191_v51, %v6068_v8  ;;  %9776 = vmatprep.subr.bf16.mxu1 %v9775_v20  ;;  %v14205_v51 = vld [vmem:[#allocation40_spill] sm:$0xff] }
 0x4bd   : > { %9778 = vmatpush3.bf16.msra.mxu1 %v9777_v34  ;;  %v13818_v34 = vrot.slane %v13634_v42, %v6687_v40 }
 0x4be   : > { %v9779_v35 = vpack.c.bf16 %v6588_v0, %v6587_v36  ;;  %v9551_v2 = vpop.f32.mrb[192].mxu1 }
 0x4bf   : > { %v6590_v22 = vmul.f32 %v9551_v2, %v14192_v60  ;;  %v6078_v1 = vpop.f32.mrb[193].mxu1  ;;  %vm6704_vm10 = vcmp.eq.s32.totalorder %v13754_v41, %v13818_v34  ;;  %vm6696_vm12 = vcmp.eq.s32.totalorder %v13618_v10, %v13818_v34  ;;  %v14206_v2 = vld [vmem:[#allocation41_spill] sm:$0xff] }
 0x4c0   : > { %v6589_v45 = vmul.f32 %v14193_v25, %v6078_v1  ;;  %9780 = vmatprep.subr.bf16.mxu1 %v9779_v35 }
 0x4c1   : > { %9782 = vmatpush3.bf16.msra.mxu1 %v9781_v23  ;;  %v14196_v23 = vld [vmem:[#allocation31_spill] sm:$0xff] }
 0x4c2   : > { %v9785_v39 = vpack.c.bf16 %v6590_v22, %v6589_v45  ;;  %v9554_v33 = vpop.f32.mrb[194].mxu1  ;;  %v14207_v22 = vld [vmem:[#allocation42_spill] sm:$0xff] }
 0x4c3   : > { %v6592_v44 = vmul.f32 %v9554_v33, %v14194_v29  ;;  %v6088_v32 = vpop.f32.mrb[195].mxu1  ;;  %v14208_v33 = vld [vmem:[#allocation43_spill] sm:$0xff] }
 0x4c4   : > { %v6591_v4 = vmul.f32 %v14195_v48, %v6088_v32  ;;  %8116 = vmatmul.mubr.msk.f32.vlgmr.msra.gmra.mrb[0].mxu1 %vm6691_vm8, %v10855_v14  ;;  %v14209_v32 = vld [vmem:[#allocation44_spill] sm:$0xff] }
 0x4c5   : > { %8117 = vmatprep.mubr.msk.f32.mxu1 %vm6700_vm9, %v10855_v14 }
 0x4c6   : > { %v9789_v11 = vpack.c.bf16 %v6592_v44, %v6591_v4  ;;  %v9557_v38 = vpop.f32.mrb[196].mxu1 }
 0x4c7   : > { %v6594_v55 = vmul.f32 %v9557_v38, %v14196_v23  ;;  %v6098_v58 = vpop.f32.mrb[197].mxu1  ;;  %v14210_v23 = vld [vmem:[#allocation45_spill] sm:$0xff] }
 0x4c8   : > { %v6593_v56 = vmul.f32 %v14197_v43, %v6098_v58  ;;  %8118 = vmatmul.mubr.msk.f32.gmra.mrb[2].mxu1 %vm6699_vm11, %v10855_v14  ;;  %v14211_v43 = vld [vmem:[#allocation46_spill] sm:$0xff] }
 0x4c9   : > { %8123 = vmatprep.mubr.msk.f32.mxu1 %vm6696_vm12, %v10855_v14 }
 0x4ca   : > { %v9793_v9 = vpack.c.bf16 %v6594_v55, %v6593_v56  ;;  %v9560_v19 = vpop.f32.mrb[198].mxu1 }
 0x4cb   : > { %v6596_v52 = vmul.f32 %v9560_v19, %v14198_v24  ;;  %v6108_v3 = vpop.f32.mrb[199].mxu1 }
 0x4cc   : > { %v6595_v50 = vmul.f32 %v14199_v6, %v6108_v3 }
 0x4ce   : > { %v9797_v62 = vpack.c.bf16 %v6596_v52, %v6595_v50  ;;  %v9563_v63 = vpop.f32.mrb[200].mxu1  ;;  %v14212_v52 = vld [vmem:[#allocation47_spill] sm:$0xff]  ;;  %v14213_v50 = vld [vmem:[#allocation48_spill] sm:$0xff] }
 0x4cf   : > { %v6598_v5 = vmul.f32 %v9563_v63, %v14200_v16  ;;  %v6118_v59 = vpop.f32.mrb[201].mxu1 }
 0x4d0   : > { %v6597_v18 = vmul.f32 %v14201_v17, %v6118_v59  ;;  %v14214_v59 = vld [vmem:[#allocation49_spill] sm:$0xff] }
 0x4d2   : > { %v9801_v7 = vpack.c.bf16 %v6598_v5, %v6597_v18  ;;  %v9566_v15 = vpop.f32.mrb[202].mxu1 }
 0x4d3   : > { %v6600_v46 = vmul.f32 %v9566_v15, %v14202_v54  ;;  %v6128_v47 = vpop.f32.mrb[203].mxu1  ;;  %v14215_v15 = vld [vmem:[#allocation50_spill] sm:$0xff] }
 0x4d4   : > { %v6599_v61 = vmul.f32 %v14203_v26, %v6128_v47  ;;  %v14216_v47 = vld [vmem:[#allocation51_spill] sm:$0xff] }
 0x4d6   : > { %v9805_v20 = vpack.c.bf16 %v6600_v46, %v6599_v61  ;;  %v9569_v12 = vpop.f32.mrb[204].mxu1 }
 0x4d7   : > { %v6602_v0 = vmul.f32 %v9569_v12, %v14204_v37  ;;  %v6138_v8 = vpop.f32.mrb[205].mxu1  ;;  %v14217_v12 = vld [vmem:[#allocation52_spill] sm:$0xff] }
 0x4d8   : > { %v6601_v36 = vmul.f32 %v14205_v51, %v6138_v8  ;;  %v14218_v8 = vld [vmem:[#allocation53_spill] sm:$0xff] }
 0x4da   : > { %v9809_v27 = vpack.c.bf16 %v6602_v0, %v6601_v36  ;;  %v9572_v35 = vpop.f32.mrb[206].mxu1 }
 0x4db   : > { %v13842_v40 = vmul.f32 %v9572_v35, %v14206_v2  ;;  %v6148_v60 = vpop.f32.mrb[207].mxu1  ;;  %v14219_v35 = vld [vmem:[#allocation54_spill] sm:$0xff] }
 0x4dc   : > { %v13845_v1 = vmul.f32 %v14207_v22, %v6148_v60  ;;  %v14220_v60 = vld [vmem:[#allocation55_spill] sm:$0xff] }
 0x4de   : > { %v9813_v25 = vpack.c.bf16 %v13842_v40, %v13845_v1  ;;  %v9575_v45 = vpop.f32.mrb[208].mxu1 }
 0x4df   : > { %v6606_v29 = vmul.f32 %v9575_v45, %v14208_v33  ;;  %v6158_v44 = vpop.f32.mrb[209].mxu1  ;;  %v14221_v45 = vld [vmem:[#allocation56_spill] sm:$0xff] }
 0x4e0   : > { %v6605_v48 = vmul.f32 %v14209_v32, %v6158_v44  ;;  %v14222_v32 = vld [vmem:[#allocation57_spill] sm:$0xff] }
 0x4e2   : > { %v9783_v4 = vpack.c.bf16 %v6606_v29, %v6605_v48  ;;  %v9578_v38 = vpop.f32.mrb[210].mxu1 }
 0x4e3   : > { %v6608_v55 = vmul.f32 %v9578_v38, %v14210_v23  ;;  %v6168_v58 = vpop.f32.mrb[211].mxu1  ;;  %v14223_v38 = vld [vmem:[#allocation58_spill] sm:$0xff] }
 0x4e4   : > { %v6607_v56 = vmul.f32 %v14211_v43, %v6168_v58  ;;  %9784 = vmatprep.subr.bf16.mxu0 %v9783_v4  ;;  %v14224_v43 = vld [vmem:[#allocation59_spill] sm:$0xff] }
 0x4e5   : > { %9786 = vmatpush3.bf16.msra.mxu0 %v9785_v39 }
 0x4e6   : > { %v9787_v19 = vpack.c.bf16 %v6608_v55, %v6607_v56  ;;  %v9581_v24 = vpop.f32.mrb[212].mxu1 }
 0x4e7   : > { %v6610_v3 = vmul.f32 %v9581_v24, %v14212_v52  ;;  %v6178_v6 = vpop.f32.mrb[213].mxu1  ;;  %v14225_v24 = vld [vmem:[#allocation60_spill] sm:$0xff] }
 0x4e8   : > { %v6609_v63 = vmul.f32 %v14213_v50, %v6178_v6  ;;  %9788 = vmatprep.subr.bf16.mxu0 %v9787_v19  ;;  %v14226_v6 = vld [vmem:[#allocation61_spill] sm:$0xff] }
 0x4e9   : > { %9790 = vmatpush3.bf16.msra.mxu0 %v9789_v11 }
 0x4ea   : > { %v9791_v16 = vpack.c.bf16 %v6610_v3, %v6609_v63  ;;  %v9584_v5 = vpop.f32.mrb[214].mxu1 }
 0x4eb   : > { %v6612_v17 = vmul.f32 %v9584_v5, %v14214_v59  ;;  %v6188_v18 = vpop.f32.mrb[215].mxu1  ;;  %v14228_v59 = vld [vmem:[#allocation63_spill] sm:$0xff] }
 0x4ec   : > { %v6611_v54 = vmul.f32 %v14215_v15, %v6188_v18  ;;  %9792 = vmatprep.subr.bf16.mxu0 %v9791_v16  ;;  %v14227_v16 = vld [vmem:[#allocation62_spill] sm:$0xff]  ;;  %v14229_v15 = vld [vmem:[#allocation64_spill] sm:$0xff] }
 0x4ed   : > { %9794 = vmatpush3.bf16.msra.mxu0 %v9793_v9 }
 0x4ee   : > { %v9795_v46 = vpack.c.bf16 %v6612_v17, %v6611_v54  ;;  %v9587_v39 = vpop.f32.mrb[216].mxu1 }
 0x4ef   : > { %v6614_v26 = vmul.f32 %v9587_v39, %v14216_v47  ;;  %v6198_v61 = vpop.f32.mrb[217].mxu1  ;;  %v14230_v47 = vld [vmem:[#allocation65_spill] sm:$0xff] }
 0x4f0   : > { %v6613_v37 = vmul.f32 %v14217_v12, %v6198_v61  ;;  %9796 = vmatprep.subr.bf16.mxu0 %v9795_v46  ;;  %v14231_v12 = vld [vmem:[#allocation66_spill] sm:$0xff] }
 0x4f1   : > { %9798 = vmatpush3.bf16.msra.mxu0 %v9797_v62  ;;  %v6675_v62 = vsub.s32 4, %v13618_v10 }
 0x4f2   : > { %v9799_v0 = vpack.c.bf16 %v6614_v26, %v6613_v37  ;;  %v9590_v11 = vpop.f32.mrb[218].mxu1 }
 0x4f3   : > { %v6616_v51 = vmul.f32 %v9590_v11, %v14218_v8  ;;  %v6208_v36 = vpop.f32.mrb[219].mxu1  ;;  %v14232_v11 = vld [vmem:[#allocation67_spill] sm:$0xff] }
 0x4f4   : > { %v6615_v2 = vmul.f32 %v14219_v35, %v6208_v36  ;;  %9800 = vmatprep.subr.bf16.mxu0 %v9799_v0  ;;  %v14233_v36 = vld [vmem:[#allocation68_spill] sm:$0xff] }
 0x4f5   : > { %9802 = vmatpush3.bf16.msra.mxu0 %v9801_v7  ;;  %v6676_v7 = vrot.slane %v13634_v42, %v6675_v62 }
 0x4f6   : > { %v9803_v40 = vpack.c.bf16 %v6616_v51, %v6615_v2  ;;  %v9593_v9 = vpop.f32.mrb[220].mxu1 }
 0x4f7   : > { %v6618_v22 = vmul.f32 %v9593_v9, %v14220_v60  ;;  %v6218_v1 = vpop.f32.mrb[221].mxu1  ;;  %vm6693_vm13 = vcmp.eq.s32.totalorder %v13618_v10, %v6676_v7  ;;  %vm6701_vm14 = vcmp.eq.s32.totalorder %v13754_v41, %v6676_v7  ;;  %v14234_v9 = vld [vmem:[#allocation69_spill] sm:$0xff] }
 0x4f8   : > { %v6617_v33 = vmul.f32 %v14221_v45, %v6218_v1  ;;  %9804 = vmatprep.subr.bf16.mxu0 %v9803_v40  ;;  %v14235_v1 = vld [vmem:[#allocation70_spill] sm:$0xff]  ;;  %v14238_v7 = vld [vmem:[#allocation73_spill] sm:$0xff] }
 0x4f9   : > { %9806 = vmatpush3.bf16.msra.mxu0 %v9805_v20 }
 0x4fa   : > { %v9807_v29 = vpack.c.bf16 %v6618_v22, %v6617_v33  ;;  %v9596_v44 = vpop.f32.mrb[222].mxu1 }
 0x4fb   : > { %v6620_v48 = vmul.f32 %v9596_v44, %v14222_v32  ;;  %v6228_v4 = vpop.f32.mrb[223].mxu1 }
 0x4fc   : > { %v6619_v23 = vmul.f32 %v14223_v38, %v6228_v4  ;;  %9808 = vmatprep.subr.bf16.mxu0 %v9807_v29  ;;  %v14236_v29 = vld [vmem:[#allocation71_spill] sm:$0xff] }
 0x4fd   : > { %9810 = vmatpush3.bf16.msra.mxu0 %v9809_v27 }
 0x4fe   : > { %v9811_v55 = vpack.c.bf16 %v6620_v48, %v6619_v23  ;;  %v9599_v58 = vpop.f32.mrb[224].mxu1  ;;  %v14237_v48 = vld [vmem:[#allocation72_spill] sm:$0xff] }
 0x4ff   : > { %v6622_v56 = vmul.f32 %v9599_v58, %v14224_v43  ;;  %v6238_v19 = vpop.f32.mrb[225].mxu1  ;;  %v14239_v43 = vld [vmem:[#allocation74_spill] sm:$0xff] }
 0x500   : > { %v6621_v20 = vmul.f32 %v14225_v24, %v6238_v19  ;;  %9812 = vmatprep.subr.bf16.mxu0 %v9811_v55 }
 0x501   : > { %9814 = vmatpush3.bf16.msra.mxu0 %v9813_v25 }
 0x502   : > { %v9817_v52 = vpack.c.bf16 %v6622_v56, %v6621_v20  ;;  %v9602_v3 = vpop.f32.mrb[226].mxu1  ;;  %v14240_v20 = vld [vmem:[#allocation75_spill] sm:$0xff] }
 0x503   : > { %v6624_v50 = vmul.f32 %v9602_v3, %v14226_v6  ;;  %v6248_v63 = vpop.f32.mrb[227].mxu1 }
 0x504   : > { %v6623_v27 = vmul.f32 %v14227_v16, %v6248_v63  ;;  %8120 = vmatmul.mubr.msk.f32.vlgmr.msra.gmra.mrb[4].mxu0 %vm6693_vm13, %v10855_v14 }
 0x505   : > { %8121 = vmatprep.mubr.msk.f32.mxu0 %vm6702_vm7, %v10855_v14 }
 0x506   : > { %v9821_v5 = vpack.c.bf16 %v6624_v50, %v6623_v27  ;;  %v9605_v25 = vpop.f32.mrb[228].mxu1  ;;  %v14241_v50 = vld [vmem:[#allocation76_spill] sm:$0xff] }
 0x507   : > { %v6626_v17 = vmul.f32 %v9605_v25, %v14228_v59  ;;  %v6258_v18 = vpop.f32.mrb[229].mxu1  ;;  %v14242_v25 = vld [vmem:[#allocation77_spill] sm:$0xff] }
 0x508   : > { %v6625_v54 = vmul.f32 %v14229_v15, %v6258_v18  ;;  %8122 = vmatmul.mubr.msk.f32.gmra.mrb[6].mxu0 %vm6701_vm14, %v10855_v14  ;;  %v14243_v18 = vld [vmem:[#allocation78_spill] sm:$0xff] }
 0x50a   : > { %v9825_v46 = vpack.c.bf16 %v6626_v17, %v6625_v54  ;;  %v9608_v39 = vpop.f32.mrb[230].mxu1 }
 0x50b   : > { %v6628_v26 = vmul.f32 %v9608_v39, %v14230_v47  ;;  %v6268_v61 = vpop.f32.mrb[231].mxu1  ;;  %v14244_v47 = vld [vmem:[#allocation79_spill] sm:$0xff] }
 0x50c   : > { %v6627_v37 = vmul.f32 %v14231_v12, %v6268_v61  ;;  %v14245_v12 = vld [vmem:[#allocation80_spill] sm:$0xff] }
 0x50e   : > { %v9829_v31 = vpack.c.bf16 %v6628_v26, %v6627_v37  ;;  %v9611_v0 = vpop.f32.mrb[232].mxu1 }
 0x50f   : > { %v6630_v8 = vmul.f32 %v9611_v0, %v14232_v11  ;;  %v6278_v51 = vpop.f32.mrb[233].mxu1 }
 0x510   : > { %v6629_v35 = vmul.f32 %v14233_v36, %v6278_v51 }
 0x512   : > { %v9833_v2 = vpack.c.bf16 %v6630_v8, %v6629_v35  ;;  %v9614_v40 = vpop.f32.mrb[234].mxu1  ;;  %v14246_v8 = vld [vmem:[#allocation81_spill] sm:$0xff] }
 0x513   : > { %v6632_v60 = vmul.f32 %v9614_v40, %v14234_v9  ;;  %v6288_v22 = vpop.f32.mrb[235].mxu1  ;;  %v14247_v9 = vld [vmem:[#allocation82_spill] sm:$0xff] }
 0x514   : > { %v6631_v45 = vmul.f32 %v14235_v1, %v6288_v22 }
 0x516   : > { %v9837_v33 = vpack.c.bf16 %v6632_v60, %v6631_v45  ;;  %v9617_v62 = vpop.f32.mrb[236].mxu1 }
 0x517   : > { %v6634_v44 = vmul.f32 %v9617_v62, %v14236_v29  ;;  %v6298_v32 = vpop.f32.mrb[237].mxu1 }
 0x518   : > { %v6633_v4 = vmul.f32 %v14237_v48, %v6298_v32 }
 0x51a   : > { %v9841_v38 = vpack.c.bf16 %v6634_v44, %v6633_v4  ;;  %v9620_v23 = vpop.f32.mrb[238].mxu1 }
 0x51b   : > { %v6636_v55 = vmul.f32 %v9620_v23, %v14238_v7  ;;  %v6308_v58 = vpop.f32.mrb[239].mxu1 }
 0x51c   : > { %v6635_v56 = vmul.f32 %v14239_v43, %v6308_v58 }
 0x51e   : > { %v9845_v19 = vpack.c.bf16 %v6636_v55, %v6635_v56  ;;  %v9623_v24 = vpop.f32.mrb[240].mxu1  ;;  %v14248_v55 = vld [vmem:[#allocation83_spill] sm:$0xff] }
 0x51f   : > { %v6638_v3 = vmul.f32 %v9623_v24, %v14240_v20  ;;  %v6318_v6 = vpop.f32.mrb[241].mxu1 }
 0x520   : > { %v6637_v63 = vmul.f32 %v14241_v50, %v6318_v6 }
 0x522   : > { %v9815_v16 = vpack.c.bf16 %v6638_v3, %v6637_v63  ;;  %v9626_v27 = vpop.f32.mrb[242].mxu1 }
 0x523   : > { %v6640_v59 = vmul.f32 %v9626_v27, %v14242_v25  ;;  %v6328_v17 = vpop.f32.mrb[243].mxu1 }
 0x524   : > { %v6639_v15 = vmul.f32 %v14243_v18, %v6328_v17  ;;  %9816 = vmatprep.subr.bf16.mxu1 %v9815_v16 }
 0x525   : > { %9818 = vmatpush3.bf16.msra.mxu1 %v9817_v52 }
 0x526   : > { %v9819_v54 = vpack.c.bf16 %v6640_v59, %v6639_v15  ;;  %v9629_v39 = vpop.f32.mrb[244].mxu1  ;;  %v6737_v15 = vld [vmem:[#allocation4] sm:$0xff] }
 0x527   : > { %v6642_v26 = vmul.f32 %v9629_v39, %v14244_v47  ;;  %v6338_v61 = vpop.f32.mrb[245].mxu1 }
 0x528   : > { %v6641_v37 = vmul.f32 %v14245_v12, %v6338_v61  ;;  %9820 = vmatprep.subr.bf16.mxu1 %v9819_v54  ;;  %v6738_v12 = vld [vmem:[#allocation4 + $0x8] sm:$0xff] }
 0x529   : > { %9822 = vmatpush3.bf16.msra.mxu1 %v9821_v5 }
 0x52a   : > { %v9823_v0 = vpack.c.bf16 %v6642_v26, %v6641_v37  ;;  %v9632_v11 = vpop.f32.mrb[246].mxu1 }
 0x52b   : > { %v6644_v51 = vmul.f32 %v9632_v11, %v14246_v8  ;;  %v6348_v36 = vpop.f32.mrb[247].mxu1  ;;  %v7155_v11 = vld [vmem:[%s14025_s7] sm:$0xff] (!%p8127_p6)  ;;  %v7156_v8 = vld [vmem:[%s14025_s7 + $0x8] sm:$0xff] (!%p8127_p6) }
 0x52c   : > { %v6643_v35 = vmul.f32 %v13499_v28, %v6348_v36  ;;  %9824 = vmatprep.subr.bf16.mxu1 %v9823_v0  ;;  %v9867_v36 = vpack.c.bf16 (!%p8127_p6), %v7156_v8, %v7155_v11 }
 0x52d   : > { %9826 = vmatpush3.bf16.msra.mxu1 %v9825_v46 }
 0x52e   : > { %v9827_v40 = vpack.c.bf16 %v6644_v51, %v6643_v35  ;;  %v9635_v52 = vpop.f32.mrb[248].mxu1  ;;  %v7157_v51 = vld [vmem:[%s14025_s7 + $0x10] sm:$0xff] (!%p8127_p6)  ;;  %v7158_v35 = vld [vmem:[%s14025_s7 + $0x18] sm:$0xff] (!%p8127_p6) }
 0x52f   : > { %v6646_v60 = vmul.f32 %v9635_v52, %v14247_v9  ;;  %v6358_v22 = vpop.f32.mrb[249].mxu1  ;;  %v9871_v52 = vpack.c.bf16 (!%p8127_p6), %v7158_v35, %v7157_v51  ;;  %v7159_v9 = vld [vmem:[%s14025_s7 + $0x20] sm:$0xff] (!%p8127_p6) }
 0x530   : > { %v6645_v1 = vmul.f32 %v13507_v21, %v6358_v22  ;;  %9828 = vmatprep.subr.bf16.mxu1 %v9827_v40  ;;  %v6683_v21 = vsub.s32 6, %v13618_v10  ;;  %v10856_v40 = vmov (!%p8127_p6), 0  }
 0x531   : > { %9830 = vmatpush3.bf16.msra.mxu1 %v9829_v31  ;;  %10810 = vset.pattern.permute.xlu0 (!%p8127_p6), %v10856_v40 }
 0x532   : > { %v9831_v45 = vpack.c.bf16 %v6646_v60, %v6645_v1  ;;  %v9638_v5 = vpop.f32.mrb[250].mxu1  ;;  %10811 = vset.pattern.permute.xlu1 (!%p8127_p6), %v10856_v40  ;;  %v7160_v60 = vld [vmem:[%s14025_s7 + $0x28] sm:$0xff] (!%p8127_p6)  ;;  %v7052_v1 = vld [vmem:[%s14024_s6] sm:$0xff] (!%p8127_p6) }
 0x533   : > { %v6648_v62 = vmul.f32 %v9638_v5, %v13511_v53  ;;  %v6368_v29 = vpop.f32.mrb[251].mxu1  ;;  %v7054_v5 = vld [vmem:[%s14024_s6 + $0x10] sm:$0xff] (!%p8127_p6) }
 0x534   : > { %v6647_v44 = vmul.f32 %v13518_v30, %v6368_v29  ;;  %9832 = vmatprep.subr.bf16.mxu1 %v9831_v45  ;;  %v7053_v45 = vld [vmem:[%s14024_s6 + $0x8] sm:$0xff] (!%p8127_p6)  ;;  %v7161_v29 = vld [vmem:[%s14025_s7 + $0x30] sm:$0xff] (!%p8127_p6) }
 0x535   : > { %9834 = vmatpush3.bf16.msra.mxu1 %v9833_v2  ;;  %v6684_v2 = vrot.slane %v13634_v42, %v6683_v21  ;;  %v7048_v21 = vld [vmem:[%s14019_s1] sm:$0xff] (!%p8127_p6) }
 0x536   : > { %v9835_v28 = vpack.c.bf16 %v6648_v62, %v6647_v44  ;;  %v9641_v46 = vpop.f32.mrb[252].mxu1  ;;  %v9875_v62 = vpack.c.bf16 (!%p8127_p6), %v7160_v60, %v7159_v9  ;;  %v9847_v44 = vpack.c.bf16 (!%p8127_p6), %v7053_v45, %v7052_v1  ;;  %7145 = vperm.xlu0 (!%p8127_p6), %10810, %v7048_v21  }
 0x537   : > { %v6650_v32 = vmul.f32 %v9641_v46, %v13527_v13  ;;  %v6378_v48 = vpop.f32.mrb[253].mxu1  ;;  %vm6695_vm15 = vcmp.eq.s32.totalorder %v13618_v10, %v6684_v2  ;;  %vm6703_vm6 = vcmp.eq.s32.totalorder %v13754_v41, %v6684_v2  ;;  %v7162_v46 = vld [vmem:[%s14025_s7 + $0x38] sm:$0xff] (!%p8127_p6)  ;;  %v7049_v2 = vld [vmem:[%s14019_s1 + $0x8] sm:$0xff] (!%p8127_p6) }
 0x538   : > { %v6649_v4 = vmul.f32 %v13534_v57, %v6378_v48  ;;  %9836 = vmatprep.subr.bf16.mxu1 %v9835_v28  ;;  %v7055_v28 = vld [vmem:[%s14024_s6 + $0x18] sm:$0xff] (!%p8127_p6)  ;;  %v7056_v48 = vld [vmem:[%s14024_s6 + $0x20] sm:$0xff] (!%p8127_p6)  ;;  %9848 = vmatprep.subr.bf16.mxu0 (!%p8127_p6), %v9847_v44 }
 0x539   : > { %9838 = vmatpush3.bf16.msra.mxu1 %v9837_v33  ;;  %9850 = vmatpush3.bf16.msra.mxu0 (!%p8127_p6), %v9847_v44 }
 0x53a   : > { %v9839_v31 = vpack.c.bf16 %v6650_v32, %v6649_v4  ;;  %v9644_v23 = vpop.f32.mrb[254].mxu1  ;;  %v9851_v32 = vpack.c.bf16 (!%p8127_p6), %v7055_v28, %v7054_v5  ;;  %v7057_v4 = vld [vmem:[%s14024_s6 + $0x28] sm:$0xff] (!%p8127_p6)  ;;  %7150 = vperm.xlu0 (!%p8127_p6), %10810, %v7049_v2  }
 0x53b   : > { %v6652_v53 = vmul.f32 %v9644_v23, %v13543_v49  ;;  %v6388_v7 = vpop.f32.mrb[255].mxu1  ;;  %v7163_v23 = vld [vmem:[%s14025_s7 + $0x40] sm:$0xff] (!%p8127_p6) }
 0x53c   : > { %v6651_v30 = vmul.f32 %v14248_v55, %v6388_v7  ;;  %9840 = vmatprep.subr.bf16.mxu1 %v9839_v31  ;;  %v9879_v31 = vpack.c.bf16 (!%p8127_p6), %v7162_v46, %v7161_v29  ;;  %9852 = vmatprep.subr.bf16.mxu0 (!%p8127_p6), %v9851_v32  ;;  %v7164_v7 = vld [vmem:[%s14025_s7 + $0x48] sm:$0xff] (!%p8127_p6)  ;;  %v7058_v55 = vld [vmem:[%s14024_s6 + $0x30] sm:$0xff] (!%p8127_p6) }
 0x53d   : > { %9842 = vmatpush3.bf16.msra.mxu1 %v9841_v38  ;;  %9854 = vmatpush3.bf16.msra.mxu0 (!%p8127_p6), %v9851_v32 }
 0x53e   : > { %v9843_v58 = vpack.c.bf16 %v6652_v53, %v6651_v30  ;;  %v9855_v53 = vpack.c.bf16 (!%p8127_p6), %v7057_v4, %v7056_v48  ;;  %v7059_v30 = vld [vmem:[%s14024_s6 + $0x38] sm:$0xff] (!%p8127_p6) }
 0x540   : > { %9844 = vmatprep.subr.bf16.mxu1 %v9843_v58  ;;  %v9883_v58 = vpack.c.bf16 (!%p8127_p6), %v7164_v7, %v7163_v23  ;;  %9856 = vmatprep.subr.bf16.mxu0 (!%p8127_p6), %v9855_v53 }
 0x541   : > { %9846 = vmatpush3.bf16.msra.mxu1 %v9845_v19  ;;  %9858 = vmatpush3.bf16.msra.mxu0 (!%p8127_p6), %v9855_v53 }
 0x542   : > { %9868 = vmatprep.subr.bf16.mxu1 (!%p8127_p6), %v9867_v36 }
 0x544   : > { %8124 = vmatmul.mubr.msk.f32.vlgmr.msra.gmra.mrb[4].mxu1 %vm6695_vm15, %v10855_v14 }
 0x545   : > { %8125 = vmatprep.mubr.msk.f32.mxu1 %vm6704_vm10, %v10855_v14  ;;  %9870 = vmatpush3.bf16.msra.mxu1 (!%p8127_p6), %v9867_v36 }
 0x546   : > { %9872 = vmatprep.subr.bf16.mxu1 (!%p8127_p6), %v9871_v52 }
 0x548   : > { %8126 = vmatmul.mubr.msk.f32.gmra.mrb[6].mxu1 %vm6703_vm6, %v10855_v14 }
 0x549   : > { %9874 = vmatpush3.bf16.msra.mxu1 (!%p8127_p6), %v9871_v52 }
 0x54a   : > { %9876 = vmatprep.subr.bf16.mxu1 (!%p8127_p6), %v9875_v62 }
 0x54d   : > { %9878 = vmatpush3.bf16.msra.mxu1 (!%p8127_p6), %v9875_v62 }
 0x54e   : > { %9880 = vmatprep.subr.bf16.mxu1 (!%p8127_p6), %v9879_v31 }
 0x551   : > { %9882 = vmatpush3.bf16.msra.mxu1 (!%p8127_p6), %v9879_v31 }
 0x552   : > { %9884 = vmatprep.subr.bf16.mxu1 (!%p8127_p6), %v9883_v58 }
 0x555   : > { %9886 = vmatpush3.bf16.msra.mxu1 (!%p8127_p6), %v9883_v58 }
 0x557   : > { %v8698_v13 = vpop.f32.mrb[0].mxu0 }
 0x558   : > { %v8699_v57 = vpop.f32.mrb[1].mxu0 }
 0x559   : > { %v8700_v49 = vadd.f32 %v8699_v57, %v8698_v13  ;;  %v9859_v13 = vpack.c.bf16 (!%p8127_p6), %v7059_v30, %v7058_v55  ;;  %v7060_v57 = vld [vmem:[%s14024_s6 + $0x40] sm:$0xff] (!%p8127_p6) }
 0x55b   : > { %9860 = vmatprep.subr.bf16.mxu0 (!%p8127_p6), %v9859_v13 }
 0x55c   : > { %9862 = vmatpush3.bf16.msra.mxu0 (!%p8127_p6), %v9859_v13 }
 0x56e   : > { %v8701_v42 = vpop.f32.mrb[2].mxu0 }
 0x56f   : > { %v8702_v33 = vpop.f32.mrb[3].mxu0 }
 0x570   : > { %v8703_v38 = vadd.f32 %v8702_v33, %v8701_v42 }
 0x597   : > { %v8736_v43 = vpop.f32.mrb[0].mxu1 }
 0x598   : > { %v8737_v56 = vpop.f32.mrb[1].mxu1 }
 0x599   : > { %v8738_v10 = vadd.f32 %v8737_v56, %v8736_v43 }
 0x59b   : > { %v6881_v19 = vadd.f32 %v8738_v10, %v8700_v49  ;;  %v8739_v24 = vpop.f32.mrb[2].mxu1  ;;  %v7061_v49 = vld [vmem:[%s14024_s6 + $0x48] sm:$0xff] (!%p8127_p6) }
 0x59c   : > { %v8740_v20 = vpop.f32.mrb[3].mxu1  ;;  %v9863_v42 = vpack.c.bf16 (!%p8127_p6), %v7061_v49, %v7060_v57 }
 0x59d   : > { %v8741_v3 = vadd.f32 %v8740_v20, %v8739_v24 }
 0x59e   : > { %9864 = vmatprep.subr.bf16.mxu0 (!%p8127_p6), %v9863_v42 }
 0x59f   : > { %v6886_v6 = vadd.f32 %v8741_v3, %v8703_v38  ;;  %9866 = vmatpush3.bf16.msra.mxu0 (!%p8127_p6), %v9863_v42 }
 0x5b5   : > { %v7146_v20 = vpop.permute.xlu0 (!%p8127_p6), %7145 }
 0x5d7   : > { %v8774_v34 = vpop.f32.mrb[4].mxu0 }
 0x5d8   : > { %v8775_v50 = vpop.f32.mrb[5].mxu0 }
 0x5d9   : > { %v8776_v63 = vadd.f32 %v8775_v50, %v8774_v34  ;;  %v7242_v34 = vld [vmem:[#allocation2] sm:$0xff] (!%p8127_p6) }
 0x5db   : > { %v6956_v41 = vadd.f32 %v8776_v63, %v6881_v19  ;;  %v8777_v16 = vpop.f32.mrb[6].mxu0 }
 0x5dc   : > { %v8778_v14 = vpop.f32.mrb[7].mxu0 }
 0x5dd   : > { %v8779_v27 = vadd.f32 %v8778_v14, %v8777_v16  ;;  %v7243_v14 = vld [vmem:[#allocation2 + $0x8] sm:$0xff] (!%p8127_p6) }
 0x5df   : > { %v6961_v25 = vadd.f32 %v8779_v27, %v6886_v6  ;;  %v7151_v6 = vpop.permute.xlu0 (!%p8127_p6), %7150 }
 0x617   : > { %v8812_v59 = vpop.f32.mrb[4].mxu1 }
 0x618   : > { %v8813_v17 = vpop.f32.mrb[5].mxu1 }
 0x619   : > { %v8814_v18 = vadd.f32 %v8813_v17, %v8812_v59 }
 0x61b   : > { %v7031_v54 = vadd.f32 %v8814_v18, %v6956_v41  ;;  %v8815_v39 = vpop.f32.mrb[6].mxu1 }
 0x61c   : > { %v8816_v47 = vpop.f32.mrb[7].mxu1 }
 0x61d   : > { %v7039_v26 = vadd.f32 %v7031_v54, %v6737_v15  ;;  %v8817_v61 = vadd.f32 %v8816_v47, %v8815_v39  ;;  %7047 = sbr.rel (%p8127_p6) target bundleno = 1931 (0x78b), region = 68 }
 0x61f   : > { %7042 = vst.msk [vmem:[#allocation4] sm:$0xff] %vm7041_vm2, %v7039_v26  ;;  %v7036_v37 = vadd.f32 %v8817_v61, %v6961_v25 }
 0x621   : > { %v7040_v0 = vadd.f32 %v7036_v37, %v6738_v12 }
 0x623   : > { %7043 = vst.msk [vmem:[#allocation4 + $0x8] sm:$0xff] %vm7041_vm2, %v7040_v0 }
 0x626   : > { %v7050_v22 = vld [vmem:[#allocation4] sm:$0xff] }
 0x627   : > { %9688 = vmatprep.mubr.msk.f32.mxu1 %vm7041_vm2, %v7050_v22  ;;  %9665 = vmatprep.mubr.msk.f32.mxu0 %vm7041_vm2, %v7050_v22 }
 0x62a   : > { %v7051_v33 = vld [vmem:[#allocation4 + $0x8] sm:$0xff] }
 0x62b   : > { %9689 = vmatmul.mubr.msk.f32.vlgmr.msra.gmra.mrb[0].mxu1 %vm7041_vm2, %v7051_v33  ;;  %9666 = vmatmul.mubr.msk.f32.vlgmr.msra.gmra.mrb[0].mxu0 %vm7041_vm2, %v7051_v33 }
 0x6fe   : > { %v9690_v38 = vpop.f32.mrb[0].mxu1  ;;  %v9667_v10 = vpop.f32.mrb[0].mxu0 }
 0x6ff   : > { %v7231_v43 = vpop.f32.mrb[1].mxu1  ;;  %v7134_v19 = vpop.f32.mrb[1].mxu0  ;;  %v7241_v24 = vmul.f32 %v9690_v38, %v7049_v2  ;;  %v7154_v41 = vmul.f32 %v9667_v10, %v7151_v6 }
 0x700   : > { %v7240_v56 = vmul.f32 %v7231_v43, %v7048_v21  ;;  %v7153_v3 = vmul.f32 %v7146_v20, %v7134_v19 }
 0x702   : > { %7246 = vperm.xlu1 %10811, %v7240_v56  }
 0x706   : > { %7251 = vperm.xlu1 %10811, %v7241_v24  }
 0x781   : > { %v7247_v50 = vpop.permute.xlu1 %7246 }
 0x782   : > { %v7254_v63 = vmul.f32 %v7247_v50, %v7153_v3 }
 0x784   : > { %v7256_v16 = vadd.f32 %v7254_v63, %v7242_v34 }
 0x785   : > { %v7252_v27 = vpop.permute.xlu1 %7251 }
 0x786   : > { %7258 = vst.msk [vmem:[#allocation5] sm:$0xff] %vm2609_vm3, %v7256_v16  ;;  %v7255_v25 = vmul.f32 %v7252_v27, %v7154_v41 }
 0x788   : > { %v7257_v59 = vadd.f32 %v7255_v25, %v7243_v14 }
 0x78a   : > { %7259 = vst.msk [vmem:[#allocation5 + $0x8] sm:$0xff] %vm2609_vm3, %v7257_v59 }
 0x78b PF: > { %p10147_p7 = scmp.eq.s32.totalorder %s10921_s14, 2  ;;  %s10857_s22 = smov [#allocation5]  }
 0x78c   : > { %s7266_s24 = sshll.u32 %s10857_s22, 4  ;;  %s7267_s24 = int_to_ptr.vmem [resolvable:$true] %s7266_s24 }
 0x78d   : > { %s10812_s25 = scalar_lea.vmem %s7267_s24, 256  ;;  %p10819_p11 = scmp.lt.s32.totalorder %s7267_s24, %s7267_s24 }
 0x78e   : > { %p10813_p8 = scmp.ne.s32.totalorder %s7267_s24, %s10812_s25  ;;  %p10820_p12 = scmp.lt.s32.totalorder %s10812_s25, %s10812_s25 }
 0x790   : > { %p10814_p9 = pnand %p10813_p8, %p10147_p7  ;;  %p10821_p13 = por %p10820_p12, %p10819_p11 }
 0x792   : > { %p10815_p10 = pneg %p10814_p9 }
 0x794   : > { %p10822_p0 = pnand %p10821_p13, %p10815_p10 }
 0x796   : > { %10825 = shalt.err (!%p10822_p0)
}
 0x797   : > { %s10826_s28 = scalar_lea.hbm %s14028_s10, 256 }
 0x798   : > { %p10827_p1 = scmp.ne.s32.totalorder %s14028_s10, %s10826_s28  ;;  %p10832_p4 = scmp.lt.u32.totalorder %s10826_s28, %s14028_s10 }
 0x79a   : > { %p10828_p2 = pnand %p10827_p1, %p10147_p7 }
 0x79c   : > { %p10829_p3 = pneg %p10828_p2 }
 0x79e   : > { %p10834_p5 = pnand %p10832_p4, %p10829_p3 }
 0x7a0   : > { %10837 = shalt.err (!%p10834_p5)
}
 0x7a1   : > { %s10858_s16 = smov 128   ;;  %s10859_s20 = smov 8  }
 0x7a2   : > { %10144 = dma.vmem_to_hbm [thread:$0]  (%p10147_p7), %s7267_s24, 256, %s14028_s10, [#allocation6], %s10858_s16, %s10858_s16, %s10859_s20  }
 0x7a3   : > { %10843 = dma.done.wait (%p10147_p7), [#allocation6], 256  }
 0x7a4   : > { %10845 = vsyncadd (%p10147_p7), [#allocation6], 4294967040 }
 0x7a5 PF: > { %s21_s13 = sadd.s32 1, %s10848_s13  }
 0x7a6   : > { %p18_p6 = scmp.ge.s32.totalorder %s21_s13, 5  }
 0x7a8   :  { %20 = sbr.rel (!%p18_p6) target bundleno = 1 (0x1), region = 98 }
 0x7af   :  { %7282 = vsyncpa [#allocation6], 1 }
 0x7b0   :  { %7284 = vsyncpa [#allocation6 + $0x1], 1 }

</bundles_post_ra>
